<compile_context>
chip_gen: v7x
topology: tpu7x:2x2x1
jax: 0.10.0
libtpu: 0.0.40
codegen_flags: <defaults>
</compile_context>

<pallas_src>
import jax
import jax.numpy as jnp
from jax.experimental import pallas as pl
from jax.experimental.pallas import tpu as pltpu

LANE = 128
BF16 = jnp.bfloat16


def _mm(a, b):
    # True-f32 matmul for host-side folding and the correctness reference
    # (keeps the reference independent of TPU default matmul precision).
    return jnp.dot(a, b, precision=jax.lax.Precision.HIGHEST)


# -----------------------------------------------------------------------------
# Kernel
# -----------------------------------------------------------------------------
def two_stream_kernel(
    geo_ref, vis_ref,
    w1g_ref, w1v_ref, b1_ref,      # enc convs + aff Linear(512,1024) + BN, folded & split (bf16)
    wd_ref, bd_ref,                # aff Linear(1024,2) folded to one logit-difference row (f32)
    wsg_ref, wsv_ref, bs_ref,      # shortcut Linear(512,512) + BN, folded & split (bf16)
    wc1g_ref, wc1v_ref, bc1_ref,   # classifier Linear(512,1024) + BN, folded & split (bf16)
    wc2_ref, bc2_ref,              # classifier Linear(1024,num_class), lane-padded (bf16)
    out_ref, feat_ref,
):
    f32 = jnp.float32
    geo = geo_ref[...]                                   # (B, 256) f32
    vis = vis_ref[...]                                   # (B, 256) f32
    geo_b = geo.astype(BF16)
    vis_b = vis.astype(BF16)

    # --- AttFeaFusion attention branch ---
    # geo_enc / vis_enc 1x1 convs + Linear(512,1024) + BN1024 are folded on
    # the host into W1g/W1v/b1: two 256x1024 MXU dots, no concatenate.
    h = (jnp.dot(geo_b, w1g_ref[...], preferred_element_type=f32)
         + jnp.dot(vis_b, w1v_ref[...], preferred_element_type=f32)
         + b1_ref[...])
    h = jnp.maximum(h, 0.0)                              # (B, 1024)

    # Linear(1024, 2) + 2-class softmax == sigmoid of the logit difference.
    # Weight/bias difference folded on host; evaluated as VPU mul + XLU reduce.
    d = jnp.sum(h * wd_ref[...], axis=1, keepdims=True) + bd_ref[...]   # (B, 1)
    a0 = 1.0 / (1.0 + jnp.exp(-d))                       # softmax prob of channel-0 block
    a1 = 1.0 - a0

    # --- shortcut: Linear(512,512) + BN, weights pre-split by input half ---
    res = (jnp.dot(geo_b, wsg_ref[...], preferred_element_type=f32)
           + jnp.dot(vis_b, wsv_ref[...], preferred_element_type=f32)
           + bs_ref[...])                                # (B, 512)

    # fusion (repeat_interleave(att, 256) * cat(geo, vis)) + residual + ReLU,
    # written as two 256-lane halves -> no lane-axis concatenates.
    feat_lo = jnp.maximum(geo * a0 + res[:, 0:256], 0.0)
    feat_hi = jnp.maximum(vis * a1 + res[:, 256:512], 0.0)
    feat_ref[:, 0:256] = feat_lo
    feat_ref[:, 256:512] = feat_hi

    # --- classifier: Linear(512,1024)+BN+ReLU + Linear(1024, num_class) ---
    c = (jnp.dot(feat_lo.astype(BF16), wc1g_ref[...], preferred_element_type=f32)
         + jnp.dot(feat_hi.astype(BF16), wc1v_ref[...], preferred_element_type=f32)
         + bc1_ref[...])
    c = jnp.maximum(c, 0.0)                              # (B, 1024)
    out_ref[...] = (jnp.dot(c.astype(BF16), wc2_ref[...], preferred_element_type=f32)
                    + bc2_ref[...])                      # (B, 128) lane-dense


# -----------------------------------------------------------------------------
# Wrapper
# -----------------------------------------------------------------------------
def two_stream_forward(feat_geo, feat_vis, kparams, num_class):
    B = feat_geo.shape[0]
    out_cols = kparams[-2].shape[1]                      # padded classifier width
    args = [feat_geo, feat_vis] + list(kparams)
    vmem = pl.BlockSpec(memory_space=pltpu.MemorySpace.VMEM)
    out_pad, feature = pl.pallas_call(
        two_stream_kernel,
        out_shape=(
            jax.ShapeDtypeStruct((B, out_cols), jnp.float32),
            jax.ShapeDtypeStruct((B, 512), jnp.float32),
        ),
        in_specs=[vmem] * len(args),
        out_specs=(vmem, vmem),
        compiler_params=pltpu.CompilerParams(vmem_limit_bytes=32 << 20),
    )(*args)
    return out_pad[:, :num_class], feature


# -----------------------------------------------------------------------------
# Parameters (PyTorch-style, f32) and host-side folding into kernel form.
# -----------------------------------------------------------------------------
def make_params(key, num_class):
    """Deterministic synthetic parameters in the original (unfolded) layout."""
    ks = list(jax.random.split(key, 14))

    def w(k, shape, scale):
        return jax.random.normal(k, shape, jnp.float32) * scale

    p = {}
    # AttFeaFusion: geo_enc / vis_enc 1x1 convs (256 -> 256)
    p["wg"], p["bg"] = w(ks[0], (256, 256), 0.05), w(ks[1], (256,), 0.01)
    p["wv"], p["bv"] = w(ks[2], (256, 256), 0.05), w(ks[3], (256,), 0.01)
    # aff: Linear(512,1024) + BN(1024) + ReLU + Linear(1024,2)
    p["aff1_w"], p["aff1_b"] = w(ks[4], (512, 1024), 0.03), w(ks[5], (1024,), 0.01)
    p["aff1_s"] = jnp.full((1024,), 1.1, jnp.float32)     # BN gamma / sqrt(var+eps)
    p["aff1_t"] = jnp.full((1024,), 0.05, jnp.float32)    # BN beta - mean*scale
    p["aff2_w"], p["aff2_b"] = w(ks[6], (1024, 2), 0.03), w(ks[7], (2,), 0.01)
    # shortcut: Linear(512,512) + BN(512)
    p["sc_w"], p["sc_b"] = w(ks[8], (512, 512), 0.03), w(ks[9], (512,), 0.01)
    p["sc_s"] = jnp.full((512,), 0.9, jnp.float32)
    p["sc_t"] = jnp.full((512,), -0.02, jnp.float32)
    # classifier: Linear(512,1024) + BN(1024) + ReLU + Linear(1024,num_class)
    p["cls1_w"], p["cls1_b"] = w(ks[10], (512, 1024), 0.03), w(ks[11], (1024,), 0.01)
    p["cls1_s"] = jnp.full((1024,), 1.05, jnp.float32)
    p["cls1_t"] = jnp.full((1024,), 0.03, jnp.float32)
    p["cls2_w"], p["cls2_b"] = w(ks[12], (1024, num_class), 0.03), w(ks[13], (num_class,), 0.01)
    return p


def prepare_kernel_params(p, num_class):
    """One-time host folding: BN affines into Linears, enc convs into aff1,
    2-class softmax weights into a single logit-difference row, split 512-row
    weights into halves, pad classifier head to 128 lanes, cast all large
    weight matrices to bf16 (biases and the difference row stay f32)."""
    f32 = jnp.float32

    # 1) fold BN affine into the preceding Linear: W' = W*s, b' = b*s + t
    aff1_w = p["aff1_w"] * p["aff1_s"][None, :]
    aff1_b = p["aff1_b"] * p["aff1_s"] + p["aff1_t"]
    sc_w = p["sc_w"] * p["sc_s"][None, :]
    sc_b = p["sc_b"] * p["sc_s"] + p["sc_t"]
    cls1_w = p["cls1_w"] * p["cls1_s"][None, :]
    cls1_b = p["cls1_b"] * p["cls1_s"] + p["cls1_t"]

    # 2) fold the two 1x1 enc convs into the first aff Linear
    w1g = _mm(p["wg"], aff1_w[:256])                     # (256, 1024)
    w1v = _mm(p["wv"], aff1_w[256:])                     # (256, 1024)
    b1 = (_mm(p["bg"][None, :], aff1_w[:256])[0]
          + _mm(p["bv"][None, :], aff1_w[256:])[0] + aff1_b)

    # 3) 2-class softmax == sigmoid(logit0 - logit1): fold the difference
    wd = (p["aff2_w"][:, 0] - p["aff2_w"][:, 1])[None, :]          # (1, 1024)
    bd = (p["aff2_b"][0] - p["aff2_b"][1]).reshape(1, 1)           # (1, 1)

    # 4) split the 512-row weights by input half (kills lane-axis concats)
    wsg, wsv = sc_w[:256], sc_w[256:]                    # (256, 512) each
    wc1g, wc1v = cls1_w[:256], cls1_w[256:]              # (256, 1024) each

    # 5) pad the classifier head to a lane-dense (multiple of 128) width
    out_cols = max(LANE, ((num_class + LANE - 1) // LANE) * LANE)
    wc2 = jnp.zeros((1024, out_cols), f32).at[:, :num_class].set(p["cls2_w"])
    bc2 = jnp.zeros((out_cols,), f32).at[:num_class].set(p["cls2_b"])

    bf = lambda x: x.astype(BF16)
    row = lambda x: x.reshape(1, -1).astype(f32)
    return (
        bf(w1g), bf(w1v), row(b1),
        wd.astype(f32), bd.astype(f32),
        bf(wsg), bf(wsv), row(sc_b),
        bf(wc1g), bf(wc1v), row(cls1_b),
        bf(wc2), row(bc2),
    )


# -----------------------------------------------------------------------------
# Pure-JAX reference (original, unfolded math in true f32) for correctness.
# -----------------------------------------------------------------------------
def reference_forward(feat_geo, feat_vis, p):
    geo_ = _mm(feat_geo, p["wg"]) + p["bg"]
    vis_ = _mm(feat_vis, p["wv"]) + p["bv"]
    fus_ = jnp.concatenate([geo_, vis_], axis=1)
    h = jnp.maximum((_mm(fus_, p["aff1_w"]) + p["aff1_b"]) * p["aff1_s"] + p["aff1_t"], 0.0)
    logits2 = _mm(h, p["aff2_w"]) + p["aff2_b"]
    att = jax.nn.softmax(logits2, axis=1)
    ffatt = jnp.repeat(att, 256, axis=1)
    cat_gv = jnp.concatenate([feat_geo, feat_vis], axis=1)
    fusion = cat_gv * ffatt
    res = (_mm(cat_gv, p["sc_w"]) + p["sc_b"]) * p["sc_s"] + p["sc_t"]
    feature = jnp.maximum(fusion + res, 0.0)
    c = jnp.maximum((_mm(feature, p["cls1_w"]) + p["cls1_b"]) * p["cls1_s"] + p["cls1_t"], 0.0)
    out = _mm(c, p["cls2_w"]) + p["cls2_b"]
    return out, feature


if __name__ == "__main__":
    B = 8
    NUM_CLASS = 10
    key = jax.random.PRNGKey(0)
    k_geo, k_vis, k_par = jax.random.split(key, 3)

    # feat_geo / feat_vis: 256-dim features from the (unspecified) GCN / CNN backbones.
    feat_geo = jax.random.normal(k_geo, (B, 256), jnp.float32)
    feat_vis = jax.random.normal(k_vis, (B, 256), jnp.float32)

    params = make_params(k_par, NUM_CLASS)
    kparams = prepare_kernel_params(params, NUM_CLASS)

    out, feature = two_stream_forward(feat_geo, feat_vis, kparams, NUM_CLASS)
    out = jax.block_until_ready(out)
    feature = jax.block_until_ready(feature)

    out_ref, feat_ref = reference_forward(feat_geo, feat_vis, params)
    assert out.shape == (B, NUM_CLASS) and feature.shape == (B, 512)
    # Tolerance accounts for bf16 weight/activation storage in the kernel (ref is true f32).
    assert jnp.allclose(out, out_ref, atol=5e-2, rtol=5e-2), \
        float(jnp.max(jnp.abs(out - out_ref)))
    assert jnp.allclose(feature, feat_ref, atol=5e-2, rtol=5e-2), \
        float(jnp.max(jnp.abs(feature - feat_ref)))
    print("KERNEL_OK")
</pallas_src>

<mosaic_0001>
module attributes {stable_mosaic.version = 11 : i64} {
  func.func @two_stream_kernel(%arg0: memref<8x256xf32, #tpu.memory_space<vmem>>, %arg1: memref<8x256xf32, #tpu.memory_space<vmem>>, %arg2: memref<256x1024xbf16, #tpu.memory_space<vmem>>, %arg3: memref<256x1024xbf16, #tpu.memory_space<vmem>>, %arg4: memref<1x1024xf32, #tpu.memory_space<vmem>>, %arg5: memref<1x1024xf32, #tpu.memory_space<vmem>>, %arg6: memref<1x1xf32, #tpu.memory_space<vmem>>, %arg7: memref<256x512xbf16, #tpu.memory_space<vmem>>, %arg8: memref<256x512xbf16, #tpu.memory_space<vmem>>, %arg9: memref<1x512xf32, #tpu.memory_space<vmem>>, %arg10: memref<256x1024xbf16, #tpu.memory_space<vmem>>, %arg11: memref<256x1024xbf16, #tpu.memory_space<vmem>>, %arg12: memref<1x1024xf32, #tpu.memory_space<vmem>>, %arg13: memref<1024x128xbf16, #tpu.memory_space<vmem>>, %arg14: memref<1x128xf32, #tpu.memory_space<vmem>>, %arg15: memref<8x128xf32, #tpu.memory_space<vmem>>, %arg16: memref<8x512xf32, #tpu.memory_space<vmem>>) attributes {dimension_semantics = [], scalar_prefetch = 0 : i64, scratch_operands = 0 : i64, tpu.core_type = #tpu.core_type<tc>} {
    %c0 = arith.constant 0 : index
    %c0_0 = arith.constant 0 : index
    %0 = vector.load %arg0[%c0, %c0_0] : memref<8x256xf32, #tpu.memory_space<vmem>>, vector<8x256xf32>
    %c0_1 = arith.constant 0 : index
    %c0_2 = arith.constant 0 : index
    %1 = vector.load %arg1[%c0_1, %c0_2] : memref<8x256xf32, #tpu.memory_space<vmem>>, vector<8x256xf32>
    %2 = arith.truncf %0 : vector<8x256xf32> to vector<8x256xbf16>
    %3 = arith.truncf %1 : vector<8x256xf32> to vector<8x256xbf16>
    %c0_3 = arith.constant 0 : index
    %c0_4 = arith.constant 0 : index
    %4 = vector.load %arg2[%c0_3, %c0_4] : memref<256x1024xbf16, #tpu.memory_space<vmem>>, vector<256x1024xbf16>
    %cst = arith.constant dense<0.000000e+00> : vector<8x1024xf32>
    %5 = tpu.matmul %2, %4, %cst {dimension_numbers = #tpu.dot_dimension_numbers<[1], [0], [0], [1], [0, 0, 1, 1], [], []>} : vector<8x256xbf16>, vector<256x1024xbf16>, vector<8x1024xf32> -> vector<8x1024xf32>
    %c0_5 = arith.constant 0 : index
    %c0_6 = arith.constant 0 : index
    %6 = vector.load %arg3[%c0_5, %c0_6] : memref<256x1024xbf16, #tpu.memory_space<vmem>>, vector<256x1024xbf16>
    %cst_7 = arith.constant dense<0.000000e+00> : vector<8x1024xf32>
    %7 = tpu.matmul %3, %6, %cst_7 {dimension_numbers = #tpu.dot_dimension_numbers<[1], [0], [0], [1], [0, 0, 1, 1], [], []>} : vector<8x256xbf16>, vector<256x1024xbf16>, vector<8x1024xf32> -> vector<8x1024xf32>
    %8 = arith.addf %5, %7 : vector<8x1024xf32>
    %c0_8 = arith.constant 0 : index
    %c0_9 = arith.constant 0 : index
    %9 = vector.load %arg4[%c0_8, %c0_9] : memref<1x1024xf32, #tpu.memory_space<vmem>>, vector<1x1024xf32>
    %10 = vector.broadcast %9 : vector<1x1024xf32> to vector<8x1024xf32>
    %11 = arith.addf %8, %10 : vector<8x1024xf32>
    %cst_10 = arith.constant 0.000000e+00 : f32
    %12 = vector.broadcast %cst_10 : f32 to vector<8x1024xf32>
    %13 = arith.maximumf %11, %12 : vector<8x1024xf32>
    %c0_11 = arith.constant 0 : index
    %c0_12 = arith.constant 0 : index
    %14 = vector.load %arg5[%c0_11, %c0_12] : memref<1x1024xf32, #tpu.memory_space<vmem>>, vector<1x1024xf32>
    %15 = vector.broadcast %14 : vector<1x1024xf32> to vector<8x1024xf32>
    %16 = arith.mulf %13, %15 : vector<8x1024xf32>
    %cst_13 = arith.constant dense<0.000000e+00> : vector<8xf32>
    %17 = vector.multi_reduction <add>, %16, %cst_13 [1] : vector<8x1024xf32> to vector<8xf32>
    %18 = vector.shape_cast %17 : vector<8xf32> to vector<8x1xf32>
    %c0_14 = arith.constant 0 : index
    %c0_15 = arith.constant 0 : index
    %19 = vector.load %arg6[%c0_14, %c0_15] : memref<1x1xf32, #tpu.memory_space<vmem>>, vector<1x1xf32>
    %20 = vector.broadcast %19 : vector<1x1xf32> to vector<8x1xf32>
    %21 = arith.addf %18, %20 : vector<8x1xf32>
    %cst_16 = arith.constant 0.000000e+00 : f32
    %22 = vector.broadcast %cst_16 : f32 to vector<8x1xf32>
    %23 = arith.subf %22, %21 : vector<8x1xf32>
    %24 = math.exp %23 : vector<8x1xf32>
    %cst_17 = arith.constant 1.000000e+00 : f32
    %25 = vector.broadcast %cst_17 : f32 to vector<8x1xf32>
    %26 = arith.addf %25, %24 : vector<8x1xf32>
    %cst_18 = arith.constant 1.000000e+00 : f32
    %27 = vector.broadcast %cst_18 : f32 to vector<8x1xf32>
    %28 = arith.divf %27, %26 : vector<8x1xf32>
    %cst_19 = arith.constant 1.000000e+00 : f32
    %29 = vector.broadcast %cst_19 : f32 to vector<8x1xf32>
    %30 = arith.subf %29, %28 : vector<8x1xf32>
    %c0_20 = arith.constant 0 : index
    %c0_21 = arith.constant 0 : index
    %31 = vector.load %arg7[%c0_20, %c0_21] : memref<256x512xbf16, #tpu.memory_space<vmem>>, vector<256x512xbf16>
    %cst_22 = arith.constant dense<0.000000e+00> : vector<8x512xf32>
    %32 = tpu.matmul %2, %31, %cst_22 {dimension_numbers = #tpu.dot_dimension_numbers<[1], [0], [0], [1], [0, 0, 1, 1], [], []>} : vector<8x256xbf16>, vector<256x512xbf16>, vector<8x512xf32> -> vector<8x512xf32>
    %c0_23 = arith.constant 0 : index
    %c0_24 = arith.constant 0 : index
    %33 = vector.load %arg8[%c0_23, %c0_24] : memref<256x512xbf16, #tpu.memory_space<vmem>>, vector<256x512xbf16>
    %cst_25 = arith.constant dense<0.000000e+00> : vector<8x512xf32>
    %34 = tpu.matmul %3, %33, %cst_25 {dimension_numbers = #tpu.dot_dimension_numbers<[1], [0], [0], [1], [0, 0, 1, 1], [], []>} : vector<8x256xbf16>, vector<256x512xbf16>, vector<8x512xf32> -> vector<8x512xf32>
    %35 = arith.addf %32, %34 : vector<8x512xf32>
    %c0_26 = arith.constant 0 : index
    %c0_27 = arith.constant 0 : index
    %36 = vector.load %arg9[%c0_26, %c0_27] : memref<1x512xf32, #tpu.memory_space<vmem>>, vector<1x512xf32>
    %37 = vector.broadcast %36 : vector<1x512xf32> to vector<8x512xf32>
    %38 = arith.addf %35, %37 : vector<8x512xf32>
    %39 = vector.broadcast %28 : vector<8x1xf32> to vector<8x256xf32>
    %40 = arith.mulf %0, %39 : vector<8x256xf32>
    %41 = vector.extract_strided_slice %38 {offsets = [0, 0], sizes = [8, 256], strides = [1, 1]} : vector<8x512xf32> to vector<8x256xf32>
    %42 = arith.addf %40, %41 : vector<8x256xf32>
    %cst_28 = arith.constant 0.000000e+00 : f32
    %43 = vector.broadcast %cst_28 : f32 to vector<8x256xf32>
    %44 = arith.maximumf %42, %43 : vector<8x256xf32>
    %45 = vector.broadcast %30 : vector<8x1xf32> to vector<8x256xf32>
    %46 = arith.mulf %1, %45 : vector<8x256xf32>
    %47 = vector.extract_strided_slice %38 {offsets = [0, 256], sizes = [8, 256], strides = [1, 1]} : vector<8x512xf32> to vector<8x256xf32>
    %48 = arith.addf %46, %47 : vector<8x256xf32>
    %cst_29 = arith.constant 0.000000e+00 : f32
    %49 = vector.broadcast %cst_29 : f32 to vector<8x256xf32>
    %50 = arith.maximumf %48, %49 : vector<8x256xf32>
    %c0_30 = arith.constant 0 : index
    %c0_31 = arith.constant 0 : index
    %51 = vector.load %arg16[%c0_30, %c0_31] : memref<8x512xf32, #tpu.memory_space<vmem>>, vector<8x256xf32>
    tpu.vector_store %arg16[%c0_30, %c0_31], %44 {strides = array<i32>} : memref<8x512xf32, #tpu.memory_space<vmem>>, vector<8x256xf32>,
    %c0_32 = arith.constant 0 : index
    %c256 = arith.constant 256 : index
    %52 = vector.load %arg16[%c0_32, %c256] : memref<8x512xf32, #tpu.memory_space<vmem>>, vector<8x256xf32>
    tpu.vector_store %arg16[%c0_32, %c256], %50 {strides = array<i32>} : memref<8x512xf32, #tpu.memory_space<vmem>>, vector<8x256xf32>,
    %53 = arith.truncf %44 : vector<8x256xf32> to vector<8x256xbf16>
    %c0_33 = arith.constant 0 : index
    %c0_34 = arith.constant 0 : index
    %54 = vector.load %arg10[%c0_33, %c0_34] : memref<256x1024xbf16, #tpu.memory_space<vmem>>, vector<256x1024xbf16>
    %cst_35 = arith.constant dense<0.000000e+00> : vector<8x1024xf32>
    %55 = tpu.matmul %53, %54, %cst_35 {dimension_numbers = #tpu.dot_dimension_numbers<[1], [0], [0], [1], [0, 0, 1, 1], [], []>} : vector<8x256xbf16>, vector<256x1024xbf16>, vector<8x1024xf32> -> vector<8x1024xf32>
    %56 = arith.truncf %50 : vector<8x256xf32> to vector<8x256xbf16>
    %c0_36 = arith.constant 0 : index
    %c0_37 = arith.constant 0 : index
    %57 = vector.load %arg11[%c0_36, %c0_37] : memref<256x1024xbf16, #tpu.memory_space<vmem>>, vector<256x1024xbf16>
    %cst_38 = arith.constant dense<0.000000e+00> : vector<8x1024xf32>
    %58 = tpu.matmul %56, %57, %cst_38 {dimension_numbers = #tpu.dot_dimension_numbers<[1], [0], [0], [1], [0, 0, 1, 1], [], []>} : vector<8x256xbf16>, vector<256x1024xbf16>, vector<8x1024xf32> -> vector<8x1024xf32>
    %59 = arith.addf %55, %58 : vector<8x1024xf32>
    %c0_39 = arith.constant 0 : index
    %c0_40 = arith.constant 0 : index
    %60 = vector.load %arg12[%c0_39, %c0_40] : memref<1x1024xf32, #tpu.memory_space<vmem>>, vector<1x1024xf32>
    %61 = vector.broadcast %60 : vector<1x1024xf32> to vector<8x1024xf32>
    %62 = arith.addf %59, %61 : vector<8x1024xf32>
    %cst_41 = arith.constant 0.000000e+00 : f32
    %63 = vector.broadcast %cst_41 : f32 to vector<8x1024xf32>
    %64 = arith.maximumf %62, %63 : vector<8x1024xf32>
    %65 = arith.truncf %64 : vector<8x1024xf32> to vector<8x1024xbf16>
    %c0_42 = arith.constant 0 : index
    %c0_43 = arith.constant 0 : index
    %66 = vector.load %arg13[%c0_42, %c0_43] : memref<1024x128xbf16, #tpu.memory_space<vmem>>, vector<1024x128xbf16>
    %cst_44 = arith.constant dense<0.000000e+00> : vector<8x128xf32>
    %67 = tpu.matmul %65, %66, %cst_44 {dimension_numbers = #tpu.dot_dimension_numbers<[1], [0], [0], [1], [0, 0, 1, 1], [], []>} : vector<8x1024xbf16>, vector<1024x128xbf16>, vector<8x128xf32> -> vector<8x128xf32>
    %c0_45 = arith.constant 0 : index
    %c0_46 = arith.constant 0 : index
    %68 = vector.load %arg14[%c0_45, %c0_46] : memref<1x128xf32, #tpu.memory_space<vmem>>, vector<1x128xf32>
    %69 = vector.broadcast %68 : vector<1x128xf32> to vector<8x128xf32>
    %70 = arith.addf %67, %69 : vector<8x128xf32>
    %c0_47 = arith.constant 0 : index
    %c0_48 = arith.constant 0 : index
    %71 = vector.load %arg15[%c0_47, %c0_48] : memref<8x128xf32, #tpu.memory_space<vmem>>, vector<8x128xf32>
    tpu.vector_store %arg15[%c0_47, %c0_48], %70 {strides = array<i32>} : memref<8x128xf32, #tpu.memory_space<vmem>>, vector<8x128xf32>,
    return
  }
}

</mosaic_0001>

<bundles_post_ra>
// kernel: tpu_custom_call.1
= control target key start
LH: loop header
LB: loop body
LE: loop exit
PB: predicated region body
PF: predicated region fallthrough
CT: control target
= control target key end

     0   :  { %s7628_s0 = inlined_call_operand.hbm [shape: f32[8,256], index: 0, kind: input, shape index: {}]   ;;  %s7629_s1 = inlined_call_operand.hbm [shape: f32[8,256], index: 1, kind: input, shape index: {}]   ;;  %s7630_s2 = inlined_call_operand.hbm [shape: bf16[256,1024], index: 2, kind: input, shape index: {}]   ;;  %s7631_s3 = inlined_call_operand.hbm [shape: bf16[256,1024], index: 3, kind: input, shape index: {}]   ;;  %s7632_s4 = inlined_call_operand.vmem [shape: f32[1,1024], index: 4, kind: input, shape index: {}]   ;;  %s7633_s5 = inlined_call_operand.vmem [shape: f32[1,1024], index: 5, kind: input, shape index: {}]   ;;  %s7634_s6 = inlined_call_operand.<no memory space> [shape: f32[1,1], index: 6, kind: input, shape index: {}]   ;;  %s7635_s7 = inlined_call_operand.hbm [shape: bf16[256,512], index: 7, kind: input, shape index: {}]   ;;  %s7636_s8 = inlined_call_operand.hbm [shape: bf16[256,512], index: 8, kind: input, shape index: {}]   ;;  %s7637_s9 = inlined_call_operand.vmem [shape: f32[1,512], index: 9, kind: input, shape index: {}]   ;;  %s7638_s10 = inlined_call_operand.hbm [shape: bf16[256,1024], index: 10, kind: input, shape index: {}]   ;;  %s7639_s11 = inlined_call_operand.hbm [shape: bf16[256,1024], index: 11, kind: input, shape index: {}]   ;;  %s7640_s12 = inlined_call_operand.vmem [shape: f32[1,1024], index: 12, kind: input, shape index: {}]   ;;  %s7641_s13 = inlined_call_operand.hbm [shape: bf16[1024,128], index: 13, kind: input, shape index: {}]   ;;  %s7642_s14 = inlined_call_operand.vmem [shape: f32[1,128], index: 14, kind: input, shape index: {}]   ;;  %s7643_s15 = inlined_call_operand.hbm [shape: f32[8,128], index: 15, kind: output, shape index: {0}]   ;;  %s7644_s16 = inlined_call_operand.hbm [shape: f32[8,512], index: 16, kind: output, shape index: {1}]  }
   0x1   :  { %7646 = sst [smem:[#allocation28_spill]] %s7628_s0  ;;  %v22_v0 = vstv %s7634_s6 }
   0x2   :  { %23 = vst [vmem:[#allocation2] sm:$0x1] %v22_v0 }
   0x3   :  { %24 = vsyncpa [#allocation4], 0 }
   0x4   :  { %25 = vsyncpa [#allocation7], 0 }
   0x5   :  { %26 = vsyncpa [#allocation10], 0 }
   0x6   :  { %27 = vsyncpa [#allocation13], 0 }
   0x7   :  { %28 = vsyncpa [#allocation16], 0 }
   0x8   :  { %29 = vsyncpa [#allocation5], 0 }
   0x9   :  { %30 = vsyncpa [#allocation20], 0  ;;  %s7144_s23 = smov [#allocation6]   ;;  %s6888_s27 = scalar_lea.hbm %s7629_s1, 256 }
   0xa   :  { %s47_s24 = sshll.u32 %s7144_s23, 4  ;;  %p6889_p0 = scmp.ne.s32.totalorder %s7629_s1, %s6888_s27  ;;  %s48_s24 = int_to_ptr.vmem [resolvable:$true] %s47_s24 }
   0xb   :  { %p6892_p1 = scmp.lt.u32.totalorder %s6888_s27, %s7629_s1 }
   0xd   :  { %p6894_p2 = pnand %p6892_p1, %p6889_p0 }
   0xf   :  { %6897 = shalt.err (!%p6894_p2)
}
  0x10   :  { %s6898_s0 = scalar_lea.vmem %s48_s24, 256  ;;  %p6903_p4 = scmp.lt.s32.totalorder %s48_s24, %s48_s24 }
  0x11   :  { %p6899_p3 = scmp.ne.s32.totalorder %s48_s24, %s6898_s0  ;;  %p6904_p5 = scmp.lt.s32.totalorder %s6898_s0, %s6898_s0 }
  0x13   :  { %p6905_p6 = por %p6904_p5, %p6903_p4 }
  0x15   :  { %p6906_p7 = pnand %p6905_p6, %p6899_p3 }
  0x17   :  { %6909 = shalt.err (!%p6906_p7)
}
  0x18   :  { %50 = dma.hbm_to_vmem [thread:$0]  %s7629_s1, 256, %s48_s24, [#allocation7]  }
  0x19   :  { %s7145_s19 = smov [#allocation9]   ;;  %s6910_s23 = scalar_lea.hbm %s7631_s3, 16384 }
  0x1a   :  { %s68_s20 = sshll.u32 %s7145_s19, 4  ;;  %p6911_p8 = scmp.ne.s32.totalorder %s7631_s3, %s6910_s23  ;;  %s69_s20 = int_to_ptr.vmem [resolvable:$true] %s68_s20 }
  0x1b   :  { %p6914_p9 = scmp.lt.u32.totalorder %s6910_s23, %s7631_s3 }
  0x1d   :  { %p6916_p10 = pnand %p6914_p9, %p6911_p8 }
  0x1f   :  { %6919 = shalt.err (!%p6916_p10)
}
  0x20   :  { %s6920_s29 = scalar_lea.vmem %s69_s20, 16384  ;;  %p6925_p12 = scmp.lt.s32.totalorder %s69_s20, %s69_s20 }
  0x21   :  { %p6921_p11 = scmp.ne.s32.totalorder %s69_s20, %s6920_s29  ;;  %p6926_p13 = scmp.lt.s32.totalorder %s6920_s29, %s6920_s29 }
  0x23   :  { %p6927_p0 = por %p6926_p13, %p6925_p12 }
  0x25   :  { %p6928_p1 = pnand %p6927_p0, %p6921_p11 }
  0x27   :  { %6931 = shalt.err (!%p6928_p1)
}
  0x28   :  { %s7146_s1 = smov 512   ;;  %s7147_s24 = smov 32  }
  0x29   :  { %74 = dma.hbm_to_vmem [thread:$0]  %s7631_s3, 16384, %s69_s20, [#allocation10], %s7146_s1, %s7146_s1, %s7147_s24  }
  0x2a   :  { %s7148_s0 = smov [#allocation12]   ;;  %s7149_s18 = smov [#allocation15]  }
  0x2b   :  { %s98_s17 = sshll.u32 %s7148_s0, 4  ;;  %s124_s19 = sshll.u32 %s7149_s18, 4  ;;  %s99_s17 = int_to_ptr.vmem [resolvable:$true] %s98_s17  ;;  %s7277_s19 = int_to_ptr.vmem [resolvable:$true] %s124_s19 }
  0x2c   :  { %s6932_s23 = scalar_lea.hbm %s7636_s8, 8192 }
  0x2d   :  { %p6933_p2 = scmp.ne.s32.totalorder %s7636_s8, %s6932_s23  ;;  %p6936_p3 = scmp.lt.u32.totalorder %s6932_s23, %s7636_s8 }
  0x2f   :  { %p6938_p4 = pnand %p6936_p3, %p6933_p2 }
  0x31   :  { %6941 = shalt.err (!%p6938_p4)
}
  0x32   :  { %s6942_s3 = scalar_lea.vmem %s99_s17, 8192  ;;  %p6947_p6 = scmp.lt.s32.totalorder %s99_s17, %s99_s17 }
  0x33   :  { %p6943_p5 = scmp.ne.s32.totalorder %s99_s17, %s6942_s3  ;;  %p6948_p7 = scmp.lt.s32.totalorder %s6942_s3, %s6942_s3 }
  0x35   :  { %p6949_p8 = por %p6948_p7, %p6947_p6 }
  0x37   :  { %p6950_p9 = pnand %p6949_p8, %p6943_p5 }
  0x39   :  { %6953 = shalt.err (!%p6950_p9)
}
  0x3a   :  { %s7150_s20 = smov 256   ;;  %s7151_s29 = smov 16  }
  0x3b   :  { %104 = dma.hbm_to_vmem [thread:$0]  %s7636_s8, 8192, %s99_s17, [#allocation13], %s7150_s20, %s7150_s20, %s7151_s29  }
  0x3c   :  { %s6954_s21 = scalar_lea.hbm %s7639_s11, 16384 }
  0x3d   :  { %p6955_p10 = scmp.ne.s32.totalorder %s7639_s11, %s6954_s21  ;;  %p6958_p11 = scmp.lt.u32.totalorder %s6954_s21, %s7639_s11 }
  0x3f   :  { %p6960_p12 = pnand %p6958_p11, %p6955_p10 }
  0x41   :  { %6963 = shalt.err (!%p6960_p12)
}
  0x42   :  { %s6964_s27 = scalar_lea.vmem %s7277_s19, 16384  ;;  %p6969_p0 = scmp.lt.s32.totalorder %s7277_s19, %s7277_s19 }
  0x43   :  { %p6965_p13 = scmp.ne.s32.totalorder %s7277_s19, %s6964_s27  ;;  %p6970_p1 = scmp.lt.s32.totalorder %s6964_s27, %s6964_s27 }
  0x45   :  { %p6971_p2 = por %p6970_p1, %p6969_p0 }
  0x47   :  { %p6972_p3 = pnand %p6971_p2, %p6965_p13 }
  0x49   :  { %6975 = shalt.err (!%p6972_p3)
}
  0x4a   :  { %130 = dma.hbm_to_vmem [thread:$0]  %s7639_s11, 16384, %s7277_s19, [#allocation16], %s7146_s1, %s7146_s1, %s7147_s24  }
  0x4b   :  { %s7152_s28 = smov [#allocation3]   ;;  %s7153_s6 = smov [#allocation8]  }
  0x4c   :  { %s37_s3 = sshll.u32 %s7152_s28, 4  ;;  %s56_s30 = sshll.u32 %s7153_s6, 4  ;;  %s38_s3 = int_to_ptr.vmem [resolvable:$true] %s37_s3  ;;  %s7314_s30 = int_to_ptr.vmem [resolvable:$true] %s56_s30 }
  0x4d   :  { %s7647_s21 = sld [smem:[#allocation28_spill]] }
  0x53   :  { %s6976_s22 = scalar_lea.hbm %s7647_s21, 256 }
  0x54   :  { %p6977_p4 = scmp.ne.s32.totalorder %s7647_s21, %s6976_s22  ;;  %p6980_p5 = scmp.lt.u32.totalorder %s6976_s22, %s7647_s21 }
  0x56   :  { %p6982_p6 = pnand %p6980_p5, %p6977_p4 }
  0x58   :  { %6985 = shalt.err (!%p6982_p6)
}
  0x59   :  { %s6986_s11 = scalar_lea.vmem %s38_s3, 256  ;;  %p6991_p8 = scmp.lt.s32.totalorder %s38_s3, %s38_s3 }
  0x5a   :  { %p6987_p7 = scmp.ne.s32.totalorder %s38_s3, %s6986_s11  ;;  %p6992_p9 = scmp.lt.s32.totalorder %s6986_s11, %s6986_s11 }
  0x5c   :  { %p6993_p10 = por %p6992_p9, %p6991_p8 }
  0x5e   :  { %p6994_p11 = pnand %p6993_p10, %p6987_p7 }
  0x60   :  { %6997 = shalt.err (!%p6994_p11)
}
  0x61   :  { %40 = dma.hbm_to_vmem [thread:$0]  %s7647_s21, 256, %s38_s3, [#allocation4]  }
  0x62   :  { %s6998_s6 = scalar_lea.hbm %s7630_s2, 16384 }
  0x63   :  { %p6999_p12 = scmp.ne.s32.totalorder %s7630_s2, %s6998_s6  ;;  %p7002_p13 = scmp.lt.u32.totalorder %s6998_s6, %s7630_s2 }
  0x65   :  { %p7004_p0 = pnand %p7002_p13, %p6999_p12 }
  0x67   :  { %7007 = shalt.err (!%p7004_p0)
}
  0x68   :  { %s7008_s25 = scalar_lea.vmem %s7314_s30, 16384  ;;  %p7013_p2 = scmp.lt.s32.totalorder %s7314_s30, %s7314_s30 }
  0x69   :  { %p7009_p1 = scmp.ne.s32.totalorder %s7314_s30, %s7008_s25  ;;  %p7014_p3 = scmp.lt.s32.totalorder %s7008_s25, %s7008_s25 }
  0x6b   :  { %p7015_p4 = por %p7014_p3, %p7013_p2 }
  0x6d   :  { %p7016_p5 = pnand %p7015_p4, %p7009_p1 }
  0x6f   :  { %7019 = shalt.err (!%p7016_p5)
}
  0x70   :  { %62 = dma.hbm_to_vmem [thread:$0]  %s7630_s2, 16384, %s7314_s30, [#allocation7], %s7146_s1, %s7146_s1, %s7147_s24  }
  0x71   :  { %s7154_s26 = smov [#allocation11]   ;;  %s7155_s11 = smov [#allocation14]  }
  0x72   :  { %s86_s27 = sshll.u32 %s7154_s26, 4  ;;  %s112_s19 = sshll.u32 %s7155_s11, 4  ;;  %s87_s27 = int_to_ptr.vmem [resolvable:$true] %s86_s27  ;;  %s7348_s19 = int_to_ptr.vmem [resolvable:$true] %s112_s19 }
  0x73   :  { %s7020_s28 = scalar_lea.hbm %s7635_s7, 8192 }
  0x74   :  { %p7021_p6 = scmp.ne.s32.totalorder %s7635_s7, %s7020_s28  ;;  %p7024_p7 = scmp.lt.u32.totalorder %s7020_s28, %s7635_s7 }
  0x76   :  { %p7026_p8 = pnand %p7024_p7, %p7021_p6 }
  0x78   :  { %7029 = shalt.err (!%p7026_p8)
}
  0x79   :  { %s7030_s2 = scalar_lea.vmem %s87_s27, 8192  ;;  %p7035_p10 = scmp.lt.s32.totalorder %s87_s27, %s87_s27 }
  0x7a   :  { %p7031_p9 = scmp.ne.s32.totalorder %s87_s27, %s7030_s2  ;;  %p7036_p11 = scmp.lt.s32.totalorder %s7030_s2, %s7030_s2 }
  0x7c   :  { %p7037_p12 = por %p7036_p11, %p7035_p10 }
  0x7e   :  { %p7038_p13 = pnand %p7037_p12, %p7031_p9 }
  0x80   :  { %7041 = shalt.err (!%p7038_p13)
}
  0x81   :  { %92 = dma.hbm_to_vmem [thread:$0]  %s7635_s7, 8192, %s87_s27, [#allocation10], %s7150_s20, %s7150_s20, %s7151_s29  }
  0x82   :  { %s7042_s21 = scalar_lea.hbm %s7638_s10, 16384 }
  0x83   :  { %p7043_p0 = scmp.ne.s32.totalorder %s7638_s10, %s7042_s21  ;;  %p7046_p1 = scmp.lt.u32.totalorder %s7042_s21, %s7638_s10 }
  0x85   :  { %p7048_p2 = pnand %p7046_p1, %p7043_p0 }
  0x87   :  { %7051 = shalt.err (!%p7048_p2)
}
  0x88   :  { %s7052_s28 = scalar_lea.vmem %s7348_s19, 16384  ;;  %p7057_p4 = scmp.lt.s32.totalorder %s7348_s19, %s7348_s19 }
  0x89   :  { %p7053_p3 = scmp.ne.s32.totalorder %s7348_s19, %s7052_s28  ;;  %p7058_p5 = scmp.lt.s32.totalorder %s7052_s28, %s7052_s28 }
  0x8b   :  { %p7059_p6 = por %p7058_p5, %p7057_p4 }
  0x8d   :  { %p7060_p7 = pnand %p7059_p6, %p7053_p3 }
  0x8f   :  { %7063 = shalt.err (!%p7060_p7)
}
  0x90   :  { %118 = dma.hbm_to_vmem [thread:$0]  %s7638_s10, 16384, %s7348_s19, [#allocation13], %s7146_s1, %s7146_s1, %s7147_s24  }
  0x91   :  { %s7156_s29 = smov [#allocation17]   ;;  %s7064_s18 = scalar_lea.hbm %s7641_s13, 8192 }
  0x92   :  { %s138_s27 = sshll.u32 %s7156_s29, 4  ;;  %p7065_p8 = scmp.ne.s32.totalorder %s7641_s13, %s7064_s18  ;;  %s139_s27 = int_to_ptr.vmem [resolvable:$true] %s138_s27 }
  0x93   :  { %p7068_p9 = scmp.lt.u32.totalorder %s7064_s18, %s7641_s13 }
  0x95   :  { %p7070_p10 = pnand %p7068_p9, %p7065_p8 }
  0x97   :  { %7073 = shalt.err (!%p7070_p10)
}
  0x98   :  { %s7074_s25 = scalar_lea.vmem %s139_s27, 8192  ;;  %p7079_p12 = scmp.lt.s32.totalorder %s139_s27, %s139_s27 }
  0x99   :  { %p7075_p11 = scmp.ne.s32.totalorder %s139_s27, %s7074_s25  ;;  %p7080_p13 = scmp.lt.s32.totalorder %s7074_s25, %s7074_s25 }
  0x9b   :  { %p7081_p0 = por %p7080_p13, %p7079_p12 }
  0x9d   :  { %p7082_p1 = pnand %p7081_p0, %p7075_p11 }
  0x9f   :  { %7085 = shalt.err (!%p7082_p1)
}
  0xa0   :  { %s7157_s10 = smov 64   ;;  %s7158_s1 = smov 4  }
  0xa1   :  { %144 = dma.hbm_to_vmem [thread:$0]  %s7641_s13, 8192, %s139_s27, [#allocation16], %s7157_s10, %s7157_s10, %s7158_s1  }
  0xa2   :  { %7130 = dma.done.wait [#allocation4], 256  }
  0xa3   :  { %7131 = vsyncadd [#allocation4], 4294967040 }
  0xa4   :  { %7132 = dma.done.wait [#allocation7], 16640  }
  0xa5   :  { %7133 = vsyncadd [#allocation7], 4294950656 }
  0xa6   :  { %7134 = dma.done.wait [#allocation10], 24576  }
  0xa7   :  { %7135 = vsyncadd [#allocation10], 4294942720 }
  0xa8   :  { %7136 = dma.done.wait [#allocation13], 24576  }
  0xa9   :  { %7137 = vsyncadd [#allocation13], 4294942720 }
  0xaa   :  { %7138 = dma.done.wait [#allocation16], 24576  }
  0xab   :  { %7139 = vsyncadd [#allocation16], 4294942720  ;;  %v311_v1 = vld [vmem:[#allocation9] sm:$0xff]  ;;  %v312_v3 = vld [vmem:[#allocation9 + $0x8] sm:$0xff] }
  0xac   :  { %v315_v2 = vld [vmem:[#allocation9 + $0x20] sm:$0xff]  ;;  %v316_v5 = vld [vmem:[#allocation9 + $0x28] sm:$0xff]  ;;  %v178_v54 = vld [vmem:[#allocation6 + $0x8] sm:$0xff] }
  0xad   :  { %v5811_v4 = vcombine.high %v311_v1, %v315_v2  ;;  %v5810_v6 = vcombine.low %v311_v1, %v315_v2  ;;  %v319_v7 = vld [vmem:[#allocation9 + $0x40] sm:$0xff]  ;;  %v5813_v9 = vcombine.high %v312_v3, %v316_v5  ;;  %v5812_v10 = vcombine.low %v312_v3, %v316_v5  ;;  %v320_v12 = vld [vmem:[#allocation9 + $0x48] sm:$0xff] }
  0xae   :  { %v323_v8 = vld [vmem:[#allocation9 + $0x60] sm:$0xff]  ;;  %v324_v13 = vld [vmem:[#allocation9 + $0x68] sm:$0xff]  ;;  %v7397_v58 = vpack.c.bf16 %v178_v54, %v178_v54 }
  0xaf   :  { %v5819_v11 = vcombine.high %v319_v7, %v323_v8  ;;  %v327_v14 = vld [vmem:[#allocation9 + $0x80] sm:$0xff]  ;;  %1079 = vmatprep.subr.bf16.mxu0 %v5811_v4  ;;  %v5821_v15 = vcombine.high %v320_v12, %v324_v13  ;;  %v328_v17 = vld [vmem:[#allocation9 + $0x88] sm:$0xff]  ;;  %1120 = vmatprep.subr.bf16.mxu1 %v5813_v9  ;;  %v5818_v19 = vcombine.low %v319_v7, %v323_v8 }
  0xb0   :  { %v331_v16 = vld [vmem:[#allocation9 + $0xa0] sm:$0xff]  ;;  %v332_v18 = vld [vmem:[#allocation9 + $0xa8] sm:$0xff]  ;;  %1080 = vmatpush1.bf16.msra.mxu0 %v5810_v6  ;;  %1121 = vmatpush1.bf16.msra.mxu1 %v5812_v10  ;;  %v5820_v20 = vcombine.low %v320_v12, %v324_v13 }
  0xb1   :  { %1081 = vmatprep.subr.bf16.mxu0 %v5819_v11  ;;  %v5827_v21 = vcombine.high %v327_v14, %v331_v16  ;;  %1122 = vmatprep.subr.bf16.mxu1 %v5821_v15  ;;  %v5829_v22 = vcombine.high %v328_v17, %v332_v18  ;;  %v335_v23 = vld [vmem:[#allocation9 + $0xc0] sm:$0xff]  ;;  %v336_v25 = vld [vmem:[#allocation9 + $0xc8] sm:$0xff]  ;;  %v5826_v27 = vcombine.low %v327_v14, %v331_v16 }
  0xb2   :  { %v339_v24 = vld [vmem:[#allocation9 + $0xe0] sm:$0xff]  ;;  %v340_v26 = vld [vmem:[#allocation9 + $0xe8] sm:$0xff]  ;;  %v5828_v28 = vcombine.low %v328_v17, %v332_v18  ;;  %1111 = vmatprep.mubr.bf16.mxu0 %v7397_v58  ;;  %1152 = vmatprep.mubr.bf16.mxu1 %v7397_v58 }
  0xb3   :  { %v5835_v29 = vcombine.high %v335_v23, %v339_v24  ;;  %v5837_v30 = vcombine.high %v336_v25, %v340_v26  ;;  %v343_v31 = vld [vmem:[#allocation9 + $0x100] sm:$0xff]  ;;  %v344_v33 = vld [vmem:[#allocation9 + $0x108] sm:$0xff]  ;;  %v5834_v35 = vcombine.low %v335_v23, %v339_v24  ;;  %v5836_v36 = vcombine.low %v336_v25, %v340_v26 }
  0xb4   :  { %1082 = vmatpush1.bf16.msra.mxu0 %v5818_v19  ;;  %1123 = vmatpush1.bf16.msra.mxu1 %v5820_v20  ;;  %v347_v32 = vld [vmem:[#allocation9 + $0x120] sm:$0xff]  ;;  %v348_v34 = vld [vmem:[#allocation9 + $0x128] sm:$0xff] }
  0xb5   :  { %1083 = vmatprep.subr.bf16.mxu0 %v5827_v21  ;;  %1124 = vmatprep.subr.bf16.mxu1 %v5829_v22  ;;  %v5843_v37 = vcombine.high %v343_v31, %v347_v32  ;;  %v5845_v38 = vcombine.high %v344_v33, %v348_v34  ;;  %v351_v39 = vld [vmem:[#allocation9 + $0x140] sm:$0xff]  ;;  %v352_v41 = vld [vmem:[#allocation9 + $0x148] sm:$0xff]  ;;  %v5842_v43 = vcombine.low %v343_v31, %v347_v32 }
  0xb6   :  { %v355_v40 = vld [vmem:[#allocation9 + $0x160] sm:$0xff]  ;;  %v356_v42 = vld [vmem:[#allocation9 + $0x168] sm:$0xff]  ;;  %v5844_v44 = vcombine.low %v344_v33, %v348_v34 }
  0xb7   :  { %v5851_v45 = vcombine.high %v351_v39, %v355_v40  ;;  %v5853_v46 = vcombine.high %v352_v41, %v356_v42  ;;  %v359_v47 = vld [vmem:[#allocation9 + $0x180] sm:$0xff]  ;;  %v360_v49 = vld [vmem:[#allocation9 + $0x188] sm:$0xff]  ;;  %v5850_v51 = vcombine.low %v351_v39, %v355_v40  ;;  %v5852_v52 = vcombine.low %v352_v41, %v356_v42 }
  0xb8   :  { %1084 = vmatpush1.bf16.msra.mxu0 %v5826_v27  ;;  %1125 = vmatpush1.bf16.msra.mxu1 %v5828_v28  ;;  %v363_v48 = vld [vmem:[#allocation9 + $0x1a0] sm:$0xff]  ;;  %v364_v50 = vld [vmem:[#allocation9 + $0x1a8] sm:$0xff] }
  0xb9   :  { %1085 = vmatprep.subr.bf16.mxu0 %v5835_v29  ;;  %1126 = vmatprep.subr.bf16.mxu1 %v5837_v30  ;;  %v5859_v53 = vcombine.high %v359_v47, %v363_v48  ;;  %v5861_v55 = vcombine.high %v360_v49, %v364_v50  ;;  %v367_v56 = vld [vmem:[#allocation9 + $0x1c0] sm:$0xff]  ;;  %v368_v59 = vld [vmem:[#allocation9 + $0x1c8] sm:$0xff]  ;;  %v5858_v61 = vcombine.low %v359_v47, %v363_v48 }
  0xba   :  { %v371_v57 = vld [vmem:[#allocation9 + $0x1e0] sm:$0xff]  ;;  %v372_v60 = vld [vmem:[#allocation9 + $0x1e8] sm:$0xff]  ;;  %v5860_v62 = vcombine.low %v360_v49, %v364_v50 }
  0xbb   :  { %v5867_v63 = vcombine.high %v367_v56, %v371_v57  ;;  %v5869_v0 = vcombine.high %v368_v59, %v372_v60  ;;  %v375_v1 = vld [vmem:[#allocation9 + $0x200] sm:$0xff]  ;;  %v376_v3 = vld [vmem:[#allocation9 + $0x208] sm:$0xff]  ;;  %v5866_v5 = vcombine.low %v367_v56, %v371_v57  ;;  %v5868_v6 = vcombine.low %v368_v59, %v372_v60 }
  0xbc   :  { %1086 = vmatpush1.bf16.msra.mxu0 %v5834_v35  ;;  %1127 = vmatpush1.bf16.msra.mxu1 %v5836_v36  ;;  %v379_v2 = vld [vmem:[#allocation9 + $0x220] sm:$0xff]  ;;  %v380_v4 = vld [vmem:[#allocation9 + $0x228] sm:$0xff] }
  0xbd   :  { %1087 = vmatprep.subr.bf16.mxu0 %v5843_v37  ;;  %1128 = vmatprep.subr.bf16.mxu1 %v5845_v38  ;;  %v5875_v7 = vcombine.high %v375_v1, %v379_v2  ;;  %v5877_v8 = vcombine.high %v376_v3, %v380_v4  ;;  %v383_v9 = vld [vmem:[#allocation9 + $0x240] sm:$0xff]  ;;  %v384_v11 = vld [vmem:[#allocation9 + $0x248] sm:$0xff]  ;;  %v5874_v13 = vcombine.low %v375_v1, %v379_v2  ;;  %v313_v2 = vld [vmem:[#allocation9 + $0x10] sm:$0xff] }
  0xbe   :  { %v387_v10 = vld [vmem:[#allocation9 + $0x260] sm:$0xff]  ;;  %v388_v12 = vld [vmem:[#allocation9 + $0x268] sm:$0xff]  ;;  %v5876_v14 = vcombine.low %v376_v3, %v380_v4  ;;  %v317_v3 = vld [vmem:[#allocation9 + $0x30] sm:$0xff] }
  0xbf   :  { %v5883_v15 = vcombine.high %v383_v9, %v387_v10  ;;  %v5885_v16 = vcombine.high %v384_v11, %v388_v12  ;;  %v391_v17 = vld [vmem:[#allocation9 + $0x280] sm:$0xff]  ;;  %v392_v19 = vld [vmem:[#allocation9 + $0x288] sm:$0xff]  ;;  %v5882_v21 = vcombine.low %v383_v9, %v387_v10  ;;  %v5884_v22 = vcombine.low %v384_v11, %v388_v12  ;;  %v314_v4 = vld [vmem:[#allocation9 + $0x18] sm:$0xff] }
  0xc0   :  { %1088 = vmatpush1.bf16.msra.mxu0 %v5842_v43  ;;  %1129 = vmatpush1.bf16.msra.mxu1 %v5844_v44  ;;  %v395_v18 = vld [vmem:[#allocation9 + $0x2a0] sm:$0xff]  ;;  %v396_v20 = vld [vmem:[#allocation9 + $0x2a8] sm:$0xff]  ;;  %v5815_v9 = vcombine.high %v313_v2, %v317_v3  ;;  %v321_v11 = vld [vmem:[#allocation9 + $0x50] sm:$0xff] }
  0xc1   :  { %1089 = vmatprep.subr.bf16.mxu0 %v5851_v45  ;;  %1130 = vmatprep.subr.bf16.mxu1 %v5853_v46  ;;  %v5891_v23 = vcombine.high %v391_v17, %v395_v18  ;;  %v5893_v24 = vcombine.high %v392_v19, %v396_v20  ;;  %v399_v25 = vld [vmem:[#allocation9 + $0x2c0] sm:$0xff]  ;;  %v400_v27 = vld [vmem:[#allocation9 + $0x2c8] sm:$0xff]  ;;  %v5890_v29 = vcombine.low %v391_v17, %v395_v18  ;;  %v325_v12 = vld [vmem:[#allocation9 + $0x70] sm:$0xff] }
  0xc2   :  { %v403_v26 = vld [vmem:[#allocation9 + $0x2e0] sm:$0xff]  ;;  %v404_v28 = vld [vmem:[#allocation9 + $0x2e8] sm:$0xff]  ;;  %v5892_v30 = vcombine.low %v392_v19, %v396_v20  ;;  %v5823_v18 = vcombine.high %v321_v11, %v325_v12  ;;  %v329_v19 = vld [vmem:[#allocation9 + $0x90] sm:$0xff] }
  0xc3   :  { %v5899_v31 = vcombine.high %v399_v25, %v403_v26  ;;  %v5901_v32 = vcombine.high %v400_v27, %v404_v28  ;;  %v407_v33 = vld [vmem:[#allocation9 + $0x300] sm:$0xff]  ;;  %v408_v35 = vld [vmem:[#allocation9 + $0x308] sm:$0xff]  ;;  %v5898_v37 = vcombine.low %v399_v25, %v403_v26  ;;  %v5900_v38 = vcombine.low %v400_v27, %v404_v28  ;;  %v333_v20 = vld [vmem:[#allocation9 + $0xb0] sm:$0xff] }
  0xc4   :  { %1090 = vmatpush1.bf16.msra.mxu0 %v5850_v51  ;;  %1131 = vmatpush1.bf16.msra.mxu1 %v5852_v52  ;;  %v411_v34 = vld [vmem:[#allocation9 + $0x320] sm:$0xff]  ;;  %v412_v36 = vld [vmem:[#allocation9 + $0x328] sm:$0xff]  ;;  %v5831_v26 = vcombine.high %v329_v19, %v333_v20  ;;  %v337_v27 = vld [vmem:[#allocation9 + $0xd0] sm:$0xff] }
  0xc5   :  { %1091 = vmatprep.subr.bf16.mxu0 %v5859_v53  ;;  %1132 = vmatprep.subr.bf16.mxu1 %v5861_v55  ;;  %v5907_v39 = vcombine.high %v407_v33, %v411_v34  ;;  %v5909_v40 = vcombine.high %v408_v35, %v412_v36  ;;  %v415_v41 = vld [vmem:[#allocation9 + $0x340] sm:$0xff]  ;;  %v416_v43 = vld [vmem:[#allocation9 + $0x348] sm:$0xff]  ;;  %v5906_v45 = vcombine.low %v407_v33, %v411_v34  ;;  %v341_v28 = vld [vmem:[#allocation9 + $0xf0] sm:$0xff] }
  0xc6   :  { %v419_v42 = vld [vmem:[#allocation9 + $0x360] sm:$0xff]  ;;  %v420_v44 = vld [vmem:[#allocation9 + $0x368] sm:$0xff]  ;;  %v5908_v46 = vcombine.low %v408_v35, %v412_v36  ;;  %v5839_v34 = vcombine.high %v337_v27, %v341_v28  ;;  %v345_v35 = vld [vmem:[#allocation9 + $0x110] sm:$0xff] }
  0xc7   :  { %v5915_v47 = vcombine.high %v415_v41, %v419_v42  ;;  %v5917_v48 = vcombine.high %v416_v43, %v420_v44  ;;  %v423_v49 = vld [vmem:[#allocation9 + $0x380] sm:$0xff]  ;;  %v424_v51 = vld [vmem:[#allocation9 + $0x388] sm:$0xff]  ;;  %v5914_v53 = vcombine.low %v415_v41, %v419_v42  ;;  %v5916_v54 = vcombine.low %v416_v43, %v420_v44  ;;  %v349_v36 = vld [vmem:[#allocation9 + $0x130] sm:$0xff] }
  0xc8   :  { %1092 = vmatpush1.bf16.msra.mxu0 %v5858_v61  ;;  %1133 = vmatpush1.bf16.msra.mxu1 %v5860_v62  ;;  %v427_v50 = vld [vmem:[#allocation9 + $0x3a0] sm:$0xff]  ;;  %v428_v52 = vld [vmem:[#allocation9 + $0x3a8] sm:$0xff]  ;;  %v5847_v42 = vcombine.high %v345_v35, %v349_v36  ;;  %v353_v43 = vld [vmem:[#allocation9 + $0x150] sm:$0xff] }
  0xc9   :  { %1093 = vmatprep.subr.bf16.mxu0 %v5867_v63  ;;  %1134 = vmatprep.subr.bf16.mxu1 %v5869_v0  ;;  %v5923_v55 = vcombine.high %v423_v49, %v427_v50  ;;  %v5925_v56 = vcombine.high %v424_v51, %v428_v52  ;;  %v431_v57 = vld [vmem:[#allocation9 + $0x3c0] sm:$0xff]  ;;  %v432_v60 = vld [vmem:[#allocation9 + $0x3c8] sm:$0xff]  ;;  %v5922_v62 = vcombine.low %v423_v49, %v427_v50  ;;  %v357_v44 = vld [vmem:[#allocation9 + $0x170] sm:$0xff] }
  0xca   :  { %v435_v59 = vld [vmem:[#allocation9 + $0x3e0] sm:$0xff]  ;;  %v436_v61 = vld [vmem:[#allocation9 + $0x3e8] sm:$0xff]  ;;  %v5924_v63 = vcombine.low %v424_v51, %v428_v52  ;;  %v5855_v50 = vcombine.high %v353_v43, %v357_v44  ;;  %v361_v51 = vld [vmem:[#allocation9 + $0x190] sm:$0xff] }
  0xcb   :  { %v5931_v0 = vcombine.high %v431_v57, %v435_v59  ;;  %v5933_v1 = vcombine.high %v432_v60, %v436_v61  ;;  %v365_v52 = vld [vmem:[#allocation9 + $0x1b0] sm:$0xff] }
  0xcc   :  { %1094 = vmatpush1.bf16.msra.mxu0 %v5866_v5  ;;  %1135 = vmatpush1.bf16.msra.mxu1 %v5868_v6  ;;  %v318_v5 = vld [vmem:[#allocation9 + $0x38] sm:$0xff]  ;;  %v5930_v6 = vcombine.low %v431_v57, %v435_v59  ;;  %v5863_v59 = vcombine.high %v361_v51, %v365_v52 }
  0xcd   :  { %1095 = vmatprep.subr.bf16.mxu0 %v5875_v7  ;;  %1136 = vmatprep.subr.bf16.mxu1 %v5877_v8  ;;  %v177_v7 = vld [vmem:[#allocation6] sm:$0xff]  ;;  %v5932_v8 = vcombine.low %v432_v60, %v436_v61  ;;  %v5817_v10 = vcombine.high %v314_v4, %v318_v5  ;;  %v5816_v17 = vcombine.low %v314_v4, %v318_v5 }
  0xce   :  { %v369_v60 = vld [vmem:[#allocation9 + $0x1d0] sm:$0xff] }
  0xcf   :  { %v373_v61 = vld [vmem:[#allocation9 + $0x1f0] sm:$0xff] }
  0xd0   :  { %1096 = vmatpush1.bf16.msra.mxu0 %v5874_v13  ;;  %1137 = vmatpush1.bf16.msra.mxu1 %v5876_v14  ;;  %v7401_v13 = vpack.c.bf16 %v177_v7, %v177_v7  ;;  %v322_v14 = vld [vmem:[#allocation9 + $0x58] sm:$0xff]  ;;  %v377_v4 = vld [vmem:[#allocation9 + $0x210] sm:$0xff] }
  0xd1   :  { %1097 = vmatprep.subr.bf16.mxu0 %v5883_v15  ;;  %1138 = vmatprep.subr.bf16.mxu1 %v5885_v16  ;;  %v326_v15 = vld [vmem:[#allocation9 + $0x78] sm:$0xff]  ;;  %v5814_v16 = vcombine.low %v313_v2, %v317_v3  ;;  %v5871_v3 = vcombine.high %v369_v60, %v373_v61  ;;  %v381_v5 = vld [vmem:[#allocation9 + $0x230] sm:$0xff] }
  0xd2   :  { %v5824_v25 = vcombine.low %v322_v14, %v326_v15 }
  0xd4   :  { %1098 = vmatpush1.bf16.msra.mxu0 %v5882_v21  ;;  %1139 = vmatpush1.bf16.msra.mxu1 %v5884_v22  ;;  %v5825_v21 = vcombine.high %v322_v14, %v326_v15  ;;  %v330_v22 = vld [vmem:[#allocation9 + $0x98] sm:$0xff]  ;;  %v389_v14 = vld [vmem:[#allocation9 + $0x270] sm:$0xff] }
  0xd5   :  { %1099 = vmatprep.subr.bf16.mxu0 %v5891_v23  ;;  %1140 = vmatprep.subr.bf16.mxu1 %v5893_v24  ;;  %v334_v23 = vld [vmem:[#allocation9 + $0xb8] sm:$0xff]  ;;  %v5822_v24 = vcombine.low %v321_v11, %v325_v12  ;;  %v5879_v11 = vcombine.high %v377_v4, %v381_v5  ;;  %v385_v12 = vld [vmem:[#allocation9 + $0x250] sm:$0xff] }
  0xd6   :  { %v5832_v33 = vcombine.low %v330_v22, %v334_v23  ;;  %v386_v15 = vld [vmem:[#allocation9 + $0x258] sm:$0xff] }
  0xd8   :  { %1100 = vmatpush1.bf16.msra.mxu0 %v5890_v29  ;;  %1141 = vmatpush1.bf16.msra.mxu1 %v5892_v30  ;;  %v338_v29 = vld [vmem:[#allocation9 + $0xd8] sm:$0xff]  ;;  %v5833_v30 = vcombine.high %v330_v22, %v334_v23  ;;  %v397_v22 = vld [vmem:[#allocation9 + $0x2b0] sm:$0xff] }
  0xd9   :  { %1101 = vmatprep.subr.bf16.mxu0 %v5899_v31  ;;  %1142 = vmatprep.subr.bf16.mxu1 %v5901_v32  ;;  %v342_v31 = vld [vmem:[#allocation9 + $0xf8] sm:$0xff]  ;;  %v5830_v32 = vcombine.low %v329_v19, %v333_v20  ;;  %v5887_v20 = vcombine.high %v385_v12, %v389_v14 }
  0xda   :  { %v5840_v41 = vcombine.low %v338_v29, %v342_v31  ;;  %v394_v23 = vld [vmem:[#allocation9 + $0x298] sm:$0xff] }
  0xdc   :  { %1102 = vmatpush1.bf16.msra.mxu0 %v5898_v37  ;;  %1143 = vmatpush1.bf16.msra.mxu1 %v5900_v38  ;;  %v346_v37 = vld [vmem:[#allocation9 + $0x118] sm:$0xff]  ;;  %v5841_v38 = vcombine.high %v338_v29, %v342_v31  ;;  %v401_v29 = vld [vmem:[#allocation9 + $0x2d0] sm:$0xff] }
  0xdd   :  { %1103 = vmatprep.subr.bf16.mxu0 %v5907_v39  ;;  %1144 = vmatprep.subr.bf16.mxu1 %v5909_v40  ;;  %v350_v39 = vld [vmem:[#allocation9 + $0x138] sm:$0xff]  ;;  %v5838_v40 = vcombine.low %v337_v27, %v341_v28 }
  0xde   :  { %v5848_v49 = vcombine.low %v346_v37, %v350_v39  ;;  %v402_v31 = vld [vmem:[#allocation9 + $0x2d8] sm:$0xff] }
  0xe0   :  { %1104 = vmatpush1.bf16.msra.mxu0 %v5906_v45  ;;  %1145 = vmatpush1.bf16.msra.mxu1 %v5908_v46  ;;  %v354_v45 = vld [vmem:[#allocation9 + $0x158] sm:$0xff]  ;;  %v5849_v46 = vcombine.high %v346_v37, %v350_v39  ;;  %v409_v37 = vld [vmem:[#allocation9 + $0x310] sm:$0xff] }
  0xe1   :  { %1105 = vmatprep.subr.bf16.mxu0 %v5915_v47  ;;  %1146 = vmatprep.subr.bf16.mxu1 %v5917_v48  ;;  %v358_v47 = vld [vmem:[#allocation9 + $0x178] sm:$0xff]  ;;  %v5846_v48 = vcombine.low %v345_v35, %v349_v36 }
  0xe2   :  { %v5856_v57 = vcombine.low %v354_v45, %v358_v47  ;;  %v410_v39 = vld [vmem:[#allocation9 + $0x318] sm:$0xff] }
  0xe4   :  { %1106 = vmatpush1.bf16.msra.mxu0 %v5914_v53  ;;  %1147 = vmatpush1.bf16.msra.mxu1 %v5916_v54  ;;  %v362_v53 = vld [vmem:[#allocation9 + $0x198] sm:$0xff]  ;;  %v5857_v54 = vcombine.high %v354_v45, %v358_v47  ;;  %v417_v45 = vld [vmem:[#allocation9 + $0x350] sm:$0xff] }
  0xe5   :  { %1107 = vmatprep.subr.bf16.mxu0 %v5923_v55  ;;  %1148 = vmatprep.subr.bf16.mxu1 %v5925_v56  ;;  %v366_v55 = vld [vmem:[#allocation9 + $0x1b8] sm:$0xff]  ;;  %v5854_v56 = vcombine.low %v353_v43, %v357_v44 }
  0xe6   :  { %v5864_v2 = vcombine.low %v362_v53, %v366_v55  ;;  %v418_v47 = vld [vmem:[#allocation9 + $0x358] sm:$0xff] }
  0xe8   :  { %1108 = vmatpush1.bf16.msra.mxu0 %v5922_v62  ;;  %1149 = vmatpush1.bf16.msra.mxu1 %v5924_v63  ;;  %v370_v62 = vld [vmem:[#allocation9 + $0x1d8] sm:$0xff]  ;;  %v5865_v63 = vcombine.high %v362_v53, %v366_v55  ;;  %v425_v53 = vld [vmem:[#allocation9 + $0x390] sm:$0xff] }
  0xe9   :  { %1109 = vmatprep.subr.bf16.mxu0 %v5931_v0  ;;  %1150 = vmatprep.subr.bf16.mxu1 %v5933_v1  ;;  %v374_v0 = vld [vmem:[#allocation9 + $0x1f8] sm:$0xff]  ;;  %v5862_v1 = vcombine.low %v361_v51, %v365_v52 }
  0xea   :  { %v5873_v7 = vcombine.high %v370_v62, %v374_v0  ;;  %v426_v55 = vld [vmem:[#allocation9 + $0x398] sm:$0xff] }
  0xec   :  { %1110 = vmatpush1.bf16.msra.mxu0 %v5930_v6  ;;  %1151 = vmatpush1.bf16.msra.mxu1 %v5932_v8  ;;  %v378_v6 = vld [vmem:[#allocation9 + $0x218] sm:$0xff] }
  0xed   :  { %1161 = vmatprep.subr.bf16.mxu0 %v5815_v9  ;;  %1202 = vmatprep.subr.bf16.mxu1 %v5817_v10  ;;  %v382_v8 = vld [vmem:[#allocation9 + $0x238] sm:$0xff]  ;;  %v5870_v9 = vcombine.low %v369_v60, %v373_v61  ;;  %v5872_v10 = vcombine.low %v370_v62, %v374_v0  ;;  %v433_v62 = vld [vmem:[#allocation9 + $0x3d0] sm:$0xff] }
  0xee   :  { %v5880_v19 = vcombine.low %v378_v6, %v382_v8  ;;  %v434_v0 = vld [vmem:[#allocation9 + $0x3d8] sm:$0xff] }
  0xef   :  { %1112 = vmatmul.mubr.bf16.vlgmr.msra.gmra.mrb[0].mxu0 %v7401_v13  ;;  %1153 = vmatmul.mubr.bf16.vlgmr.msra.gmra.mrb[0].mxu1 %v7401_v13 }
  0xf0   :  { %1162 = vmatpush1.bf16.msra.mxu0 %v5814_v16  ;;  %1203 = vmatpush1.bf16.msra.mxu1 %v5816_v17  ;;  %v5881_v16 = vcombine.high %v378_v6, %v382_v8  ;;  %v390_v17 = vld [vmem:[#allocation9 + $0x278] sm:$0xff]  ;;  %v183_v6 = vld [vmem:[#allocation8] sm:$0xff]  ;;  %v184_v8 = vld [vmem:[#allocation8 + $0x8] sm:$0xff] }
  0xf1   :  { %1163 = vmatprep.subr.bf16.mxu0 %v5823_v18  ;;  %1204 = vmatprep.subr.bf16.mxu1 %v5825_v21  ;;  %v5878_v18 = vcombine.low %v377_v4, %v381_v5  ;;  %v393_v21 = vld [vmem:[#allocation9 + $0x290] sm:$0xff]  ;;  %v5888_v27 = vcombine.low %v386_v15, %v390_v17 }
  0xf2   :  { %1193 = vmatprep.mubr.bf16.mxu0 %v7397_v58  ;;  %1234 = vmatprep.mubr.bf16.mxu1 %v7397_v58  ;;  %v5895_v28 = vcombine.high %v393_v21, %v397_v22 }
  0xf4   :  { %1164 = vmatpush1.bf16.msra.mxu0 %v5822_v24  ;;  %1205 = vmatpush1.bf16.msra.mxu1 %v5824_v25  ;;  %v5889_v24 = vcombine.high %v386_v15, %v390_v17  ;;  %v398_v25 = vld [vmem:[#allocation9 + $0x2b8] sm:$0xff]  ;;  %v192_v17 = vld [vmem:[#allocation8 + $0x48] sm:$0xff] }
  0xf5   :  { %1165 = vmatprep.subr.bf16.mxu0 %v5831_v26  ;;  %1206 = vmatprep.subr.bf16.mxu1 %v5833_v30  ;;  %v5886_v26 = vcombine.low %v385_v12, %v389_v14  ;;  %v405_v30 = vld [vmem:[#allocation9 + $0x2f0] sm:$0xff]  ;;  %v5896_v35 = vcombine.low %v394_v23, %v398_v25  ;;  %v191_v12 = vld [vmem:[#allocation8 + $0x40] sm:$0xff] }
  0xf6   :  { %v5903_v36 = vcombine.high %v401_v29, %v405_v30 }
  0xf8   :  { %1166 = vmatpush1.bf16.msra.mxu0 %v5830_v32  ;;  %1207 = vmatpush1.bf16.msra.mxu1 %v5832_v33  ;;  %v5897_v32 = vcombine.high %v394_v23, %v398_v25  ;;  %v406_v33 = vld [vmem:[#allocation9 + $0x2f8] sm:$0xff]  ;;  %v203_v23 = vld [vmem:[#allocation8 + $0xa0] sm:$0xff] }
  0xf9   :  { %1167 = vmatprep.subr.bf16.mxu0 %v5839_v34  ;;  %1208 = vmatprep.subr.bf16.mxu1 %v5841_v38  ;;  %v5894_v34 = vcombine.low %v393_v21, %v397_v22  ;;  %v413_v38 = vld [vmem:[#allocation9 + $0x330] sm:$0xff]  ;;  %v5904_v43 = vcombine.low %v402_v31, %v406_v33  ;;  %v199_v22 = vld [vmem:[#allocation8 + $0x80] sm:$0xff] }
  0xfa   :  { %v5911_v44 = vcombine.high %v409_v37, %v413_v38 }
  0xfc   :  { %1168 = vmatpush1.bf16.msra.mxu0 %v5838_v40  ;;  %1209 = vmatpush1.bf16.msra.mxu1 %v5840_v41  ;;  %v5905_v40 = vcombine.high %v402_v31, %v406_v33  ;;  %v414_v41 = vld [vmem:[#allocation9 + $0x338] sm:$0xff]  ;;  %v207_v31 = vld [vmem:[#allocation8 + $0xc0] sm:$0xff] }
  0xfd   :  { %1169 = vmatprep.subr.bf16.mxu0 %v5847_v42  ;;  %1210 = vmatprep.subr.bf16.mxu1 %v5849_v46  ;;  %v5902_v42 = vcombine.low %v401_v29, %v405_v30  ;;  %v421_v46 = vld [vmem:[#allocation9 + $0x370] sm:$0xff]  ;;  %v5912_v51 = vcombine.low %v410_v39, %v414_v41 }
  0xfe   :  { %v5919_v52 = vcombine.high %v417_v45, %v421_v46 }
 0x100   :  { %1170 = vmatpush1.bf16.msra.mxu0 %v5846_v48  ;;  %1211 = vmatpush1.bf16.msra.mxu1 %v5848_v49  ;;  %v5913_v48 = vcombine.high %v410_v39, %v414_v41  ;;  %v422_v49 = vld [vmem:[#allocation9 + $0x378] sm:$0xff]  ;;  %v215_v39 = vld [vmem:[#allocation8 + $0x100] sm:$0xff] }
 0x101   :  { %1171 = vmatprep.subr.bf16.mxu0 %v5855_v50  ;;  %1212 = vmatprep.subr.bf16.mxu1 %v5857_v54  ;;  %v5910_v50 = vcombine.low %v409_v37, %v413_v38  ;;  %v429_v54 = vld [vmem:[#allocation9 + $0x3b0] sm:$0xff]  ;;  %v5920_v60 = vcombine.low %v418_v47, %v422_v49  ;;  %v5954_v38 = vcombine.low %v199_v22, %v203_v23 }
 0x102   :  { %v5927_v61 = vcombine.high %v425_v53, %v429_v54 }
 0x104   :  { %1172 = vmatpush1.bf16.msra.mxu0 %v5854_v56  ;;  %1213 = vmatpush1.bf16.msra.mxu1 %v5856_v57  ;;  %v5921_v56 = vcombine.high %v418_v47, %v422_v49  ;;  %v430_v57 = vld [vmem:[#allocation9 + $0x3b8] sm:$0xff]  ;;  %v223_v47 = vld [vmem:[#allocation8 + $0x140] sm:$0xff] }
 0x105   :  { %1173 = vmatprep.subr.bf16.mxu0 %v5863_v59  ;;  %1214 = vmatprep.subr.bf16.mxu1 %v5865_v63  ;;  %v5918_v59 = vcombine.low %v417_v45, %v421_v46  ;;  %v437_v63 = vld [vmem:[#allocation9 + $0x3f0] sm:$0xff]  ;;  %v5928_v4 = vcombine.low %v426_v55, %v430_v57 }
 0x106   :  { %v5935_v5 = vcombine.high %v433_v62, %v437_v63 }
 0x108   :  { %1174 = vmatpush1.bf16.msra.mxu0 %v5862_v1  ;;  %1215 = vmatpush1.bf16.msra.mxu1 %v5864_v2  ;;  %v5929_v1 = vcombine.high %v426_v55, %v430_v57  ;;  %v438_v2 = vld [vmem:[#allocation9 + $0x3f8] sm:$0xff]  ;;  %v231_v55 = vld [vmem:[#allocation8 + $0x180] sm:$0xff] }
 0x109   :  { %1175 = vmatprep.subr.bf16.mxu0 %v5871_v3  ;;  %1216 = vmatprep.subr.bf16.mxu1 %v5873_v7  ;;  %v5926_v3 = vcombine.low %v425_v53, %v429_v54  ;;  %v187_v7 = vld [vmem:[#allocation8 + $0x20] sm:$0xff]  ;;  %v5936_v14 = vcombine.low %v434_v0, %v438_v2 }
 0x10a   :  { %v5939_v15 = vcombine.high %v183_v6, %v187_v7  ;;  %v5938_v21 = vcombine.low %v183_v6, %v187_v7 }
 0x10c   :  { %1176 = vmatpush1.bf16.msra.mxu0 %v5870_v9  ;;  %1217 = vmatpush1.bf16.msra.mxu1 %v5872_v10  ;;  %v5937_v9 = vcombine.high %v434_v0, %v438_v2  ;;  %v188_v10 = vld [vmem:[#allocation8 + $0x28] sm:$0xff]  ;;  %v239_v0 = vld [vmem:[#allocation8 + $0x1c0] sm:$0xff] }
 0x10d   :  { %1177 = vmatprep.subr.bf16.mxu0 %v5879_v11  ;;  %1218 = vmatprep.subr.bf16.mxu1 %v5881_v16  ;;  %v5934_v11 = vcombine.low %v433_v62, %v437_v63  ;;  %v195_v16 = vld [vmem:[#allocation8 + $0x60] sm:$0xff] }
 0x10e   :  { %v5947_v25 = vcombine.high %v191_v12, %v195_v16  ;;  %v5946_v30 = vcombine.low %v191_v12, %v195_v16  ;;  %v248_v12 = vld [vmem:[#allocation8 + $0x208] sm:$0xff] }
 0x110   :  { %1178 = vmatpush1.bf16.msra.mxu0 %v5878_v18  ;;  %1219 = vmatpush1.bf16.msra.mxu1 %v5880_v19  ;;  %v196_v18 = vld [vmem:[#allocation8 + $0x68] sm:$0xff]  ;;  %v5941_v19 = vcombine.high %v184_v8, %v188_v10 }
 0x111   :  { %1179 = vmatprep.subr.bf16.mxu0 %v5887_v20  ;;  %1220 = vmatprep.subr.bf16.mxu1 %v5889_v24  ;;  %v176_v20 = vld [vmem:[#allocation3 + $0x8] sm:$0xff]  ;;  %v5940_v24 = vcombine.low %v184_v8, %v188_v10  ;;  %v5948_v33 = vcombine.low %v192_v17, %v196_v18  ;;  %v247_v8 = vld [vmem:[#allocation8 + $0x200] sm:$0xff] }
 0x112   :  { %v7407_v29 = vpack.c.bf16 %v176_v20, %v176_v20 }
 0x114   :  { %1180 = vmatpush1.bf16.msra.mxu0 %v5886_v26  ;;  %1221 = vmatpush1.bf16.msra.mxu1 %v5888_v27  ;;  %v200_v26 = vld [vmem:[#allocation8 + $0x88] sm:$0xff] }
 0x115   :  { %1181 = vmatprep.subr.bf16.mxu0 %v5895_v28  ;;  %1222 = vmatprep.subr.bf16.mxu1 %v5897_v32  ;;  %v204_v27 = vld [vmem:[#allocation8 + $0xa8] sm:$0xff]  ;;  %v5949_v28 = vcombine.high %v192_v17, %v196_v18  ;;  %v211_v32 = vld [vmem:[#allocation8 + $0xe0] sm:$0xff] }
 0x116   :  { %v5957_v37 = vcombine.high %v200_v26, %v204_v27  ;;  %v5956_v41 = vcombine.low %v200_v26, %v204_v27  ;;  %v5962_v46 = vcombine.low %v207_v31, %v211_v32  ;;  %v255_v17 = vld [vmem:[#allocation8 + $0x240] sm:$0xff] }
 0x117   :  { %v259_v18 = vld [vmem:[#allocation8 + $0x260] sm:$0xff] }
 0x118   :  { %1182 = vmatpush1.bf16.msra.mxu0 %v5894_v34  ;;  %1223 = vmatpush1.bf16.msra.mxu1 %v5896_v35  ;;  %v5955_v34 = vcombine.high %v199_v22, %v203_v23  ;;  %v208_v35 = vld [vmem:[#allocation8 + $0xc8] sm:$0xff]  ;;  %v267_v26 = vld [vmem:[#allocation8 + $0x2a0] sm:$0xff] }
 0x119   :  { %1183 = vmatprep.subr.bf16.mxu0 %v5903_v36  ;;  %1224 = vmatprep.subr.bf16.mxu1 %v5905_v40  ;;  %v212_v36 = vld [vmem:[#allocation8 + $0xe8] sm:$0xff]  ;;  %v219_v40 = vld [vmem:[#allocation8 + $0x120] sm:$0xff] }
 0x11a   :  { %v5965_v45 = vcombine.high %v208_v35, %v212_v36  ;;  %v5964_v49 = vcombine.low %v208_v35, %v212_v36  ;;  %v5970_v54 = vcombine.low %v215_v39, %v219_v40  ;;  %v260_v22 = vld [vmem:[#allocation8 + $0x268] sm:$0xff]  ;;  %v275_v35 = vld [vmem:[#allocation8 + $0x2e0] sm:$0xff] }
 0x11c   :  { %1184 = vmatpush1.bf16.msra.mxu0 %v5902_v42  ;;  %1225 = vmatpush1.bf16.msra.mxu1 %v5904_v43  ;;  %v5963_v42 = vcombine.high %v207_v31, %v211_v32  ;;  %v216_v43 = vld [vmem:[#allocation8 + $0x108] sm:$0xff] }
 0x11d   :  { %1185 = vmatprep.subr.bf16.mxu0 %v5911_v44  ;;  %1226 = vmatprep.subr.bf16.mxu1 %v5913_v48  ;;  %v220_v44 = vld [vmem:[#allocation8 + $0x128] sm:$0xff]  ;;  %v227_v48 = vld [vmem:[#allocation8 + $0x160] sm:$0xff] }
 0x11e   :  { %v5973_v53 = vcombine.high %v216_v43, %v220_v44  ;;  %v5972_v57 = vcombine.low %v216_v43, %v220_v44  ;;  %v5978_v63 = vcombine.low %v223_v47, %v227_v48  ;;  %v268_v31 = vld [vmem:[#allocation8 + $0x2a8] sm:$0xff]  ;;  %v283_v43 = vld [vmem:[#allocation8 + $0x320] sm:$0xff] }
 0x120   :  { %1186 = vmatpush1.bf16.msra.mxu0 %v5910_v50  ;;  %1227 = vmatpush1.bf16.msra.mxu1 %v5912_v51  ;;  %v5971_v50 = vcombine.high %v215_v39, %v219_v40  ;;  %v224_v51 = vld [vmem:[#allocation8 + $0x148] sm:$0xff] }
 0x121   :  { %1187 = vmatprep.subr.bf16.mxu0 %v5919_v52  ;;  %1228 = vmatprep.subr.bf16.mxu1 %v5921_v56  ;;  %v228_v52 = vld [vmem:[#allocation8 + $0x168] sm:$0xff]  ;;  %v235_v56 = vld [vmem:[#allocation8 + $0x1a0] sm:$0xff] }
 0x122   :  { %v5981_v62 = vcombine.high %v224_v51, %v228_v52  ;;  %v5980_v2 = vcombine.low %v224_v51, %v228_v52  ;;  %v5986_v7 = vcombine.low %v231_v55, %v235_v56  ;;  %v276_v39 = vld [vmem:[#allocation8 + $0x2e8] sm:$0xff] }
 0x124   :  { %1188 = vmatpush1.bf16.msra.mxu0 %v5918_v59  ;;  %1229 = vmatpush1.bf16.msra.mxu1 %v5920_v60  ;;  %v5979_v59 = vcombine.high %v223_v47, %v227_v48  ;;  %v232_v60 = vld [vmem:[#allocation8 + $0x188] sm:$0xff] }
 0x125   :  { %1189 = vmatprep.subr.bf16.mxu0 %v5927_v61  ;;  %1230 = vmatprep.subr.bf16.mxu1 %v5929_v1  ;;  %v236_v61 = vld [vmem:[#allocation8 + $0x1a8] sm:$0xff]  ;;  %v243_v1 = vld [vmem:[#allocation8 + $0x1e0] sm:$0xff] }
 0x126   :  { %v5989_v6 = vcombine.high %v232_v60, %v236_v61  ;;  %v5988_v10 = vcombine.low %v232_v60, %v236_v61  ;;  %v5994_v16 = vcombine.low %v239_v0, %v243_v1  ;;  %v284_v47 = vld [vmem:[#allocation8 + $0x328] sm:$0xff] }
 0x128   :  { %1190 = vmatpush1.bf16.msra.mxu0 %v5926_v3  ;;  %1231 = vmatpush1.bf16.msra.mxu1 %v5928_v4  ;;  %v5987_v3 = vcombine.high %v231_v55, %v235_v56  ;;  %v240_v4 = vld [vmem:[#allocation8 + $0x1c8] sm:$0xff] }
 0x129   :  { %1191 = vmatprep.subr.bf16.mxu0 %v5935_v5  ;;  %1232 = vmatprep.subr.bf16.mxu1 %v5937_v9  ;;  %v244_v5 = vld [vmem:[#allocation8 + $0x1e8] sm:$0xff]  ;;  %v251_v9 = vld [vmem:[#allocation8 + $0x220] sm:$0xff] }
 0x12a   :  { %v6003_v20 = vcombine.high %v247_v8, %v251_v9  ;;  %v288_v55 = vld [vmem:[#allocation8 + $0x348] sm:$0xff] }
 0x12b   :  { %v292_v56 = vld [vmem:[#allocation8 + $0x368] sm:$0xff] }
 0x12c   :  { %1192 = vmatpush1.bf16.msra.mxu0 %v5934_v11  ;;  %1233 = vmatpush1.bf16.msra.mxu1 %v5936_v14  ;;  %v5995_v11 = vcombine.high %v239_v0, %v243_v1  ;;  %v252_v14 = vld [vmem:[#allocation8 + $0x228] sm:$0xff]  ;;  %v6045_v61 = vcombine.high %v288_v55, %v292_v56 }
 0x12d   :  { %1883 = vmatprep.subr.bf16.mxu0 %v5939_v15  ;;  %1924 = vmatprep.subr.bf16.mxu1 %v5941_v19  ;;  %v5997_v15 = vcombine.high %v240_v4, %v244_v5  ;;  %v5996_v19 = vcombine.low %v240_v4, %v244_v5  ;;  %v6005_v23 = vcombine.high %v248_v12, %v252_v14  ;;  %v296_v0 = vld [vmem:[#allocation8 + $0x388] sm:$0xff] }
 0x12e   :  { %v6004_v27 = vcombine.low %v248_v12, %v252_v14  ;;  %v300_v1 = vld [vmem:[#allocation8 + $0x3a8] sm:$0xff] }
 0x12f   :  { %1194 = vmatmul.mubr.bf16.vlgmr.msra.gmra.mrb[4].mxu0 %v7401_v13  ;;  %1235 = vmatmul.mubr.bf16.vlgmr.msra.gmra.mrb[4].mxu1 %v7401_v13  ;;  %v6053_v5 = vcombine.high %v296_v0, %v300_v1 }
 0x130   :  { %1884 = vmatpush1.bf16.msra.mxu0 %v5938_v21  ;;  %1925 = vmatpush1.bf16.msra.mxu1 %v5940_v24  ;;  %v256_v21 = vld [vmem:[#allocation8 + $0x248] sm:$0xff]  ;;  %v6002_v24 = vcombine.low %v247_v8, %v251_v9 }
 0x131   :  { %1885 = vmatprep.subr.bf16.mxu0 %v5947_v25  ;;  %1926 = vmatprep.subr.bf16.mxu1 %v5949_v28  ;;  %v263_v25 = vld [vmem:[#allocation8 + $0x280] sm:$0xff]  ;;  %v6011_v28 = vcombine.high %v255_v17, %v259_v18  ;;  %v6013_v32 = vcombine.high %v256_v21, %v260_v22  ;;  %v6012_v36 = vcombine.low %v256_v21, %v260_v22  ;;  %v304_v8 = vld [vmem:[#allocation8 + $0x3c8] sm:$0xff] }
 0x132   :  { %1915 = vmatprep.mubr.bf16.mxu0 %v7407_v29  ;;  %1956 = vmatprep.mubr.bf16.mxu1 %v7407_v29  ;;  %v308_v9 = vld [vmem:[#allocation8 + $0x3e8] sm:$0xff] }
 0x133   :  { %v6061_v14 = vcombine.high %v304_v8, %v308_v9  ;;  %v6060_v21 = vcombine.low %v304_v8, %v308_v9 }
 0x134   :  { %1886 = vmatpush1.bf16.msra.mxu0 %v5946_v30  ;;  %1927 = vmatpush1.bf16.msra.mxu1 %v5948_v33  ;;  %v264_v30 = vld [vmem:[#allocation8 + $0x288] sm:$0xff]  ;;  %v6010_v33 = vcombine.low %v255_v17, %v259_v18  ;;  %v186_v17 = vld [vmem:[#allocation8 + $0x18] sm:$0xff] }
 0x135   :  { %1887 = vmatprep.subr.bf16.mxu0 %v5955_v34  ;;  %1928 = vmatprep.subr.bf16.mxu1 %v5957_v37  ;;  %v271_v34 = vld [vmem:[#allocation8 + $0x2c0] sm:$0xff]  ;;  %v6019_v37 = vcombine.high %v263_v25, %v267_v26  ;;  %v6021_v40 = vcombine.high %v264_v30, %v268_v31  ;;  %v6020_v44 = vcombine.low %v264_v30, %v268_v31  ;;  %v190_v18 = vld [vmem:[#allocation8 + $0x38] sm:$0xff] }
 0x136   :  { %v5944_v31 = vcombine.low %v186_v17, %v190_v18 }
 0x138   :  { %1888 = vmatpush1.bf16.msra.mxu0 %v5954_v38  ;;  %1929 = vmatpush1.bf16.msra.mxu1 %v5956_v41  ;;  %v272_v38 = vld [vmem:[#allocation8 + $0x2c8] sm:$0xff]  ;;  %v6018_v41 = vcombine.low %v263_v25, %v267_v26  ;;  %v197_v25 = vld [vmem:[#allocation8 + $0x70] sm:$0xff] }
 0x139   :  { %1889 = vmatprep.subr.bf16.mxu0 %v5963_v42  ;;  %1930 = vmatprep.subr.bf16.mxu1 %v5965_v45  ;;  %v279_v42 = vld [vmem:[#allocation8 + $0x300] sm:$0xff]  ;;  %v6027_v45 = vcombine.high %v271_v34, %v275_v35  ;;  %v6029_v48 = vcombine.high %v272_v38, %v276_v39 }
 0x13a   :  { %v6035_v51 = vcombine.high %v279_v42, %v283_v43 }
 0x13c   :  { %1890 = vmatpush1.bf16.msra.mxu0 %v5962_v46  ;;  %1931 = vmatpush1.bf16.msra.mxu1 %v5964_v49  ;;  %v280_v46 = vld [vmem:[#allocation8 + $0x308] sm:$0xff]  ;;  %v6026_v49 = vcombine.low %v271_v34, %v275_v35  ;;  %v201_v34 = vld [vmem:[#allocation8 + $0x90] sm:$0xff] }
 0x13d   :  { %1891 = vmatprep.subr.bf16.mxu0 %v5971_v50  ;;  %1932 = vmatprep.subr.bf16.mxu1 %v5973_v53  ;;  %v6028_v50 = vcombine.low %v272_v38, %v276_v39  ;;  %v6037_v52 = vcombine.high %v280_v46, %v284_v47  ;;  %v287_v53 = vld [vmem:[#allocation8 + $0x340] sm:$0xff]  ;;  %v205_v35 = vld [vmem:[#allocation8 + $0xb0] sm:$0xff] }
 0x140   :  { %1892 = vmatpush1.bf16.msra.mxu0 %v5970_v54  ;;  %1933 = vmatpush1.bf16.msra.mxu1 %v5972_v57  ;;  %v291_v54 = vld [vmem:[#allocation8 + $0x360] sm:$0xff]  ;;  %v6034_v57 = vcombine.low %v279_v42, %v283_v43  ;;  %v209_v42 = vld [vmem:[#allocation8 + $0xd0] sm:$0xff] }
 0x141   :  { %1893 = vmatprep.subr.bf16.mxu0 %v5979_v59  ;;  %1934 = vmatprep.subr.bf16.mxu1 %v5981_v62  ;;  %v6036_v59 = vcombine.low %v280_v46, %v284_v47  ;;  %v6043_v60 = vcombine.high %v287_v53, %v291_v54  ;;  %v295_v62 = vld [vmem:[#allocation8 + $0x380] sm:$0xff]  ;;  %v213_v43 = vld [vmem:[#allocation8 + $0xf0] sm:$0xff]  ;;  %v5958_v46 = vcombine.low %v201_v34, %v205_v35 }
 0x144   :  { %1894 = vmatpush1.bf16.msra.mxu0 %v5978_v63  ;;  %1935 = vmatpush1.bf16.msra.mxu1 %v5980_v2  ;;  %v299_v63 = vld [vmem:[#allocation8 + $0x3a0] sm:$0xff]  ;;  %v6042_v2 = vcombine.low %v287_v53, %v291_v54  ;;  %v222_v53 = vld [vmem:[#allocation8 + $0x138] sm:$0xff]  ;;  %v5966_v54 = vcombine.low %v209_v42, %v213_v43 }
 0x145   :  { %1895 = vmatprep.subr.bf16.mxu0 %v5987_v3  ;;  %1936 = vmatprep.subr.bf16.mxu1 %v5989_v6  ;;  %v6044_v3 = vcombine.low %v288_v55, %v292_v56  ;;  %v6051_v4 = vcombine.high %v295_v62, %v299_v63  ;;  %v303_v6 = vld [vmem:[#allocation8 + $0x3c0] sm:$0xff] }
 0x148   :  { %1896 = vmatpush1.bf16.msra.mxu0 %v5986_v7  ;;  %1937 = vmatpush1.bf16.msra.mxu1 %v5988_v10  ;;  %v307_v7 = vld [vmem:[#allocation8 + $0x3e0] sm:$0xff]  ;;  %v6050_v10 = vcombine.low %v295_v62, %v299_v63  ;;  %v230_v62 = vld [vmem:[#allocation8 + $0x178] sm:$0xff] }
 0x149   :  { %1897 = vmatprep.subr.bf16.mxu0 %v5995_v11  ;;  %1938 = vmatprep.subr.bf16.mxu1 %v5997_v15  ;;  %v6052_v11 = vcombine.low %v296_v0, %v300_v1  ;;  %v6059_v12 = vcombine.high %v303_v6, %v307_v7  ;;  %v185_v15 = vld [vmem:[#allocation8 + $0x10] sm:$0xff] }
 0x14c   :  { %1898 = vmatpush1.bf16.msra.mxu0 %v5994_v16  ;;  %1939 = vmatpush1.bf16.msra.mxu1 %v5996_v19  ;;  %v189_v16 = vld [vmem:[#allocation8 + $0x30] sm:$0xff]  ;;  %v6058_v19 = vcombine.low %v303_v6, %v307_v7  ;;  %v238_v6 = vld [vmem:[#allocation8 + $0x1b8] sm:$0xff] }
 0x14d   :  { %1899 = vmatprep.subr.bf16.mxu0 %v6003_v20  ;;  %1940 = vmatprep.subr.bf16.mxu1 %v6005_v23  ;;  %v175_v20 = vld [vmem:[#allocation3] sm:$0xff]  ;;  %v5943_v22 = vcombine.high %v185_v15, %v189_v16  ;;  %v5945_v23 = vcombine.high %v186_v17, %v190_v18  ;;  %v5942_v30 = vcombine.low %v185_v15, %v189_v16  ;;  %v246_v15 = vld [vmem:[#allocation8 + $0x1f8] sm:$0xff] }
 0x14e   :  { %v7413_v26 = vpack.c.bf16 %v175_v20, %v175_v20  ;;  %v249_v20 = vld [vmem:[#allocation8 + $0x210] sm:$0xff] }
 0x150   :  { %1900 = vmatpush1.bf16.msra.mxu0 %v6002_v24  ;;  %1941 = vmatpush1.bf16.msra.mxu1 %v6004_v27  ;;  %v193_v24 = vld [vmem:[#allocation8 + $0x50] sm:$0xff]  ;;  %v194_v27 = vld [vmem:[#allocation8 + $0x58] sm:$0xff] }
 0x151   :  { %1901 = vmatprep.subr.bf16.mxu0 %v6011_v28  ;;  %1942 = vmatprep.subr.bf16.mxu1 %v6013_v32  ;;  %v198_v28 = vld [vmem:[#allocation8 + $0x78] sm:$0xff]  ;;  %v5951_v32 = vcombine.high %v193_v24, %v197_v25  ;;  %v5950_v38 = vcombine.low %v193_v24, %v197_v25 }
 0x152   :  { %v5952_v39 = vcombine.low %v194_v27, %v198_v28 }
 0x154   :  { %1902 = vmatpush1.bf16.msra.mxu0 %v6010_v33  ;;  %1943 = vmatpush1.bf16.msra.mxu1 %v6012_v36  ;;  %v5953_v33 = vcombine.high %v194_v27, %v198_v28  ;;  %v202_v36 = vld [vmem:[#allocation8 + $0x98] sm:$0xff] }
 0x155   :  { %1903 = vmatprep.subr.bf16.mxu0 %v6019_v37  ;;  %1944 = vmatprep.subr.bf16.mxu1 %v6021_v40  ;;  %v206_v37 = vld [vmem:[#allocation8 + $0xb8] sm:$0xff]  ;;  %v5959_v40 = vcombine.high %v201_v34, %v205_v35 }
 0x156   :  { %v5960_v47 = vcombine.low %v202_v36, %v206_v37 }
 0x158   :  { %1904 = vmatpush1.bf16.msra.mxu0 %v6018_v41  ;;  %1945 = vmatpush1.bf16.msra.mxu1 %v6020_v44  ;;  %v5961_v41 = vcombine.high %v202_v36, %v206_v37  ;;  %v210_v44 = vld [vmem:[#allocation8 + $0xd8] sm:$0xff] }
 0x159   :  { %1905 = vmatprep.subr.bf16.mxu0 %v6027_v45  ;;  %1946 = vmatprep.subr.bf16.mxu1 %v6029_v48  ;;  %v214_v45 = vld [vmem:[#allocation8 + $0xf8] sm:$0xff]  ;;  %v5967_v48 = vcombine.high %v209_v42, %v213_v43 }
 0x15a   :  { %v5968_v55 = vcombine.low %v210_v44, %v214_v45 }
 0x15c   :  { %1906 = vmatpush1.bf16.msra.mxu0 %v6026_v49  ;;  %1947 = vmatpush1.bf16.msra.mxu1 %v6028_v50  ;;  %v5969_v49 = vcombine.high %v210_v44, %v214_v45  ;;  %v217_v50 = vld [vmem:[#allocation8 + $0x110] sm:$0xff] }
 0x15d   :  { %1907 = vmatprep.subr.bf16.mxu0 %v6035_v51  ;;  %1948 = vmatprep.subr.bf16.mxu1 %v6037_v52  ;;  %v221_v51 = vld [vmem:[#allocation8 + $0x130] sm:$0xff]  ;;  %v218_v52 = vld [vmem:[#allocation8 + $0x118] sm:$0xff] }
 0x15e   :  { %v5975_v56 = vcombine.high %v217_v50, %v221_v51  ;;  %v5974_v63 = vcombine.low %v217_v50, %v221_v51  ;;  %v5976_v0 = vcombine.low %v218_v52, %v222_v53 }
 0x160   :  { %1908 = vmatpush1.bf16.msra.mxu0 %v6034_v57  ;;  %1949 = vmatpush1.bf16.msra.mxu1 %v6036_v59  ;;  %v5977_v57 = vcombine.high %v218_v52, %v222_v53  ;;  %v225_v59 = vld [vmem:[#allocation8 + $0x150] sm:$0xff] }
 0x161   :  { %1909 = vmatprep.subr.bf16.mxu0 %v6043_v60  ;;  %1950 = vmatprep.subr.bf16.mxu1 %v6045_v61  ;;  %v229_v60 = vld [vmem:[#allocation8 + $0x170] sm:$0xff]  ;;  %v226_v61 = vld [vmem:[#allocation8 + $0x158] sm:$0xff] }
 0x162   :  { %v5983_v1 = vcombine.high %v225_v59, %v229_v60  ;;  %v5982_v7 = vcombine.low %v225_v59, %v229_v60  ;;  %v5984_v8 = vcombine.low %v226_v61, %v230_v62 }
 0x164   :  { %1910 = vmatpush1.bf16.msra.mxu0 %v6042_v2  ;;  %1951 = vmatpush1.bf16.msra.mxu1 %v6044_v3  ;;  %v5985_v2 = vcombine.high %v226_v61, %v230_v62  ;;  %v233_v3 = vld [vmem:[#allocation8 + $0x190] sm:$0xff] }
 0x165   :  { %1911 = vmatprep.subr.bf16.mxu0 %v6051_v4  ;;  %1952 = vmatprep.subr.bf16.mxu1 %v6053_v5  ;;  %v237_v4 = vld [vmem:[#allocation8 + $0x1b0] sm:$0xff]  ;;  %v234_v5 = vld [vmem:[#allocation8 + $0x198] sm:$0xff] }
 0x166   :  { %v5991_v9 = vcombine.high %v233_v3, %v237_v4  ;;  %v5990_v16 = vcombine.low %v233_v3, %v237_v4  ;;  %v5992_v17 = vcombine.low %v234_v5, %v238_v6 }
 0x168   :  { %1912 = vmatpush1.bf16.msra.mxu0 %v6050_v10  ;;  %1953 = vmatpush1.bf16.msra.mxu1 %v6052_v11  ;;  %v5993_v10 = vcombine.high %v234_v5, %v238_v6  ;;  %v241_v11 = vld [vmem:[#allocation8 + $0x1d0] sm:$0xff] }
 0x169   :  { %1913 = vmatprep.subr.bf16.mxu0 %v6059_v12  ;;  %1954 = vmatprep.subr.bf16.mxu1 %v6061_v14  ;;  %v245_v12 = vld [vmem:[#allocation8 + $0x1f0] sm:$0xff]  ;;  %v242_v14 = vld [vmem:[#allocation8 + $0x1d8] sm:$0xff] }
 0x16a   :  { %v5999_v18 = vcombine.high %v241_v11, %v245_v12  ;;  %v5998_v24 = vcombine.low %v241_v11, %v245_v12  ;;  %v6000_v25 = vcombine.low %v242_v14, %v246_v15 }
 0x16c   :  { %1914 = vmatpush1.bf16.msra.mxu0 %v6058_v19  ;;  %1955 = vmatpush1.bf16.msra.mxu1 %v6060_v21  ;;  %v6001_v19 = vcombine.high %v242_v14, %v246_v15  ;;  %v253_v21 = vld [vmem:[#allocation8 + $0x230] sm:$0xff] }
 0x16d   :  { %1965 = vmatprep.subr.bf16.mxu0 %v5943_v22  ;;  %2006 = vmatprep.subr.bf16.mxu1 %v5945_v23  ;;  %v250_v22 = vld [vmem:[#allocation8 + $0x218] sm:$0xff]  ;;  %v6007_v27 = vcombine.high %v249_v20, %v253_v21  ;;  %v6006_v34 = vcombine.low %v249_v20, %v253_v21 }
 0x16e   :  { %v254_v23 = vld [vmem:[#allocation8 + $0x238] sm:$0xff] }
 0x16f   :  { %1916 = vmatmul.mubr.bf16.vlgmr.msra.gmra.mrb[8].mxu0 %v7413_v26  ;;  %1957 = vmatmul.mubr.bf16.vlgmr.msra.gmra.mrb[8].mxu1 %v7413_v26  ;;  %v6009_v28 = vcombine.high %v250_v22, %v254_v23  ;;  %v6008_v35 = vcombine.low %v250_v22, %v254_v23 }
 0x170   :  { %1966 = vmatpush1.bf16.msra.mxu0 %v5942_v30  ;;  %2007 = vmatpush1.bf16.msra.mxu1 %v5944_v31  ;;  %v257_v30 = vld [vmem:[#allocation8 + $0x250] sm:$0xff] }
 0x171   :  { %1967 = vmatprep.subr.bf16.mxu0 %v5951_v32  ;;  %2008 = vmatprep.subr.bf16.mxu1 %v5953_v33  ;;  %v261_v31 = vld [vmem:[#allocation8 + $0x270] sm:$0xff]  ;;  %v258_v32 = vld [vmem:[#allocation8 + $0x258] sm:$0xff] }
 0x172   :  { %1997 = vmatprep.mubr.bf16.mxu0 %v7407_v29  ;;  %2038 = vmatprep.mubr.bf16.mxu1 %v7407_v29  ;;  %v262_v33 = vld [vmem:[#allocation8 + $0x278] sm:$0xff]  ;;  %v6015_v36 = vcombine.high %v257_v30, %v261_v31  ;;  %v6014_v42 = vcombine.low %v257_v30, %v261_v31 }
 0x173   :  { %v6017_v37 = vcombine.high %v258_v32, %v262_v33  ;;  %v6016_v43 = vcombine.low %v258_v32, %v262_v33  ;;  %v6629_v30 = vld [vmem:[#allocation12 + $0x2c] ss:$16 sps:$4 sm:$0xff]   ;;  %v6627_v31 = vld [vmem:[#allocation12 + $0x28] ss:$16 sps:$4 sm:$0xff]  }
 0x174   :  { %1968 = vmatpush1.bf16.msra.mxu0 %v5950_v38  ;;  %2009 = vmatpush1.bf16.msra.mxu1 %v5952_v39  ;;  %v265_v38 = vld [vmem:[#allocation8 + $0x290] sm:$0xff]  ;;  %v6632_v32 = vld [vmem:[#allocation12 + $0x4c] ss:$16 sps:$4 sm:$0xff]   ;;  %v6630_v33 = vld [vmem:[#allocation12 + $0x48] ss:$16 sps:$4 sm:$0xff]  }
 0x175   :  { %1969 = vmatprep.subr.bf16.mxu0 %v5959_v40  ;;  %2010 = vmatprep.subr.bf16.mxu1 %v5961_v41  ;;  %v269_v39 = vld [vmem:[#allocation8 + $0x2b0] sm:$0xff]  ;;  %v266_v40 = vld [vmem:[#allocation8 + $0x298] sm:$0xff] }
 0x176   :  { %v270_v41 = vld [vmem:[#allocation8 + $0x2b8] sm:$0xff]  ;;  %v6023_v44 = vcombine.high %v265_v38, %v269_v39  ;;  %v6022_v50 = vcombine.low %v265_v38, %v269_v39 }
 0x177   :  { %v6025_v45 = vcombine.high %v266_v40, %v270_v41  ;;  %v6024_v51 = vcombine.low %v266_v40, %v270_v41  ;;  %v6641_v38 = vld [vmem:[#allocation12 + $0xac] ss:$16 sps:$4 sm:$0xff]   ;;  %v6639_v39 = vld [vmem:[#allocation12 + $0xa8] ss:$16 sps:$4 sm:$0xff]  }
 0x178   :  { %1970 = vmatpush1.bf16.msra.mxu0 %v5958_v46  ;;  %2011 = vmatpush1.bf16.msra.mxu1 %v5960_v47  ;;  %v273_v46 = vld [vmem:[#allocation8 + $0x2d0] sm:$0xff] }
 0x179   :  { %1971 = vmatprep.subr.bf16.mxu0 %v5967_v48  ;;  %2012 = vmatprep.subr.bf16.mxu1 %v5969_v49  ;;  %v277_v47 = vld [vmem:[#allocation8 + $0x2f0] sm:$0xff]  ;;  %v274_v48 = vld [vmem:[#allocation8 + $0x2d8] sm:$0xff] }
 0x17a   :  { %v278_v49 = vld [vmem:[#allocation8 + $0x2f8] sm:$0xff]  ;;  %v6031_v52 = vcombine.high %v273_v46, %v277_v47  ;;  %v6030_v59 = vcombine.low %v273_v46, %v277_v47 }
 0x17b   :  { %v6033_v53 = vcombine.high %v274_v48, %v278_v49  ;;  %v6032_v60 = vcombine.low %v274_v48, %v278_v49  ;;  %v6642_v47 = vld [vmem:[#allocation12 + $0xc8] ss:$16 sps:$4 sm:$0xff]   ;;  %v6647_v49 = vld [vmem:[#allocation12 + $0xec] ss:$16 sps:$4 sm:$0xff]  }
 0x17c   :  { %1972 = vmatpush1.bf16.msra.mxu0 %v5966_v54  ;;  %2013 = vmatpush1.bf16.msra.mxu1 %v5968_v55  ;;  %v281_v54 = vld [vmem:[#allocation8 + $0x310] sm:$0xff] }
 0x17d   :  { %1973 = vmatprep.subr.bf16.mxu0 %v5975_v56  ;;  %2014 = vmatprep.subr.bf16.mxu1 %v5977_v57  ;;  %v285_v55 = vld [vmem:[#allocation8 + $0x330] sm:$0xff]  ;;  %v282_v56 = vld [vmem:[#allocation8 + $0x318] sm:$0xff] }
 0x17e   :  { %v286_v57 = vld [vmem:[#allocation8 + $0x338] sm:$0xff]  ;;  %v6039_v61 = vcombine.high %v281_v54, %v285_v55  ;;  %v6038_v3 = vcombine.low %v281_v54, %v285_v55 }
 0x17f   :  { %v6041_v62 = vcombine.high %v282_v56, %v286_v57  ;;  %v6040_v4 = vcombine.low %v282_v56, %v286_v57  ;;  %v6651_v54 = vld [vmem:[#allocation12 + $0x128] ss:$16 sps:$4 sm:$0xff]   ;;  %v6656_v55 = vld [vmem:[#allocation12 + $0x14c] ss:$16 sps:$4 sm:$0xff]   ;;  %v6672_v56 = vld [vmem:[#allocation12] ss:$16 sps:$4 sm:$0xff]  }
 0x180   :  { %1974 = vmatpush1.bf16.msra.mxu0 %v5974_v63  ;;  %2015 = vmatpush1.bf16.msra.mxu1 %v5976_v0  ;;  %v289_v63 = vld [vmem:[#allocation8 + $0x350] sm:$0xff] }
 0x181   :  { %1975 = vmatprep.subr.bf16.mxu0 %v5983_v1  ;;  %2016 = vmatprep.subr.bf16.mxu1 %v5985_v2  ;;  %v293_v0 = vld [vmem:[#allocation8 + $0x370] sm:$0xff]  ;;  %v290_v1 = vld [vmem:[#allocation8 + $0x358] sm:$0xff] }
 0x182   :  { %v294_v2 = vld [vmem:[#allocation8 + $0x378] sm:$0xff]  ;;  %v6047_v5 = vcombine.high %v289_v63, %v293_v0  ;;  %v6046_v11 = vcombine.low %v289_v63, %v293_v0  ;;  %v6674_v57 = vld [vmem:[#allocation12 + $0x4] ss:$16 sps:$4 sm:$0xff]  }
 0x183   :  { %v6049_v6 = vcombine.high %v290_v1, %v294_v2  ;;  %v6048_v12 = vcombine.low %v290_v1, %v294_v2  ;;  %v6686_v63 = vld [vmem:[#allocation12 + $0x44] ss:$16 sps:$4 sm:$0xff]   ;;  %v6657_v0 = vld [vmem:[#allocation12 + $0x168] ss:$16 sps:$4 sm:$0xff]   ;;  %v6662_v1 = vld [vmem:[#allocation12 + $0x18c] ss:$16 sps:$4 sm:$0xff]  }
 0x184   :  { %1976 = vmatpush1.bf16.msra.mxu0 %v5982_v7  ;;  %2017 = vmatpush1.bf16.msra.mxu1 %v5984_v8  ;;  %v297_v7 = vld [vmem:[#allocation8 + $0x390] sm:$0xff] }
 0x185   :  { %1977 = vmatprep.subr.bf16.mxu0 %v5991_v9  ;;  %2018 = vmatprep.subr.bf16.mxu1 %v5993_v10  ;;  %v301_v8 = vld [vmem:[#allocation8 + $0x3b0] sm:$0xff]  ;;  %v298_v9 = vld [vmem:[#allocation8 + $0x398] sm:$0xff] }
 0x186   :  { %v302_v10 = vld [vmem:[#allocation8 + $0x3b8] sm:$0xff]  ;;  %v6055_v14 = vcombine.high %v297_v7, %v301_v8  ;;  %v6054_v20 = vcombine.low %v297_v7, %v301_v8  ;;  %v6684_v2 = vld [vmem:[#allocation12 + $0x40] ss:$16 sps:$4 sm:$0xff]   ;;  %v6698_v7 = vld [vmem:[#allocation12 + $0x84] ss:$16 sps:$4 sm:$0xff]  }
 0x187   :  { %v6057_v15 = vcombine.high %v298_v9, %v302_v10  ;;  %v6056_v21 = vcombine.low %v298_v9, %v302_v10  ;;  %v6663_v8 = vld [vmem:[#allocation12 + $0x1a8] ss:$16 sps:$4 sm:$0xff]   ;;  %v6668_v9 = vld [vmem:[#allocation12 + $0x1cc] ss:$16 sps:$4 sm:$0xff]   ;;  %v6696_v10 = vld [vmem:[#allocation12 + $0x80] ss:$16 sps:$4 sm:$0xff]  }
 0x188   :  { %1978 = vmatpush1.bf16.msra.mxu0 %v5990_v16  ;;  %2019 = vmatpush1.bf16.msra.mxu1 %v5992_v17  ;;  %v305_v16 = vld [vmem:[#allocation8 + $0x3d0] sm:$0xff] }
 0x189   :  { %1979 = vmatprep.subr.bf16.mxu0 %v5999_v18  ;;  %2020 = vmatprep.subr.bf16.mxu1 %v6001_v19  ;;  %v309_v17 = vld [vmem:[#allocation8 + $0x3f0] sm:$0xff]  ;;  %v306_v18 = vld [vmem:[#allocation8 + $0x3d8] sm:$0xff] }
 0x18a   :  { %v310_v19 = vld [vmem:[#allocation8 + $0x3f8] sm:$0xff]  ;;  %v6063_v22 = vcombine.high %v305_v16, %v309_v17 }
 0x18b   :  { %v6065_v23 = vcombine.high %v306_v18, %v310_v19 }
 0x18c   :  { %1980 = vmatpush1.bf16.msra.mxu0 %v5998_v24  ;;  %2021 = vmatpush1.bf16.msra.mxu1 %v6000_v25  ;;  %v6062_v24 = vcombine.low %v305_v16, %v309_v17  ;;  %v6064_v25 = vcombine.low %v306_v18, %v310_v19  ;;  %v6710_v16 = vld [vmem:[#allocation12 + $0xc4] ss:$16 sps:$4 sm:$0xff]   ;;  %v6669_v17 = vld [vmem:[#allocation12 + $0x1e8] ss:$16 sps:$4 sm:$0xff]   ;;  %v6677_v18 = vld [vmem:[#allocation11 + $0xc] ss:$16 sps:$4 sm:$0xff]  }
 0x18d   :  { %1981 = vmatprep.subr.bf16.mxu0 %v6007_v27  ;;  %2022 = vmatprep.subr.bf16.mxu1 %v6009_v28  ;;  %v6626_v27 = vld [vmem:[#allocation12 + $0xc] ss:$16 sps:$4 sm:$0xff]   ;;  %v6624_v28 = vld [vmem:[#allocation12 + $0x8] ss:$16 sps:$4 sm:$0xff]   ;;  %v6708_v19 = vld [vmem:[#allocation12 + $0xc0] ss:$16 sps:$4 sm:$0xff]  }
 0x190   :  { %1982 = vmatpush1.bf16.msra.mxu0 %v6006_v34  ;;  %2023 = vmatpush1.bf16.msra.mxu1 %v6008_v35  ;;  %v6635_v34 = vld [vmem:[#allocation12 + $0x6c] ss:$16 sps:$4 sm:$0xff]   ;;  %v6633_v35 = vld [vmem:[#allocation12 + $0x68] ss:$16 sps:$4 sm:$0xff]  }
 0x191   :  { %1983 = vmatprep.subr.bf16.mxu0 %v6015_v36  ;;  %2024 = vmatprep.subr.bf16.mxu1 %v6017_v37  ;;  %v6638_v36 = vld [vmem:[#allocation12 + $0x8c] ss:$16 sps:$4 sm:$0xff]   ;;  %v6636_v37 = vld [vmem:[#allocation12 + $0x88] ss:$16 sps:$4 sm:$0xff]  }
 0x194   :  { %1984 = vmatpush1.bf16.msra.mxu0 %v6014_v42  ;;  %2025 = vmatpush1.bf16.msra.mxu1 %v6016_v43 }
 0x195   :  { %1985 = vmatprep.subr.bf16.mxu0 %v6023_v44  ;;  %2026 = vmatprep.subr.bf16.mxu1 %v6025_v45 }
 0x198   :  { %1986 = vmatpush1.bf16.msra.mxu0 %v6022_v50  ;;  %2027 = vmatpush1.bf16.msra.mxu1 %v6024_v51  ;;  %v6645_v50 = vld [vmem:[#allocation12 + $0xe8] ss:$16 sps:$4 sm:$0xff]   ;;  %v6650_v51 = vld [vmem:[#allocation12 + $0x10c] ss:$16 sps:$4 sm:$0xff]  }
 0x199   :  { %1987 = vmatprep.subr.bf16.mxu0 %v6031_v52  ;;  %2028 = vmatprep.subr.bf16.mxu1 %v6033_v53  ;;  %v6648_v52 = vld [vmem:[#allocation12 + $0x108] ss:$16 sps:$4 sm:$0xff]   ;;  %v6653_v53 = vld [vmem:[#allocation12 + $0x12c] ss:$16 sps:$4 sm:$0xff]  }
 0x19c   :  { %1988 = vmatpush1.bf16.msra.mxu0 %v6030_v59  ;;  %2029 = vmatpush1.bf16.msra.mxu1 %v6032_v60  ;;  %v6654_v59 = vld [vmem:[#allocation12 + $0x148] ss:$16 sps:$4 sm:$0xff]   ;;  %v6680_v60 = vld [vmem:[#allocation12 + $0x24] ss:$16 sps:$4 sm:$0xff]  }
 0x19d   :  { %1989 = vmatprep.subr.bf16.mxu0 %v6039_v61  ;;  %2030 = vmatprep.subr.bf16.mxu1 %v6041_v62  ;;  %v6659_v61 = vld [vmem:[#allocation12 + $0x16c] ss:$16 sps:$4 sm:$0xff]   ;;  %v6678_v62 = vld [vmem:[#allocation12 + $0x20] ss:$16 sps:$4 sm:$0xff]  }
 0x1a0   :  { %1990 = vmatpush1.bf16.msra.mxu0 %v6038_v3  ;;  %2031 = vmatpush1.bf16.msra.mxu1 %v6040_v4  ;;  %v6692_v3 = vld [vmem:[#allocation12 + $0x64] ss:$16 sps:$4 sm:$0xff]   ;;  %v6660_v4 = vld [vmem:[#allocation12 + $0x188] ss:$16 sps:$4 sm:$0xff]  }
 0x1a1   :  { %1991 = vmatprep.subr.bf16.mxu0 %v6047_v5  ;;  %2032 = vmatprep.subr.bf16.mxu1 %v6049_v6  ;;  %v6665_v5 = vld [vmem:[#allocation12 + $0x1ac] ss:$16 sps:$4 sm:$0xff]   ;;  %v6690_v6 = vld [vmem:[#allocation12 + $0x60] ss:$16 sps:$4 sm:$0xff]  }
 0x1a4   :  { %1992 = vmatpush1.bf16.msra.mxu0 %v6046_v11  ;;  %2033 = vmatpush1.bf16.msra.mxu1 %v6048_v12  ;;  %v6704_v11 = vld [vmem:[#allocation12 + $0xa4] ss:$16 sps:$4 sm:$0xff]   ;;  %v6666_v12 = vld [vmem:[#allocation12 + $0x1c8] ss:$16 sps:$4 sm:$0xff]  }
 0x1a5   :  { %1993 = vmatprep.subr.bf16.mxu0 %v6055_v14  ;;  %2034 = vmatprep.subr.bf16.mxu1 %v6057_v15  ;;  %v6671_v14 = vld [vmem:[#allocation12 + $0x1ec] ss:$16 sps:$4 sm:$0xff]   ;;  %v6702_v15 = vld [vmem:[#allocation12 + $0xa0] ss:$16 sps:$4 sm:$0xff]  }
 0x1a8   :  { %1994 = vmatpush1.bf16.msra.mxu0 %v6054_v20  ;;  %2035 = vmatpush1.bf16.msra.mxu1 %v6056_v21  ;;  %v6675_v20 = vld [vmem:[#allocation11 + $0x8] ss:$16 sps:$4 sm:$0xff]   ;;  %v6683_v21 = vld [vmem:[#allocation11 + $0x2c] ss:$16 sps:$4 sm:$0xff]  }
 0x1a9   :  { %1995 = vmatprep.subr.bf16.mxu0 %v6063_v22  ;;  %2036 = vmatprep.subr.bf16.mxu1 %v6065_v23  ;;  %v6681_v22 = vld [vmem:[#allocation11 + $0x28] ss:$16 sps:$4 sm:$0xff]   ;;  %v6689_v23 = vld [vmem:[#allocation11 + $0x4c] ss:$16 sps:$4 sm:$0xff]  }
 0x1ac   :  { %1996 = vmatpush1.bf16.msra.mxu0 %v6062_v24  ;;  %2037 = vmatpush1.bf16.msra.mxu1 %v6064_v25  ;;  %v6687_v24 = vld [vmem:[#allocation11 + $0x48] ss:$16 sps:$4 sm:$0xff]   ;;  %v6695_v25 = vld [vmem:[#allocation11 + $0x6c] ss:$16 sps:$4 sm:$0xff]  }
 0x1ad   :  { %2668 = vmatprep.subr.bf16.mxu1 %v6626_v27  ;;  %2627 = vmatprep.subr.bf16.mxu0 %v6674_v57  ;;  %v6693_v27 = vld [vmem:[#allocation11 + $0x68] ss:$16 sps:$4 sm:$0xff]   ;;  %v6731_v57 = vld [vmem:[#allocation11 + $0x12c] ss:$16 sps:$4 sm:$0xff]  }
 0x1af   :  { %1998 = vmatmul.mubr.bf16.vlgmr.msra.gmra.mrb[12].mxu0 %v7413_v26  ;;  %2039 = vmatmul.mubr.bf16.vlgmr.msra.gmra.mrb[12].mxu1 %v7413_v26 }
 0x1b0   :  { %2659 = vmatprep.mubr.bf16.mxu0 %v7397_v58  ;;  %2669 = vmatpush1.bf16.msra.mxu1 %v6624_v28  ;;  %v6701_v28 = vld [vmem:[#allocation11 + $0x8c] ss:$16 sps:$4 sm:$0xff]  }
 0x1b1   :  { %2700 = vmatprep.mubr.bf16.mxu1 %v7397_v58  ;;  %2670 = vmatprep.subr.bf16.mxu1 %v6629_v30  ;;  %v6644_v58 = vld [vmem:[#allocation12 + $0xcc] ss:$16 sps:$4 sm:$0xff]   ;;  %v6699_v30 = vld [vmem:[#allocation11 + $0x88] ss:$16 sps:$4 sm:$0xff]  }
 0x1b2   :  { %2628 = vmatpush1.bf16.msra.mxu0 %v6672_v56  ;;  %v6723_v56 = vld [vmem:[#allocation11 + $0x108] ss:$16 sps:$4 sm:$0xff]  }
 0x1b3   :  { %2629 = vmatprep.subr.bf16.mxu0 %v6680_v60  ;;  %v6729_v60 = vld [vmem:[#allocation11 + $0x128] ss:$16 sps:$4 sm:$0xff]  }
 0x1b4   :  { %2671 = vmatpush1.bf16.msra.mxu1 %v6627_v31  ;;  %v6707_v31 = vld [vmem:[#allocation11 + $0xac] ss:$16 sps:$4 sm:$0xff]  }
 0x1b5   :  { %2672 = vmatprep.subr.bf16.mxu1 %v6632_v32  ;;  %v6705_v32 = vld [vmem:[#allocation11 + $0xa8] ss:$16 sps:$4 sm:$0xff]  }
 0x1b6   :  { %2630 = vmatpush1.bf16.msra.mxu0 %v6678_v62  ;;  %v6738_v62 = vld [vmem:[#allocation12 + $0x160] ss:$16 sps:$4 sm:$0xff]  }
 0x1b7   :  { %2631 = vmatprep.subr.bf16.mxu0 %v6686_v63  ;;  %v6740_v63 = vld [vmem:[#allocation12 + $0x164] ss:$16 sps:$4 sm:$0xff]  }
 0x1b8   :  { %2673 = vmatpush1.bf16.msra.mxu1 %v6630_v33 }
 0x1b9   :  { %2674 = vmatprep.subr.bf16.mxu1 %v6635_v34  ;;  %v6713_v34 = vld [vmem:[#allocation11 + $0xcc] ss:$16 sps:$4 sm:$0xff]  }
 0x1ba   :  { %2632 = vmatpush1.bf16.msra.mxu0 %v6684_v2  ;;  %v6743_v2 = vld [vmem:[#allocation11 + $0x16c] ss:$16 sps:$4 sm:$0xff]  }
 0x1bb   :  { %2633 = vmatprep.subr.bf16.mxu0 %v6692_v3  ;;  %v6744_v3 = vld [vmem:[#allocation12 + $0x180] ss:$16 sps:$4 sm:$0xff]  }
 0x1bc   :  { %2675 = vmatpush1.bf16.msra.mxu1 %v6633_v35 }
 0x1bd   :  { %2676 = vmatprep.subr.bf16.mxu1 %v6638_v36 }
 0x1be   :  { %2634 = vmatpush1.bf16.msra.mxu0 %v6690_v6  ;;  %v6749_v6 = vld [vmem:[#allocation11 + $0x18c] ss:$16 sps:$4 sm:$0xff]  }
 0x1bf   :  { %2635 = vmatprep.subr.bf16.mxu0 %v6698_v7  ;;  %v6750_v7 = vld [vmem:[#allocation12 + $0x1a0] ss:$16 sps:$4 sm:$0xff]  }
 0x1c0   :  { %2677 = vmatpush1.bf16.msra.mxu1 %v6636_v37  ;;  %v6716_v37 = vld [vmem:[#allocation12 + $0xe4] ss:$16 sps:$4 sm:$0xff]  }
 0x1c1   :  { %2678 = vmatprep.subr.bf16.mxu1 %v6641_v38 }
 0x1c2   :  { %v7423_v40 = vpop.f32.mrb[0].mxu0  ;;  %v7427_v42 = vpop.f32.mrb[0].mxu1  ;;  %2636 = vmatpush1.bf16.msra.mxu0 %v6696_v10  ;;  %v6755_v10 = vld [vmem:[#allocation11 + $0x1ac] ss:$16 sps:$4 sm:$0xff]  }
 0x1c3   :  { %v7425_v41 = vpop.f32.mrb[1].mxu0  ;;  %v7429_v44 = vpop.f32.mrb[1].mxu1  ;;  %2637 = vmatprep.subr.bf16.mxu0 %v6704_v11  ;;  %v6756_v11 = vld [vmem:[#allocation12 + $0x1c0] ss:$16 sps:$4 sm:$0xff]  }
 0x1c4   :  { %v1117_v43 = vpop.f32.mrb[2].mxu0  ;;  %v1158_v46 = vpop.f32.mrb[2].mxu1  ;;  %2679 = vmatpush1.bf16.msra.mxu1 %v6639_v39 }
 0x1c5   :  { %v1118_v45 = vpop.f32.mrb[3].mxu0  ;;  %v1159_v48 = vpop.f32.mrb[3].mxu1  ;;  %2680 = vmatprep.subr.bf16.mxu1 %v6644_v58  ;;  %v6714_v58 = vld [vmem:[#allocation12 + $0xe0] ss:$16 sps:$4 sm:$0xff]   ;;  %v6711_v46 = vld [vmem:[#allocation11 + $0xc8] ss:$16 sps:$4 sm:$0xff]  }
 0x1c6   :  { %2638 = vmatpush1.bf16.msra.mxu0 %v6702_v15  ;;  %v6719_v48 = vld [vmem:[#allocation11 + $0xec] ss:$16 sps:$4 sm:$0xff]  }
 0x1c7   :  { %2639 = vmatprep.subr.bf16.mxu0 %v6710_v16  ;;  %v6761_v15 = vld [vmem:[#allocation11 + $0x1cc] ss:$16 sps:$4 sm:$0xff]   ;;  %v6762_v16 = vld [vmem:[#allocation12 + $0x1e0] ss:$16 sps:$4 sm:$0xff]  }
 0x1c8   :  { %2681 = vmatpush1.bf16.msra.mxu1 %v6642_v47 }
 0x1c9   :  { %2682 = vmatprep.subr.bf16.mxu1 %v6647_v49  ;;  %v6722_v49 = vld [vmem:[#allocation12 + $0x104] ss:$16 sps:$4 sm:$0xff]  }
 0x1ca   :  { %2640 = vmatpush1.bf16.msra.mxu0 %v6708_v19  ;;  %v6767_v19 = vld [vmem:[#allocation11 + $0x1ec] ss:$16 sps:$4 sm:$0xff]  }
 0x1cb   :  { %2641 = vmatprep.subr.bf16.mxu0 %v6716_v37  ;;  %v6788_v37 = vld [vmem:[#allocation11 + $0xc4] ss:$16 sps:$4 sm:$0xff]  }
 0x1cc   :  { %2683 = vmatpush1.bf16.msra.mxu1 %v6645_v50  ;;  %v6720_v50 = vld [vmem:[#allocation12 + $0x100] ss:$16 sps:$4 sm:$0xff]  }
 0x1cd   :  { %2684 = vmatprep.subr.bf16.mxu1 %v6650_v51  ;;  %v6717_v51 = vld [vmem:[#allocation11 + $0xe8] ss:$16 sps:$4 sm:$0xff]  }
 0x1ce   :  { %2642 = vmatpush1.bf16.msra.mxu0 %v6714_v58  ;;  %v7452_v58 = vld [vmem:[%s7632_s4] sm:$0xff] }
 0x1cf   :  { %2643 = vmatprep.subr.bf16.mxu0 %v6722_v49 }
 0x1d0   :  { %2685 = vmatpush1.bf16.msra.mxu1 %v6648_v52  ;;  %v6725_v52 = vld [vmem:[#allocation11 + $0x10c] ss:$16 sps:$4 sm:$0xff]  }
 0x1d1   :  { %2686 = vmatprep.subr.bf16.mxu1 %v6653_v53  ;;  %v6726_v53 = vld [vmem:[#allocation12 + $0x120] ss:$16 sps:$4 sm:$0xff]  }
 0x1d2   :  { %2644 = vmatpush1.bf16.msra.mxu0 %v6720_v50 }
 0x1d4   :  { %2687 = vmatpush1.bf16.msra.mxu1 %v6651_v54  ;;  %v6728_v54 = vld [vmem:[#allocation12 + $0x124] ss:$16 sps:$4 sm:$0xff]  }
 0x1d5   :  { %2688 = vmatprep.subr.bf16.mxu1 %v6656_v55  ;;  %2645 = vmatprep.subr.bf16.mxu0 %v6728_v54  ;;  %v6734_v55 = vld [vmem:[#allocation12 + $0x144] ss:$16 sps:$4 sm:$0xff]   ;;  %v6789_v54 = vld [vmem:[#allocation11 + $0xe0] ss:$16 sps:$4 sm:$0xff]  }
 0x1d6   :  { %2646 = vmatpush1.bf16.msra.mxu0 %v6726_v53 }
 0x1d7   :  { %2647 = vmatprep.subr.bf16.mxu0 %v6734_v55 }
 0x1d8   :  { %2689 = vmatpush1.bf16.msra.mxu1 %v6654_v59  ;;  %v6732_v59 = vld [vmem:[#allocation12 + $0x140] ss:$16 sps:$4 sm:$0xff]  }
 0x1d9   :  { %2690 = vmatprep.subr.bf16.mxu1 %v6659_v61  ;;  %v6737_v61 = vld [vmem:[#allocation11 + $0x14c] ss:$16 sps:$4 sm:$0xff]  }
 0x1da   :  { %2648 = vmatpush1.bf16.msra.mxu0 %v6732_v59 }
 0x1db   :  { %2649 = vmatprep.subr.bf16.mxu0 %v6740_v63 }
 0x1dc   :  { %2691 = vmatpush1.bf16.msra.mxu1 %v6657_v0  ;;  %v6746_v0 = vld [vmem:[#allocation12 + $0x184] ss:$16 sps:$4 sm:$0xff]  }
 0x1dd   :  { %2692 = vmatprep.subr.bf16.mxu1 %v6662_v1  ;;  %v6735_v1 = vld [vmem:[#allocation11 + $0x148] ss:$16 sps:$4 sm:$0xff]  }
 0x1de   :  { %2650 = vmatpush1.bf16.msra.mxu0 %v6738_v62 }
 0x1df   :  { %2651 = vmatprep.subr.bf16.mxu0 %v6746_v0 }
 0x1e0   :  { %2693 = vmatpush1.bf16.msra.mxu1 %v6660_v4  ;;  %v6752_v4 = vld [vmem:[#allocation12 + $0x1a4] ss:$16 sps:$4 sm:$0xff]  }
 0x1e1   :  { %2694 = vmatprep.subr.bf16.mxu1 %v6665_v5  ;;  %v6741_v5 = vld [vmem:[#allocation11 + $0x168] ss:$16 sps:$4 sm:$0xff]  }
 0x1e2   :  { %2652 = vmatpush1.bf16.msra.mxu0 %v6744_v3 }
 0x1e3   :  { %2653 = vmatprep.subr.bf16.mxu0 %v6752_v4 }
 0x1e4   :  { %2695 = vmatpush1.bf16.msra.mxu1 %v6663_v8  ;;  %v6758_v8 = vld [vmem:[#allocation12 + $0x1c4] ss:$16 sps:$4 sm:$0xff]  }
 0x1e5   :  { %2696 = vmatprep.subr.bf16.mxu1 %v6668_v9  ;;  %v6747_v9 = vld [vmem:[#allocation11 + $0x188] ss:$16 sps:$4 sm:$0xff]  }
 0x1e6   :  { %2654 = vmatpush1.bf16.msra.mxu0 %v6750_v7 }
 0x1e7   :  { %2655 = vmatprep.subr.bf16.mxu0 %v6758_v8 }
 0x1e8   :  { %2697 = vmatpush1.bf16.msra.mxu1 %v6666_v12  ;;  %v6764_v12 = vld [vmem:[#allocation12 + $0x1e4] ss:$16 sps:$4 sm:$0xff]  }
 0x1e9   :  { %2698 = vmatprep.subr.bf16.mxu1 %v6671_v14  ;;  %v6753_v14 = vld [vmem:[#allocation11 + $0x1a8] ss:$16 sps:$4 sm:$0xff]  }
 0x1ea   :  { %2656 = vmatpush1.bf16.msra.mxu0 %v6756_v11 }
 0x1eb   :  { %2657 = vmatprep.subr.bf16.mxu0 %v6764_v12 }
 0x1ec   :  { %2699 = vmatpush1.bf16.msra.mxu1 %v6669_v17  ;;  %v6770_v17 = vld [vmem:[#allocation11 + $0x4] ss:$16 sps:$4 sm:$0xff]  }
 0x1ed   :  { %3070 = vmatprep.subr.bf16.mxu1 %v6677_v18  ;;  %v6759_v18 = vld [vmem:[#allocation11 + $0x1c8] ss:$16 sps:$4 sm:$0xff]  }
 0x1ee   :  { %2658 = vmatpush1.bf16.msra.mxu0 %v6762_v16 }
 0x1ef   :  { %2701 = vmatmul.mubr.bf16.vlgmr.msra.gmra.mrb[16].mxu1 %v7401_v13  ;;  %3029 = vmatprep.subr.bf16.mxu0 %v6770_v17 }
 0x1f0   :  { %3071 = vmatpush1.bf16.msra.mxu1 %v6675_v20  ;;  %3102 = vmatprep.mubr.bf16.mxu1 %v7407_v29  ;;  %v6768_v20 = vld [vmem:[#allocation11] ss:$16 sps:$4 sm:$0xff]  }
 0x1f1   :  { %3072 = vmatprep.subr.bf16.mxu1 %v6683_v21  ;;  %v6773_v21 = vld [vmem:[#allocation11 + $0x24] ss:$16 sps:$4 sm:$0xff]   ;;  %2660 = vmatmul.mubr.bf16.vlgmr.msra.gmra.mrb[16].mxu0 %v7401_v13  ;;  %v6780_v13 = vld [vmem:[#allocation11 + $0x80] ss:$16 sps:$4 sm:$0xff]  }
 0x1f2   :  { %3030 = vmatpush1.bf16.msra.mxu0 %v6768_v20  ;;  %3061 = vmatprep.mubr.bf16.mxu0 %v7407_v29  ;;  %v6783_v29 = vld [vmem:[#allocation11 + $0xa0] ss:$16 sps:$4 sm:$0xff]  }
 0x1f3   :  { %3031 = vmatprep.subr.bf16.mxu0 %v6773_v21 }
 0x1f4   :  { %3073 = vmatpush1.bf16.msra.mxu1 %v6681_v22  ;;  %v6765_v22 = vld [vmem:[#allocation11 + $0x1e8] ss:$16 sps:$4 sm:$0xff]  }
 0x1f5   :  { %3074 = vmatprep.subr.bf16.mxu1 %v6689_v23  ;;  %v6771_v23 = vld [vmem:[#allocation11 + $0x20] ss:$16 sps:$4 sm:$0xff]  }
 0x1f6   :  { %3032 = vmatpush1.bf16.msra.mxu0 %v6771_v23 }
 0x1f8   :  { %3075 = vmatpush1.bf16.msra.mxu1 %v6687_v24  ;;  %v6776_v24 = vld [vmem:[#allocation11 + $0x44] ss:$16 sps:$4 sm:$0xff]  }
 0x1f9   :  { %3076 = vmatprep.subr.bf16.mxu1 %v6695_v25  ;;  %v6774_v25 = vld [vmem:[#allocation11 + $0x40] ss:$16 sps:$4 sm:$0xff]   ;;  %3033 = vmatprep.subr.bf16.mxu0 %v6776_v24 }
 0x1fa   :  { %3034 = vmatpush1.bf16.msra.mxu0 %v6774_v25  ;;  %v6798_v24 = vld [vmem:[#allocation11 + $0x140] ss:$16 sps:$4 sm:$0xff]   ;;  %v6803_v25 = vld [vmem:[#allocation11 + $0x164] ss:$16 sps:$4 sm:$0xff]  }
 0x1fc   :  { %3077 = vmatpush1.bf16.msra.mxu1 %v6693_v27  ;;  %v6779_v27 = vld [vmem:[#allocation11 + $0x64] ss:$16 sps:$4 sm:$0xff]  }
 0x1fd   :  { %3078 = vmatprep.subr.bf16.mxu1 %v6701_v28  ;;  %v6777_v28 = vld [vmem:[#allocation11 + $0x60] ss:$16 sps:$4 sm:$0xff]   ;;  %3035 = vmatprep.subr.bf16.mxu0 %v6779_v27 }
 0x1fe   :  { %3036 = vmatpush1.bf16.msra.mxu0 %v6777_v28  ;;  %v6801_v28 = vld [vmem:[#allocation11 + $0x160] ss:$16 sps:$4 sm:$0xff]  }
 0x200   :  { %3079 = vmatpush1.bf16.msra.mxu1 %v6699_v30  ;;  %v6782_v30 = vld [vmem:[#allocation11 + $0x84] ss:$16 sps:$4 sm:$0xff]  }
 0x201   :  { %3080 = vmatprep.subr.bf16.mxu1 %v6707_v31  ;;  %v2049_v31 = vlaneseq  ;;  %3037 = vmatprep.subr.bf16.mxu0 %v6782_v30  ;;  %v6806_v30 = vld [vmem:[#allocation11 + $0x184] ss:$16 sps:$4 sm:$0xff]  }
 0x202   :  { %v7433_v33 = vpop.f32.mrb[4].mxu0  ;;  %v7437_v36 = vpop.f32.mrb[4].mxu1  ;;  %3038 = vmatpush1.bf16.msra.mxu0 %v6780_v13  ;;  %v6809_v13 = vld [vmem:[#allocation11 + $0x1a4] ss:$16 sps:$4 sm:$0xff]  }
 0x203   :  { %v7435_v35 = vpop.f32.mrb[5].mxu0  ;;  %v7439_v39 = vpop.f32.mrb[5].mxu1 }
 0x204   :  { %v1199_v38 = vpop.f32.mrb[6].mxu0  ;;  %v1240_v45 = vpop.f32.mrb[6].mxu1  ;;  %3081 = vmatpush1.bf16.msra.mxu1 %v6705_v32  ;;  %v6785_v32 = vld [vmem:[#allocation11 + $0xa4] ss:$16 sps:$4 sm:$0xff]  }
 0x205   :  { %v1200_v43 = vpop.f32.mrb[7].mxu0  ;;  %v1241_v47 = vpop.f32.mrb[7].mxu1  ;;  %3082 = vmatprep.subr.bf16.mxu1 %v6713_v34  ;;  %v7444_v34 = vshrl.u32 %v2049_v31, 7  ;;  %3039 = vmatprep.subr.bf16.mxu0 %v6785_v32  ;;  %v6804_v31 = vld [vmem:[#allocation11 + $0x180] ss:$16 sps:$4 sm:$0xff]  }
 0x206   :  { %3040 = vmatpush1.bf16.msra.mxu0 %v6783_v29  ;;  %v6807_v32 = vld [vmem:[#allocation11 + $0x1a0] ss:$16 sps:$4 sm:$0xff]   ;;  %v6812_v29 = vld [vmem:[#allocation11 + $0x1c4] ss:$16 sps:$4 sm:$0xff]  }
 0x207   :  { %v7447_v38 = vsub.s32 0, %v7444_v34  ;;  %v7455_v43 = vsub.s32 2, %v7444_v34  ;;  %v7458_v45 = vsub.s32 1, %v7444_v34  ;;  %v7461_v47 = vsub.s32 3, %v7444_v34  ;;  %3041 = vmatprep.subr.bf16.mxu0 %v6788_v37  ;;  %v6810_v37 = vld [vmem:[#allocation11 + $0x1c0] ss:$16 sps:$4 sm:$0xff]  }
 0x208   :  { %3083 = vmatpush1.bf16.msra.mxu1 %v6711_v46  ;;  %v6786_v46 = vld [vmem:[#allocation11 + $0xc0] ss:$16 sps:$4 sm:$0xff]  }
 0x209   :  { %3084 = vmatprep.subr.bf16.mxu1 %v6719_v48  ;;  %v6791_v48 = vld [vmem:[#allocation11 + $0xe4] ss:$16 sps:$4 sm:$0xff]   ;;  %v2052_v49 = vrot.slane %v7452_v58, %v7447_v38  ;;  %v2056_v53 = vrot.slane %v7452_v58, %v7458_v45  ;;  %v2064_v59 = vrot.slane %v7452_v58, %v7461_v47 }
 0x20a   :  { %3042 = vmatpush1.bf16.msra.mxu0 %v6786_v46  ;;  %v6815_v46 = vld [vmem:[#allocation11 + $0x1e4] ss:$16 sps:$4 sm:$0xff]  }
 0x20b   :  { %3043 = vmatprep.subr.bf16.mxu0 %v6791_v48  ;;  %v6813_v48 = vld [vmem:[#allocation11 + $0x1e0] ss:$16 sps:$4 sm:$0xff]  }
 0x20c   :  { %3085 = vmatpush1.bf16.msra.mxu1 %v6717_v51  ;;  %v7468_v51 = vld [vmem:[%s7633_s5] sm:$0xff] }
 0x20d   :  { %3086 = vmatprep.subr.bf16.mxu1 %v6725_v52  ;;  %v2060_v52 = vrot.slane %v7452_v58, %v7455_v43  ;;  %v2114_v7 = vrot.slane %v7468_v51, %v7458_v45  ;;  %v2118_v12 = vrot.slane %v7468_v51, %v7455_v43  ;;  %v2122_v17 = vrot.slane %v7468_v51, %v7461_v47 }
 0x20e   :  { %3044 = vmatpush1.bf16.msra.mxu0 %v6789_v54 }
 0x210   :  { %3087 = vmatpush1.bf16.msra.mxu1 %v6723_v56 }
 0x211   :  { %3088 = vmatprep.subr.bf16.mxu1 %v6731_v57 }
 0x214   :  { %3089 = vmatpush1.bf16.msra.mxu1 %v6729_v60  ;;  %v6794_v60 = vld [vmem:[#allocation11 + $0x104] ss:$16 sps:$4 sm:$0xff]  }
 0x215   :  { %3090 = vmatprep.subr.bf16.mxu1 %v6737_v61  ;;  %3045 = vmatprep.subr.bf16.mxu0 %v6794_v60 }
 0x218   :  { %3091 = vmatpush1.bf16.msra.mxu1 %v6735_v1 }
 0x219   :  { %3092 = vmatprep.subr.bf16.mxu1 %v6743_v2  ;;  %v2110_v2 = vrot.slane %v7468_v51, %v7447_v38 }
 0x21c   :  { %3093 = vmatpush1.bf16.msra.mxu1 %v6741_v5 }
 0x21d   :  { %3094 = vmatprep.subr.bf16.mxu1 %v6749_v6 }
 0x220   :  { %3095 = vmatpush1.bf16.msra.mxu1 %v6747_v9 }
 0x221   :  { %3096 = vmatprep.subr.bf16.mxu1 %v6755_v10  ;;  %v6797_v10 = vld [vmem:[#allocation11 + $0x124] ss:$16 sps:$4 sm:$0xff]  }
 0x224   :  { %3097 = vmatpush1.bf16.msra.mxu1 %v6753_v14 }
 0x225   :  { %3098 = vmatprep.subr.bf16.mxu1 %v6761_v15 }
 0x228   :  { %3099 = vmatpush1.bf16.msra.mxu1 %v6759_v18  ;;  %v6795_v18 = vld [vmem:[#allocation11 + $0x120] ss:$16 sps:$4 sm:$0xff]  }
 0x229   :  { %3100 = vmatprep.subr.bf16.mxu1 %v6767_v19  ;;  %v6800_v19 = vld [vmem:[#allocation11 + $0x144] ss:$16 sps:$4 sm:$0xff]  }
 0x22c   :  { %3101 = vmatpush1.bf16.msra.mxu1 %v6765_v22 }
 0x22f   :  { %3103 = vmatmul.mubr.bf16.vlgmr.msra.gmra.mrb[20].mxu1 %v7413_v26 }
 0x242   :  { %v1917_v50 = vpop.f32.mrb[8].mxu0  ;;  %v1958_v56 = vpop.f32.mrb[8].mxu1 }
 0x243   :  { %v1918_v55 = vadd.f32 %v1917_v50, %v7423_v40  ;;  %v1919_v57 = vpop.f32.mrb[9].mxu0  ;;  %v1959_v61 = vadd.f32 %v1958_v56, %v7427_v42  ;;  %v1960_v63 = vpop.f32.mrb[9].mxu1  ;;  %v6792_v42 = vld [vmem:[#allocation11 + $0x100] ss:$16 sps:$4 sm:$0xff]   ;;  %v7493_v50 = vsub.s32 6, %v7444_v34 }
 0x244   :  { %v1920_v62 = vadd.f32 %v1919_v57, %v7425_v41  ;;  %v1921_v0 = vpop.f32.mrb[10].mxu0  ;;  %v1961_v3 = vadd.f32 %v1960_v63, %v7429_v44  ;;  %v1962_v4 = vpop.f32.mrb[10].mxu1  ;;  %3046 = vmatpush1.bf16.msra.mxu0 %v6792_v42 }
 0x245   :  { %v2089_v1 = vadd.f32 %v2052_v49, %v1918_v55  ;;  %v1922_v40 = vpop.f32.mrb[11].mxu0  ;;  %v2091_v5 = vadd.f32 %v2060_v52, %v1959_v61  ;;  %v1963_v8 = vpop.f32.mrb[11].mxu1  ;;  %3047 = vmatprep.subr.bf16.mxu0 %v6797_v10  ;;  %v7490_v49 = vsub.s32 4, %v7444_v34  ;;  %v7496_v52 = vsub.s32 5, %v7444_v34 }
 0x246   :  { %v2090_v6 = vadd.f32 %v2056_v53, %v1920_v62  ;;  %v2092_v41 = vadd.f32 %v2064_v59, %v1961_v3  ;;  %v7499_v53 = vsub.s32 7, %v7444_v34  ;;  %v2076_v56 = vrot.slane %v7452_v58, %v7493_v50 }
 0x247   :  { %v2097_v9 = vmax.f32 %v2089_v1, 0.0  ;;  %v2099_v11 = vmax.f32 %v2091_v5, 0.0  ;;  %v2068_v54 = vrot.slane %v7452_v58, %v7490_v49 }
 0x248   :  { %v2098_v14 = vmax.f32 %v2090_v6, 0.0  ;;  %v2100_v16 = vmax.f32 %v2092_v41, 0.0  ;;  %3048 = vmatpush1.bf16.msra.mxu0 %v6795_v18  ;;  %v2080_v61 = vrot.slane %v7452_v58, %v7499_v53  ;;  %v2130_v6 = vrot.slane %v7468_v51, %v7496_v52  ;;  %v3295_v18 = vld [vmem:[#allocation15] sm:$0xff] }
 0x249   :  { %v2147_v44 = vmul.f32 %v2110_v2, %v2097_v9  ;;  %v2149_v20 = vmul.f32 %v2118_v12, %v2099_v11  ;;  %3049 = vmatprep.subr.bf16.mxu0 %v6800_v19  ;;  %v2126_v2 = vrot.slane %v7468_v51, %v7490_v49  ;;  %v2134_v9 = vrot.slane %v7468_v51, %v7493_v50  ;;  %v3299_v19 = vld [vmem:[#allocation15 + $0x20] sm:$0xff] }
 0x24a   :  { %v2148_v15 = vmul.f32 %v2114_v7, %v2098_v14  ;;  %v2150_v22 = vmul.f32 %v2122_v17, %v2100_v16  ;;  %v7159_v17 = vmov 0  }
 0x24b   :  { %6623 = vset.pattern.permute.xlu1 %v7159_v17  ;;  %6622 = vset.pattern.permute.xlu0 %v7159_v17 }
 0x24c   :  { %v2155_v21 = vadd.f32 %v2148_v15, %v2147_v44  ;;  %3050 = vmatpush1.bf16.msra.mxu0 %v6798_v24  ;;  %v3303_v24 = vld [vmem:[#allocation15 + $0x40] sm:$0xff] }
 0x24d   :  { %3051 = vmatprep.subr.bf16.mxu0 %v6803_v25 }
 0x24e   :  { %v2156_v23 = vadd.f32 %v2155_v21, %v2149_v20  ;;  %v6195_v20 = vcombine.low %v3295_v18, %v3299_v19  ;;  %v6196_v21 = vcombine.high %v3295_v18, %v3299_v19 }
 0x250   :  { %v2157_v27 = vadd.f32 %v2156_v23, %v2150_v22  ;;  %3052 = vmatpush1.bf16.msra.mxu0 %v6801_v28  ;;  %v3296_v22 = vld [vmem:[#allocation15 + $0x8] sm:$0xff]  ;;  %v3307_v28 = vld [vmem:[#allocation15 + $0x60] sm:$0xff] }
 0x251   :  { %3053 = vmatprep.subr.bf16.mxu0 %v6806_v30  ;;  %v3300_v23 = vld [vmem:[#allocation15 + $0x28] sm:$0xff] }
 0x252   :  { %v3304_v30 = vld [vmem:[#allocation15 + $0x48] sm:$0xff] }
 0x254   :  { %3054 = vmatpush1.bf16.msra.mxu0 %v6804_v31  ;;  %v3308_v31 = vld [vmem:[#allocation15 + $0x68] sm:$0xff] }
 0x255   :  { %3055 = vmatprep.subr.bf16.mxu0 %v6809_v13 }
 0x258   :  { %3056 = vmatpush1.bf16.msra.mxu0 %v6807_v32  ;;  %v6204_v32 = vcombine.high %v3303_v24, %v3307_v28 }
 0x259   :  { %3057 = vmatprep.subr.bf16.mxu0 %v6812_v29  ;;  %v6206_v29 = vcombine.high %v3304_v30, %v3308_v31 }
 0x25c   :  { %3058 = vmatpush1.bf16.msra.mxu0 %v6810_v37  ;;  %v3311_v37 = vld [vmem:[#allocation15 + $0x80] sm:$0xff] }
 0x25d   :  { %3059 = vmatprep.subr.bf16.mxu0 %v6815_v46  ;;  %v3315_v46 = vld [vmem:[#allocation15 + $0xa0] sm:$0xff] }
 0x260   :  { %3060 = vmatpush1.bf16.msra.mxu0 %v6813_v48  ;;  %v3312_v48 = vld [vmem:[#allocation15 + $0x88] sm:$0xff] }
 0x261   :  { %4063 = vmatprep.subr.bf16.mxu0 %v6196_v21  ;;  %v3355_v21 = vld [vmem:[#allocation15 + $0x1e0] sm:$0xff] }
 0x263   :  { %3062 = vmatmul.mubr.bf16.vlgmr.msra.gmra.mrb[20].mxu0 %v7413_v26  ;;  %v2072_v26 = vrot.slane %v7452_v58, %v7496_v52 }
 0x264   :  { %4064 = vmatpush1.bf16.msra.mxu0 %v6195_v20  ;;  %v3351_v20 = vld [vmem:[#allocation15 + $0x1c0] sm:$0xff] }
 0x265   :  { %4065 = vmatprep.subr.bf16.mxu0 %v6204_v32  ;;  %v3360_v32 = vld [vmem:[#allocation15 + $0x208] sm:$0xff] }
 0x282   :  { %v1999_v55 = vpop.f32.mrb[12].mxu0  ;;  %v2040_v59 = vpop.f32.mrb[12].mxu1 }
 0x283   :  { %v2000_v57 = vadd.f32 %v1999_v55, %v7433_v33  ;;  %v2001_v60 = vpop.f32.mrb[13].mxu0  ;;  %v2041_v34 = vadd.f32 %v2040_v59, %v7437_v36  ;;  %v2042_v63 = vpop.f32.mrb[13].mxu1  ;;  %v6203_v55 = vcombine.low %v3303_v24, %v3307_v28  ;;  %v6212_v59 = vcombine.high %v3311_v37, %v3315_v46 }
 0x284   :  { %v2002_v62 = vadd.f32 %v2001_v60, %v7435_v35  ;;  %v2003_v0 = vpop.f32.mrb[14].mxu0  ;;  %v2043_v3 = vadd.f32 %v2042_v63, %v7439_v39  ;;  %v2044_v4 = vpop.f32.mrb[14].mxu1  ;;  %v2138_v39 = vrot.slane %v7468_v51, %v7499_v53  ;;  %v6197_v51 = vcombine.low %v3296_v22, %v3300_v23  ;;  %v3324_v63 = vld [vmem:[#allocation15 + $0xe8] sm:$0xff] }
 0x285   :  { %v2093_v1 = vadd.f32 %v2068_v54, %v2000_v57  ;;  %v2004_v40 = vpop.f32.mrb[15].mxu0  ;;  %v2095_v33 = vadd.f32 %v2076_v56, %v2041_v34  ;;  %v2045_v58 = vpop.f32.mrb[15].mxu1  ;;  %v3316_v56 = vld [vmem:[#allocation15 + $0xa8] sm:$0xff]  ;;  %v6205_v57 = vcombine.low %v3304_v30, %v3308_v31  ;;  %v3323_v34 = vld [vmem:[#allocation15 + $0xe0] sm:$0xff]  ;;  %4066 = vmatpush1.bf16.msra.mxu0 %v6203_v55  ;;  %v6211_v0 = vcombine.low %v3311_v37, %v3315_v46 }
 0x286   :  { %v2094_v5 = vadd.f32 %v2072_v26, %v2002_v62  ;;  %v2096_v36 = vadd.f32 %v2080_v61, %v2043_v3  ;;  %v6214_v60 = vcombine.high %v3312_v48, %v3316_v56  ;;  %v3319_v61 = vld [vmem:[#allocation15 + $0xc0] sm:$0xff]  ;;  %v3320_v62 = vld [vmem:[#allocation15 + $0xc8] sm:$0xff]  ;;  %4067 = vmatprep.subr.bf16.mxu0 %v6212_v59  ;;  %v6251_v37 = vcombine.low %v3351_v20, %v3355_v21 }
 0x287   :  { %v2101_v7 = vmax.f32 %v2093_v1, 0.0  ;;  %v2103_v42 = vmax.f32 %v2095_v33, 0.0  ;;  %v6213_v1 = vcombine.low %v3312_v48, %v3316_v56  ;;  %v6222_v3 = vcombine.high %v3320_v62, %v3324_v63  ;;  %v3327_v40 = vld [vmem:[#allocation15 + $0x100] sm:$0xff]  ;;  %v3328_v33 = vld [vmem:[#allocation15 + $0x108] sm:$0xff] }
 0x288   :  { %v2102_v8 = vmax.f32 %v2094_v5, 0.0  ;;  %v2104_v10 = vmax.f32 %v2096_v36, 0.0  ;;  %v3331_v4 = vld [vmem:[#allocation15 + $0x120] sm:$0xff]  ;;  %v3332_v5 = vld [vmem:[#allocation15 + $0x128] sm:$0xff]  ;;  %v6221_v58 = vcombine.low %v3320_v62, %v3324_v63 }
 0x289   :  { %v2151_v35 = vmul.f32 %v2126_v2, %v2101_v7  ;;  %v2153_v12 = vmul.f32 %v2134_v9, %v2103_v42  ;;  %v6220_v2 = vcombine.high %v3319_v61, %v3323_v34  ;;  %4068 = vmatpush1.bf16.msra.mxu0 %v6211_v0  ;;  %v6228_v7 = vcombine.high %v3327_v40, %v3331_v4  ;;  %v3336_v42 = vld [vmem:[#allocation15 + $0x148] sm:$0xff]  ;;  %v3359_v30 = vld [vmem:[#allocation15 + $0x200] sm:$0xff] }
 0x28a   :  { %v2152_v41 = vmul.f32 %v2130_v6, %v2102_v8  ;;  %v2154_v44 = vmul.f32 %v2138_v39, %v2104_v10  ;;  %v6219_v6 = vcombine.low %v3319_v61, %v3323_v34  ;;  %v6230_v36 = vcombine.high %v3328_v33, %v3332_v5  ;;  %v3335_v8 = vld [vmem:[#allocation15 + $0x140] sm:$0xff]  ;;  %v3340_v9 = vld [vmem:[#allocation15 + $0x168] sm:$0xff] }
 0x28b   :  { %v2158_v11 = vadd.f32 %v2157_v27, %v2151_v35  ;;  %v6198_v27 = vcombine.high %v3296_v22, %v3300_v23  ;;  %4069 = vmatprep.subr.bf16.mxu0 %v6220_v2  ;;  %v3339_v35 = vld [vmem:[#allocation15 + $0x160] sm:$0xff]  ;;  %v6229_v10 = vcombine.low %v3328_v33, %v3332_v5  ;;  %v6237_v17 = vcombine.low %v3336_v42, %v3340_v9  ;;  %v3352_v22 = vld [vmem:[#allocation15 + $0x1c8] sm:$0xff] }
 0x28c   :  { %v6236_v39 = vcombine.high %v3335_v8, %v3339_v35  ;;  %v3356_v23 = vld [vmem:[#allocation15 + $0x1e8] sm:$0xff]  ;;  %v3363_v31 = vld [vmem:[#allocation15 + $0x220] sm:$0xff] }
 0x28d   :  { %v2159_v14 = vadd.f32 %v2158_v11, %v2152_v41  ;;  %4104 = vmatprep.subr.bf16.mxu1 %v6198_v27  ;;  %4070 = vmatpush1.bf16.msra.mxu0 %v6219_v6  ;;  %v6227_v41 = vcombine.low %v3327_v40, %v3331_v4  ;;  %v6238_v11 = vcombine.high %v3336_v42, %v3340_v9  ;;  %v3367_v55 = vld [vmem:[#allocation15 + $0x240] sm:$0xff]  ;;  %v3376_v0 = vld [vmem:[#allocation15 + $0x288] sm:$0xff] }
 0x28e   :  { %4105 = vmatpush1.bf16.msra.mxu1 %v6197_v51  ;;  %4071 = vmatprep.subr.bf16.mxu0 %v6228_v7  ;;  %v6252_v27 = vcombine.high %v3351_v20, %v3355_v21  ;;  %v6254_v28 = vcombine.high %v3352_v22, %v3356_v23  ;;  %v6253_v46 = vcombine.low %v3352_v22, %v3356_v23  ;;  %v3371_v56 = vld [vmem:[#allocation15 + $0x260] sm:$0xff]  ;;  %v3384_v6 = vld [vmem:[#allocation15 + $0x2c8] sm:$0xff] }
 0x28f   :  { %v2160_v15 = vadd.f32 %v2159_v14, %v2153_v12  ;;  %4106 = vmatprep.subr.bf16.mxu1 %v6206_v29  ;;  %v3343_v12 = vld [vmem:[#allocation15 + $0x180] sm:$0xff]  ;;  %v3364_v29 = vld [vmem:[#allocation15 + $0x228] sm:$0xff]  ;;  %v6260_v48 = vcombine.high %v3359_v30, %v3363_v31  ;;  %v6259_v59 = vcombine.low %v3359_v30, %v3363_v31  ;;  %v6268_v61 = vcombine.high %v3367_v55, %v3371_v56 }
 0x290   :  { %v3347_v14 = vld [vmem:[#allocation15 + $0x1a0] sm:$0xff]  ;;  %v6267_v2 = vcombine.low %v3367_v55, %v3371_v56 }
 0x291   :  { %v2161_v16 = vadd.f32 %v2160_v15, %v2154_v44  ;;  %v3344_v44 = vld [vmem:[#allocation15 + $0x188] sm:$0xff]  ;;  %4072 = vmatpush1.bf16.msra.mxu0 %v6227_v41  ;;  %v6244_v18 = vcombine.high %v3343_v12, %v3347_v14  ;;  %v6243_v24 = vcombine.low %v3343_v12, %v3347_v14  ;;  %v3375_v62 = vld [vmem:[#allocation15 + $0x280] sm:$0xff] }
 0x292   :  { %4107 = vmatpush1.bf16.msra.mxu1 %v6205_v57  ;;  %v3348_v15 = vld [vmem:[#allocation15 + $0x1a8] sm:$0xff]  ;;  %4073 = vmatprep.subr.bf16.mxu0 %v6236_v39  ;;  %v3379_v63 = vld [vmem:[#allocation15 + $0x2a0] sm:$0xff] }
 0x293   :  { %2162 = vadd.xlane.f32.xlu0 %v2161_v16  ;;  %4108 = vmatprep.subr.bf16.mxu1 %v6214_v60  ;;  %v6235_v16 = vcombine.low %v3335_v8, %v3339_v35  ;;  %v6246_v19 = vcombine.high %v3344_v44, %v3348_v15  ;;  %v6245_v51 = vcombine.low %v3344_v44, %v3348_v15  ;;  %v3372_v57 = vld [vmem:[#allocation15 + $0x268] sm:$0xff]  ;;  %v3383_v33 = vld [vmem:[#allocation15 + $0x2c0] sm:$0xff] }
 0x294   :  { %v6261_v60 = vcombine.low %v3360_v32, %v3364_v29  ;;  %v6276_v40 = vcombine.high %v3375_v62, %v3379_v63  ;;  %v3387_v5 = vld [vmem:[#allocation15 + $0x2e0] sm:$0xff]  ;;  %v6275_v7 = vcombine.low %v3375_v62, %v3379_v63  ;;  %v3392_v41 = vld [vmem:[#allocation15 + $0x308] sm:$0xff] }
 0x295   :  { %4074 = vmatpush1.bf16.msra.mxu0 %v6235_v16  ;;  %v6284_v8 = vcombine.high %v3383_v33, %v3387_v5  ;;  %v3391_v42 = vld [vmem:[#allocation15 + $0x300] sm:$0xff]  ;;  %v6283_v39 = vcombine.low %v3383_v33, %v3387_v5  ;;  %v3400_v16 = vld [vmem:[#allocation15 + $0x348] sm:$0xff] }
 0x296   :  { %4109 = vmatpush1.bf16.msra.mxu1 %v6213_v1  ;;  %4075 = vmatprep.subr.bf16.mxu0 %v6244_v18  ;;  %v3380_v1 = vld [vmem:[#allocation15 + $0x2a8] sm:$0xff]  ;;  %v3395_v9 = vld [vmem:[#allocation15 + $0x320] sm:$0xff] }
 0x297   :  { %4110 = vmatprep.subr.bf16.mxu1 %v6222_v3  ;;  %v6278_v4 = vcombine.high %v3376_v0, %v3380_v1  ;;  %v6292_v12 = vcombine.high %v3391_v42, %v3395_v9  ;;  %v3399_v44 = vld [vmem:[#allocation15 + $0x340] sm:$0xff]  ;;  %v6291_v18 = vcombine.low %v3391_v42, %v3395_v9 }
 0x298   :  { %v3403_v15 = vld [vmem:[#allocation15 + $0x360] sm:$0xff] }
 0x299   :  { %4076 = vmatpush1.bf16.msra.mxu0 %v6243_v24  ;;  %v6300_v20 = vcombine.high %v3399_v44, %v3403_v15  ;;  %v6299_v22 = vcombine.low %v3399_v44, %v3403_v15 }
 0x29a   :  { %4111 = vmatpush1.bf16.msra.mxu1 %v6221_v58  ;;  %4077 = vmatprep.subr.bf16.mxu0 %v6252_v27  ;;  %v3388_v58 = vld [vmem:[#allocation15 + $0x2e8] sm:$0xff] }
 0x29b   :  { %4112 = vmatprep.subr.bf16.mxu1 %v6230_v36  ;;  %v6277_v36 = vcombine.low %v3376_v0, %v3380_v1  ;;  %v6286_v35 = vcombine.high %v3384_v6, %v3388_v58  ;;  %v3407_v0 = vld [vmem:[#allocation15 + $0x380] sm:$0xff] }
 0x29c   :  { %v3411_v1 = vld [vmem:[#allocation15 + $0x3a0] sm:$0xff] }
 0x29d   :  { %4078 = vmatpush1.bf16.msra.mxu0 %v6251_v37  ;;  %v6307_v33 = vcombine.low %v3407_v0, %v3411_v1 }
 0x29e   :  { %4113 = vmatpush1.bf16.msra.mxu1 %v6229_v10  ;;  %4079 = vmatprep.subr.bf16.mxu0 %v6260_v48  ;;  %v3396_v10 = vld [vmem:[#allocation15 + $0x328] sm:$0xff]  ;;  %v6066_v48 = vld [vmem:[#allocation2] ss:$0 sm:$0xff] }
 0x29f   :  { %4114 = vmatprep.subr.bf16.mxu1 %v6238_v11  ;;  %v6285_v11 = vcombine.low %v3384_v6, %v3388_v58  ;;  %v6294_v14 = vcombine.high %v3392_v41, %v3396_v10  ;;  %v3415_v58 = vld [vmem:[#allocation15 + $0x3c0] sm:$0xff] }
 0x2a1   :  { %4080 = vmatpush1.bf16.msra.mxu0 %v6259_v59 }
 0x2a2   :  { %4115 = vmatpush1.bf16.msra.mxu1 %v6237_v17  ;;  %4081 = vmatprep.subr.bf16.mxu0 %v6268_v61  ;;  %v3404_v17 = vld [vmem:[#allocation15 + $0x368] sm:$0xff] }
 0x2a3   :  { %4116 = vmatprep.subr.bf16.mxu1 %v6246_v19  ;;  %v6293_v19 = vcombine.low %v3392_v41, %v3396_v10  ;;  %v6302_v21 = vcombine.high %v3400_v16, %v3404_v17  ;;  %v6301_v23 = vcombine.low %v3400_v16, %v3404_v17  ;;  %v3297_v10 = vld [vmem:[#allocation15 + $0x10] sm:$0xff]  ;;  %v3111_v17 = vld [vmem:[%s7637_s9] sm:$0xf] }
 0x2a5   :  { %4082 = vmatpush1.bf16.msra.mxu0 %v6267_v2  ;;  %v3408_v2 = vld [vmem:[#allocation15 + $0x388] sm:$0xff] }
 0x2a6   :  { %4117 = vmatpush1.bf16.msra.mxu1 %v6245_v51  ;;  %4083 = vmatprep.subr.bf16.mxu0 %v6276_v40  ;;  %v6308_v40 = vcombine.high %v3407_v0, %v3411_v1 }
 0x2a7   :  { %4118 = vmatprep.subr.bf16.mxu1 %v6254_v28 }
 0x2a9   :  { %4084 = vmatpush1.bf16.msra.mxu0 %v6275_v7  ;;  %v3419_v7 = vld [vmem:[#allocation15 + $0x3e0] sm:$0xff] }
 0x2aa   :  { %4119 = vmatpush1.bf16.msra.mxu1 %v6253_v46  ;;  %4085 = vmatprep.subr.bf16.mxu0 %v6284_v8  ;;  %v6316_v8 = vcombine.high %v3415_v58, %v3419_v7  ;;  %v6315_v42 = vcombine.low %v3415_v58, %v3419_v7 }
 0x2ad   :  { %4086 = vmatpush1.bf16.msra.mxu0 %v6283_v39  ;;  %v3301_v39 = vld [vmem:[#allocation15 + $0x30] sm:$0xff] }
 0x2ae   :  { %4087 = vmatprep.subr.bf16.mxu0 %v6292_v12  ;;  %v6200_v12 = vcombine.high %v3297_v10, %v3301_v39  ;;  %v6199_v44 = vcombine.low %v3297_v10, %v3301_v39 }
 0x2b1   :  { %4088 = vmatpush1.bf16.msra.mxu0 %v6291_v18  ;;  %v3116_v18 = vrot.slane %v3111_v17, %v7447_v38 }
 0x2b2   :  { %4089 = vmatprep.subr.bf16.mxu0 %v6300_v20  ;;  %v3124_v20 = vrot.slane %v3111_v17, %v7455_v43 }
 0x2b5   :  { %4090 = vmatpush1.bf16.msra.mxu0 %v6299_v22 }
 0x2b6   :  { %4091 = vmatprep.subr.bf16.mxu0 %v6308_v40 }
 0x2b9   :  { %4092 = vmatpush1.bf16.msra.mxu0 %v6307_v33  ;;  %v3314_v33 = vld [vmem:[#allocation15 + $0x98] sm:$0xff] }
 0x2ba   :  { %4093 = vmatprep.subr.bf16.mxu0 %v6316_v8  ;;  %v3321_v8 = vld [vmem:[#allocation15 + $0xd0] sm:$0xff] }
 0x2bd   :  { %4094 = vmatpush1.bf16.msra.mxu0 %v6315_v42  ;;  %v3322_v42 = vld [vmem:[#allocation15 + $0xd8] sm:$0xff] }
 0x2be   :  { %4145 = vmatprep.subr.bf16.mxu0 %v6200_v12  ;;  %v3329_v12 = vld [vmem:[#allocation15 + $0x110] sm:$0xff] }
 0x2c2   :  { %v7521_v25 = vpop.f32.mrb[16].mxu1 }
 0x2c3   :  { %v7523_v13 = vpop.f32.mrb[17].mxu1 }
 0x2c4   :  { %v2706_v54 = vpop.f32.mrb[18].mxu1  ;;  %v2661_v24 = vpop.f32.mrb[16].mxu0 }
 0x2c5   :  { %v2707_v26 = vpop.f32.mrb[19].mxu1  ;;  %v6262_v54 = vcombine.high %v3360_v32, %v3364_v29  ;;  %v2663_v51 = vpop.f32.mrb[17].mxu0 }
 0x2c6   :  { %v3368_v26 = vld [vmem:[#allocation15 + $0x248] sm:$0xff]  ;;  %v2665_v27 = vpop.f32.mrb[18].mxu0 }
 0x2c7   :  { %4120 = vmatprep.subr.bf16.mxu1 %v6262_v54  ;;  %v6270_v34 = vcombine.high %v3368_v26, %v3372_v57  ;;  %v6269_v3 = vcombine.low %v3368_v26, %v3372_v57  ;;  %v2666_v28 = vpop.f32.mrb[19].mxu0 }
 0x2c8   :  { %4121 = vmatpush1.bf16.msra.mxu1 %v6261_v60  ;;  %v6885_v28 = vld [vmem:[#allocation3 + $0x8] sm:$0xff] }
 0x2c9   :  { %4122 = vmatprep.subr.bf16.mxu1 %v6270_v34 }
 0x2cc   :  { %4123 = vmatpush1.bf16.msra.mxu1 %v6269_v3 }
 0x2cd   :  { %4124 = vmatprep.subr.bf16.mxu1 %v6278_v4  ;;  %v3412_v4 = vld [vmem:[#allocation15 + $0x3a8] sm:$0xff] }
 0x2ce   :  { %v6309_v5 = vcombine.low %v3408_v2, %v3412_v4  ;;  %v6310_v6 = vcombine.high %v3408_v2, %v3412_v4  ;;  %v3313_v2 = vld [vmem:[#allocation15 + $0x90] sm:$0xff] }
 0x2cf   :  { %v3317_v4 = vld [vmem:[#allocation15 + $0xb0] sm:$0xff] }
 0x2d0   :  { %4125 = vmatpush1.bf16.msra.mxu1 %v6277_v36  ;;  %v3416_v36 = vld [vmem:[#allocation15 + $0x3c8] sm:$0xff]  ;;  %v6216_v7 = vcombine.high %v3313_v2, %v3317_v4 }
 0x2d1   :  { %4126 = vmatprep.subr.bf16.mxu1 %v6286_v35  ;;  %v3420_v35 = vld [vmem:[#allocation15 + $0x3e8] sm:$0xff] }
 0x2d2   :  { %v6317_v9 = vcombine.low %v3416_v36, %v3420_v35  ;;  %v6318_v41 = vcombine.high %v3416_v36, %v3420_v35  ;;  %v3325_v35 = vld [vmem:[#allocation15 + $0xf0] sm:$0xff] }
 0x2d3   :  { %v6224_v39 = vcombine.high %v3321_v8, %v3325_v35 }
 0x2d4   :  { %4127 = vmatpush1.bf16.msra.mxu1 %v6285_v11  ;;  %v3298_v11 = vld [vmem:[#allocation15 + $0x18] sm:$0xff] }
 0x2d5   :  { %4128 = vmatprep.subr.bf16.mxu1 %v6294_v14  ;;  %v3302_v14 = vld [vmem:[#allocation15 + $0x38] sm:$0xff] }
 0x2d6   :  { %v6201_v15 = vcombine.low %v3298_v11, %v3302_v14  ;;  %v6202_v16 = vcombine.high %v3298_v11, %v3302_v14  ;;  %v3333_v14 = vld [vmem:[#allocation15 + $0x130] sm:$0xff] }
 0x2d8   :  { %4129 = vmatpush1.bf16.msra.mxu1 %v6293_v19  ;;  %v3120_v19 = vrot.slane %v3111_v17, %v7458_v45 }
 0x2d9   :  { %4130 = vmatprep.subr.bf16.mxu1 %v6302_v21  ;;  %v3128_v21 = vrot.slane %v3111_v17, %v7461_v47 }
 0x2dc   :  { %4131 = vmatpush1.bf16.msra.mxu1 %v6301_v23 }
 0x2dd   :  { %4132 = vmatprep.subr.bf16.mxu1 %v6310_v6 }
 0x2e0   :  { %4133 = vmatpush1.bf16.msra.mxu1 %v6309_v5  ;;  %v3318_v5 = vld [vmem:[#allocation15 + $0xb8] sm:$0xff] }
 0x2e1   :  { %4134 = vmatprep.subr.bf16.mxu1 %v6318_v41  ;;  %v6218_v36 = vcombine.high %v3314_v33, %v3318_v5  ;;  %v6215_v41 = vcombine.low %v3313_v2, %v3317_v4  ;;  %v6217_v10 = vcombine.low %v3314_v33, %v3318_v5  ;;  %v3366_v2 = vld [vmem:[#allocation15 + $0x238] sm:$0xff]  ;;  %v3369_v5 = vld [vmem:[#allocation15 + $0x250] sm:$0xff] }
 0x2e4   :  { %4135 = vmatpush1.bf16.msra.mxu1 %v6317_v9  ;;  %v3326_v9 = vld [vmem:[#allocation15 + $0xf8] sm:$0xff] }
 0x2e5   :  { %4186 = vmatprep.subr.bf16.mxu1 %v6202_v16  ;;  %v6226_v11 = vcombine.high %v3322_v42, %v3326_v9  ;;  %v6223_v16 = vcombine.low %v3321_v8, %v3325_v35  ;;  %v6225_v17 = vcombine.low %v3322_v42, %v3326_v9  ;;  %v3377_v9 = vld [vmem:[#allocation15 + $0x290] sm:$0xff] }
 0x302   :  { %v3104_v30 = vpop.f32.mrb[20].mxu1 }
 0x303   :  { %v7526_v31 = vadd.f32 %v3104_v30, %v7521_v25  ;;  %v3106_v32 = vpop.f32.mrb[21].mxu1 }
 0x304   :  { %v7529_v29 = vadd.f32 %v3106_v32, %v7523_v13  ;;  %v3108_v37 = vpop.f32.mrb[22].mxu1 }
 0x305   :  { %v3109_v46 = vpop.f32.mrb[23].mxu1  ;;  %v3135_v32 = vadd.f32 %v3124_v20, %v7526_v31  ;;  %v3337_v20 = vld [vmem:[#allocation15 + $0x150] sm:$0xff] }
 0x306   :  { %v3136_v37 = vadd.f32 %v3128_v21, %v7529_v29  ;;  %v3305_v29 = vld [vmem:[#allocation15 + $0x50] sm:$0xff] }
 0x307   :  { %v3341_v21 = vld [vmem:[#allocation15 + $0x170] sm:$0xff] }
 0x320   :  { %v2163_v54 = vpop.xlane.xlu0 %2162 }
 0x321   :  { %v2171_v55 = vadd.f32 %v6066_v48, %v2163_v54 }
 0x323   :  { %v2172_v56 = vsub.f32 0.0, %v2171_v55  ;;  %v6886_v55 = vld [vmem:[#allocation6] sm:$0xff] }
 0x325   :  { %v2173_v26 = vmul.f32 1.442695, %v2172_v56 }
 0x327   :  { %6880 = vpow2.f32 %v2173_v26  ;;  %v6887_v26 = vld [vmem:[#allocation6 + $0x8] sm:$0xff] }
 0x331   :  { %v6881_v57 = vpop.eup %6880 }
 0x332   :  { %v2175_v59 = vadd.f32 1.0, %v6881_v57 }
 0x334   :  { %6882 = vrcp.f32 %v2175_v59 }
 0x336   :  { %v3063_v60 = vpop.f32.mrb[20].mxu0 }
 0x337   :  { %v3064_v61 = vadd.f32 %v3063_v60, %v2661_v24  ;;  %v3065_v34 = vpop.f32.mrb[21].mxu0 }
 0x338   :  { %v3066_v62 = vadd.f32 %v3065_v34, %v2663_v51  ;;  %v3067_v63 = vpop.f32.mrb[22].mxu0  ;;  %v6884_v51 = vld [vmem:[#allocation3] sm:$0xff] }
 0x339   :  { %v3068_v3 = vpop.f32.mrb[23].mxu0  ;;  %v3133_v22 = vadd.f32 %v3116_v18, %v3064_v61  ;;  %v3306_v63 = vld [vmem:[#allocation15 + $0x58] sm:$0xff]  ;;  %v6232_v18 = vcombine.high %v3329_v12, %v3333_v14 }
 0x33a   :  { %v3134_v23 = vadd.f32 %v3120_v19, %v3066_v62  ;;  %v3309_v62 = vld [vmem:[#allocation15 + $0x70] sm:$0xff] }
 0x33b   :  { %v6208_v3 = vcombine.high %v3305_v29, %v3309_v62  ;;  %v6207_v6 = vcombine.low %v3305_v29, %v3309_v62 }
 0x33e   :  { %v6883_v25 = vpop.eup %6882 }
 0x33f   :  { %3139 = vperm.xlu1 %6623, %v6883_v25   ;;  %v2178_v13 = vsub.f32 1.0, %v6883_v25 }
 0x341   :  { %3150 = vperm.xlu0 %6622, %v2178_v13   ;;  %v3310_v13 = vld [vmem:[#allocation15 + $0x78] sm:$0xff] }
 0x342   :  { %v6210_v40 = vcombine.high %v3306_v63, %v3310_v13  ;;  %v6209_v58 = vcombine.low %v3306_v63, %v3310_v13  ;;  %v3361_v63 = vld [vmem:[#allocation15 + $0x210] sm:$0xff] }
 0x343   :  { %v3365_v13 = vld [vmem:[#allocation15 + $0x230] sm:$0xff] }
 0x344   :  { %v6264_v4 = vcombine.high %v3361_v63, %v3365_v13 }
 0x3be   :  { %v3140_v24 = vpop.permute.xlu1 %3139 }
 0x3bf   :  { %v3142_v27 = vmul.f32 %v6884_v51, %v3140_v24  ;;  %v3143_v30 = vmul.f32 %v6885_v28, %v3140_v24  ;;  %v6231_v24 = vcombine.low %v3329_v12, %v3333_v14 }
 0x3c0   :  { %v3151_v46 = vpop.permute.xlu0 %3150 }
 0x3c1   :  { %v3144_v48 = vadd.f32 %v3142_v27, %v3133_v22  ;;  %v3145_v54 = vadd.f32 %v3143_v30, %v3134_v23  ;;  %v3153_v56 = vmul.f32 %v6886_v55, %v3151_v46  ;;  %v3154_v57 = vmul.f32 %v6887_v26, %v3151_v46  ;;  %v3338_v22 = vld [vmem:[#allocation15 + $0x158] sm:$0xff]  ;;  %v3345_v30 = vld [vmem:[#allocation15 + $0x190] sm:$0xff] }
 0x3c2   :  { %v3342_v23 = vld [vmem:[#allocation15 + $0x178] sm:$0xff]  ;;  %v6240_v27 = vcombine.high %v3337_v20, %v3341_v21  ;;  %v3353_v26 = vld [vmem:[#allocation15 + $0x1d0] sm:$0xff] }
 0x3c3   :  { %v7540_v59 = vmax.f32 %v3144_v48, 0.0  ;;  %v7542_v60 = vmax.f32 %v3145_v54, 0.0  ;;  %v3155_v61 = vadd.f32 %v3153_v56, %v3135_v32  ;;  %v3156_v34 = vadd.f32 %v3154_v57, %v3136_v37  ;;  %v3349_v32 = vld [vmem:[#allocation15 + $0x1b0] sm:$0xff]  ;;  %v3346_v37 = vld [vmem:[#allocation15 + $0x198] sm:$0xff] }
 0x3c4   :  { %v6242_v28 = vcombine.high %v3338_v22, %v3342_v23  ;;  %v3350_v46 = vld [vmem:[#allocation15 + $0x1b8] sm:$0xff]  ;;  %v6239_v48 = vcombine.low %v3337_v20, %v3341_v21  ;;  %v6241_v54 = vcombine.low %v3338_v22, %v3342_v23  ;;  %v6248_v55 = vcombine.high %v3345_v30, %v3349_v32  ;;  %v3357_v57 = vld [vmem:[#allocation15 + $0x1f0] sm:$0xff] }
 0x3c5   :  { %3159 = vst [vmem:[#allocation19] sm:$0xff] %v7540_v59  ;;  %3160 = vst [vmem:[#allocation19 + $0x8] sm:$0xff] %v7542_v60  ;;  %v3157_v31 = vmax.f32 %v3155_v61, 0.0  ;;  %v3158_v25 = vmax.f32 %v3156_v34, 0.0  ;;  %v6250_v56 = vcombine.high %v3346_v37, %v3350_v46  ;;  %v3354_v61 = vld [vmem:[#allocation15 + $0x1d8] sm:$0xff]  ;;  %v6256_v29 = vcombine.high %v3353_v26, %v3357_v57  ;;  %v3393_v23 = vld [vmem:[#allocation15 + $0x310] sm:$0xff] }
 0x3c6   :  { %v3358_v34 = vld [vmem:[#allocation15 + $0x1f8] sm:$0xff] }
 0x3c7   :  { %3161 = vst [vmem:[#allocation19 + $0x10] sm:$0xff] %v3157_v31  ;;  %3162 = vst [vmem:[#allocation19 + $0x18] sm:$0xff] %v3158_v25  ;;  %v7546_v0 = vpack.c.bf16 %v3157_v31, %v3157_v31  ;;  %v3294_v1 = vpack.c.bf16 %v3158_v25, %v3158_v25  ;;  %v6247_v31 = vcombine.low %v3345_v30, %v3349_v32 }
 0x3c8   :  { %v6249_v25 = vcombine.low %v3346_v37, %v3350_v46  ;;  %v6258_v62 = vcombine.high %v3354_v61, %v3358_v34  ;;  %v3401_v46 = vld [vmem:[#allocation15 + $0x350] sm:$0xff] }
 0x3c9   :  { %4095 = vmatprep.mubr.bf16.mxu0 %v3294_v1  ;;  %4136 = vmatprep.mubr.bf16.mxu1 %v3294_v1 }
 0x3ca   :  { %4096 = vmatmul.mubr.bf16.vlgmr.msra.gmra.mrb[24].mxu0 %v7546_v0  ;;  %4137 = vmatmul.mubr.bf16.vlgmr.msra.gmra.mrb[24].mxu1 %v7546_v0 }
 0x3cb   :  { %4146 = vmatpush1.bf16.msra.mxu0 %v6199_v44  ;;  %4187 = vmatpush1.bf16.msra.mxu1 %v6201_v15  ;;  %v3330_v44 = vld [vmem:[#allocation15 + $0x118] sm:$0xff] }
 0x3cc   :  { %4177 = vmatprep.mubr.bf16.mxu0 %v3294_v1  ;;  %4218 = vmatprep.mubr.bf16.mxu1 %v3294_v1  ;;  %v3334_v15 = vld [vmem:[#allocation15 + $0x138] sm:$0xff] }
 0x3cd   :  { %4147 = vmatprep.subr.bf16.mxu0 %v6208_v3  ;;  %4188 = vmatprep.subr.bf16.mxu1 %v6210_v40  ;;  %v6234_v19 = vcombine.high %v3330_v44, %v3334_v15  ;;  %v6233_v51 = vcombine.low %v3330_v44, %v3334_v15  ;;  %v3362_v1 = vld [vmem:[#allocation15 + $0x218] sm:$0xff]  ;;  %v6255_v3 = vcombine.low %v3353_v26, %v3357_v57  ;;  %v3385_v15 = vld [vmem:[#allocation15 + $0x2d0] sm:$0xff] }
 0x3ce   :  { %v6257_v40 = vcombine.low %v3354_v61, %v3358_v34  ;;  %v6266_v33 = vcombine.high %v3362_v1, %v3366_v2  ;;  %v6265_v8 = vcombine.low %v3362_v1, %v3366_v2  ;;  %v3409_v34 = vld [vmem:[#allocation15 + $0x390] sm:$0xff] }
 0x3cf   :  { %4148 = vmatpush1.bf16.msra.mxu0 %v6207_v6  ;;  %4189 = vmatpush1.bf16.msra.mxu1 %v6209_v58  ;;  %v3373_v6 = vld [vmem:[#allocation15 + $0x270] sm:$0xff]  ;;  %v3370_v58 = vld [vmem:[#allocation15 + $0x258] sm:$0xff] }
 0x3d0   :  { %4149 = vmatprep.subr.bf16.mxu0 %v6216_v7  ;;  %4190 = vmatprep.subr.bf16.mxu1 %v6218_v36  ;;  %v3374_v7 = vld [vmem:[#allocation15 + $0x278] sm:$0xff]  ;;  %v6263_v36 = vcombine.low %v3361_v63, %v3365_v13  ;;  %v6272_v35 = vcombine.high %v3369_v5, %v3373_v6  ;;  %v3417_v2 = vld [vmem:[#allocation15 + $0x3d0] sm:$0xff] }
 0x3d1   :  { %v6274_v42 = vcombine.high %v3370_v58, %v3374_v7  ;;  %v6273_v12 = vcombine.low %v3370_v58, %v3374_v7  ;;  %v3165_v7 = vld [vmem:[#allocation14] sm:$0xff] }
 0x3d3   :  { %4150 = vmatpush1.bf16.msra.mxu0 %v6215_v41  ;;  %4191 = vmatpush1.bf16.msra.mxu1 %v6217_v10  ;;  %v3381_v41 = vld [vmem:[#allocation15 + $0x2b0] sm:$0xff]  ;;  %v3378_v10 = vld [vmem:[#allocation15 + $0x298] sm:$0xff] }
 0x3d4   :  { %4151 = vmatprep.subr.bf16.mxu0 %v6224_v39  ;;  %4192 = vmatprep.subr.bf16.mxu1 %v6226_v11  ;;  %v3382_v39 = vld [vmem:[#allocation15 + $0x2b8] sm:$0xff]  ;;  %v6271_v11 = vcombine.low %v3369_v5, %v3373_v6  ;;  %v6280_v14 = vcombine.high %v3377_v9, %v3381_v41 }
 0x3d5   :  { %v6282_v44 = vcombine.high %v3378_v10, %v3382_v39  ;;  %v6281_v20 = vcombine.low %v3378_v10, %v3382_v39  ;;  %v3173_v39 = vld [vmem:[#allocation14 + $0x40] sm:$0xff] }
 0x3d7   :  { %4152 = vmatpush1.bf16.msra.mxu0 %v6223_v16  ;;  %4193 = vmatpush1.bf16.msra.mxu1 %v6225_v17  ;;  %v3389_v16 = vld [vmem:[#allocation15 + $0x2f0] sm:$0xff]  ;;  %v3386_v17 = vld [vmem:[#allocation15 + $0x2d8] sm:$0xff] }
 0x3d8   :  { %4153 = vmatprep.subr.bf16.mxu0 %v6232_v18  ;;  %4194 = vmatprep.subr.bf16.mxu1 %v6234_v19  ;;  %v3390_v18 = vld [vmem:[#allocation15 + $0x2f8] sm:$0xff]  ;;  %v6279_v19 = vcombine.low %v3377_v9, %v3381_v41  ;;  %v6288_v21 = vcombine.high %v3385_v15, %v3389_v16 }
 0x3d9   :  { %v6290_v22 = vcombine.high %v3386_v17, %v3390_v18  ;;  %v6289_v30 = vcombine.low %v3386_v17, %v3390_v18 }
 0x3db   :  { %4154 = vmatpush1.bf16.msra.mxu0 %v6231_v24  ;;  %4195 = vmatpush1.bf16.msra.mxu1 %v6233_v51  ;;  %v3397_v24 = vld [vmem:[#allocation15 + $0x330] sm:$0xff]  ;;  %v3394_v51 = vld [vmem:[#allocation15 + $0x318] sm:$0xff] }
 0x3dc   :  { %4155 = vmatprep.subr.bf16.mxu0 %v6240_v27  ;;  %4196 = vmatprep.subr.bf16.mxu1 %v6242_v28  ;;  %v3398_v27 = vld [vmem:[#allocation15 + $0x338] sm:$0xff]  ;;  %v6287_v28 = vcombine.low %v3385_v15, %v3389_v16  ;;  %v6296_v32 = vcombine.high %v3393_v23, %v3397_v24  ;;  %v7552_v16 = vpack.c.bf16 %v7542_v60, %v7542_v60 }
 0x3dd   :  { %v6298_v37 = vcombine.high %v3394_v51, %v3398_v27  ;;  %v6297_v26 = vcombine.low %v3394_v51, %v3398_v27  ;;  %v3189_v27 = vld [vmem:[#allocation14 + $0xc0] sm:$0xff] }
 0x3df   :  { %4156 = vmatpush1.bf16.msra.mxu0 %v6239_v48  ;;  %4197 = vmatpush1.bf16.msra.mxu1 %v6241_v54  ;;  %v3405_v48 = vld [vmem:[#allocation15 + $0x370] sm:$0xff]  ;;  %v3402_v54 = vld [vmem:[#allocation15 + $0x358] sm:$0xff] }
 0x3e0   :  { %4157 = vmatprep.subr.bf16.mxu0 %v6248_v55  ;;  %4198 = vmatprep.subr.bf16.mxu1 %v6250_v56  ;;  %v3406_v55 = vld [vmem:[#allocation15 + $0x378] sm:$0xff]  ;;  %v6295_v56 = vcombine.low %v3393_v23, %v3397_v24  ;;  %v6304_v57 = vcombine.high %v3401_v46, %v3405_v48 }
 0x3e1   :  { %v6306_v61 = vcombine.high %v3402_v54, %v3406_v55  ;;  %v6305_v63 = vcombine.low %v3402_v54, %v3406_v55  ;;  %v3197_v54 = vld [vmem:[#allocation14 + $0x100] sm:$0xff] }
 0x3e2   :  { %v3201_v55 = vld [vmem:[#allocation14 + $0x120] sm:$0xff] }
 0x3e3   :  { %4158 = vmatpush1.bf16.msra.mxu0 %v6247_v31  ;;  %4199 = vmatpush1.bf16.msra.mxu1 %v6249_v25  ;;  %v3413_v31 = vld [vmem:[#allocation15 + $0x3b0] sm:$0xff]  ;;  %v3410_v25 = vld [vmem:[#allocation15 + $0x398] sm:$0xff] }
 0x3e4   :  { %4159 = vmatprep.subr.bf16.mxu0 %v6256_v29  ;;  %4200 = vmatprep.subr.bf16.mxu1 %v6258_v62  ;;  %v3414_v29 = vld [vmem:[#allocation15 + $0x3b8] sm:$0xff]  ;;  %v6303_v62 = vcombine.low %v3401_v46, %v3405_v48  ;;  %v6312_v13 = vcombine.high %v3409_v34, %v3413_v31 }
 0x3e5   :  { %v6314_v1 = vcombine.high %v3410_v25, %v3414_v29  ;;  %v6313_v5 = vcombine.low %v3410_v25, %v3414_v29  ;;  %v3205_v25 = vld [vmem:[#allocation14 + $0x140] sm:$0xff] }
 0x3e6   :  { %v3209_v29 = vld [vmem:[#allocation14 + $0x160] sm:$0xff] }
 0x3e7   :  { %4160 = vmatpush1.bf16.msra.mxu0 %v6255_v3  ;;  %4201 = vmatpush1.bf16.msra.mxu1 %v6257_v40  ;;  %v3421_v3 = vld [vmem:[#allocation15 + $0x3f0] sm:$0xff]  ;;  %v3418_v40 = vld [vmem:[#allocation15 + $0x3d8] sm:$0xff] }
 0x3e8   :  { %4161 = vmatprep.subr.bf16.mxu0 %v6264_v4  ;;  %4202 = vmatprep.subr.bf16.mxu1 %v6266_v33  ;;  %v3422_v4 = vld [vmem:[#allocation15 + $0x3f8] sm:$0xff]  ;;  %v6311_v33 = vcombine.low %v3409_v34, %v3413_v31  ;;  %v6320_v6 = vcombine.high %v3417_v2, %v3421_v3  ;;  %v6356_v34 = vcombine.high %v3197_v54, %v3201_v55 }
 0x3e9   :  { %v6322_v58 = vcombine.high %v3418_v40, %v3422_v4  ;;  %v6321_v9 = vcombine.low %v3418_v40, %v3422_v4  ;;  %v3213_v40 = vld [vmem:[#allocation14 + $0x180] sm:$0xff] }
 0x3ea   :  { %v3217_v4 = vld [vmem:[#allocation14 + $0x1a0] sm:$0xff] }
 0x3eb   :  { %4162 = vmatpush1.bf16.msra.mxu0 %v6263_v36  ;;  %4203 = vmatpush1.bf16.msra.mxu1 %v6265_v8  ;;  %v3169_v36 = vld [vmem:[#allocation14 + $0x20] sm:$0xff]  ;;  %v3166_v8 = vld [vmem:[#allocation14 + $0x8] sm:$0xff] }
 0x3ec   :  { %4163 = vmatprep.subr.bf16.mxu0 %v6272_v35  ;;  %4204 = vmatprep.subr.bf16.mxu1 %v6274_v42  ;;  %v3170_v35 = vld [vmem:[#allocation14 + $0x28] sm:$0xff]  ;;  %v6319_v42 = vcombine.low %v3417_v2, %v3421_v3  ;;  %v6324_v41 = vcombine.high %v3165_v7, %v3169_v36  ;;  %v6364_v2 = vcombine.high %v3205_v25, %v3209_v29 }
 0x3ed   :  { %v6326_v10 = vcombine.high %v3166_v8, %v3170_v35  ;;  %v6325_v15 = vcombine.low %v3166_v8, %v3170_v35  ;;  %v3221_v8 = vld [vmem:[#allocation14 + $0x1c0] sm:$0xff] }
 0x3ee   :  { %v3225_v35 = vld [vmem:[#allocation14 + $0x1e0] sm:$0xff] }
 0x3ef   :  { %4164 = vmatpush1.bf16.msra.mxu0 %v6271_v11  ;;  %4205 = vmatpush1.bf16.msra.mxu1 %v6273_v12  ;;  %v3177_v11 = vld [vmem:[#allocation14 + $0x60] sm:$0xff]  ;;  %v3174_v12 = vld [vmem:[#allocation14 + $0x48] sm:$0xff] }
 0x3f0   :  { %4165 = vmatprep.subr.bf16.mxu0 %v6280_v14  ;;  %4206 = vmatprep.subr.bf16.mxu1 %v6282_v44  ;;  %v3178_v14 = vld [vmem:[#allocation14 + $0x68] sm:$0xff]  ;;  %v6323_v44 = vcombine.low %v3165_v7, %v3169_v36  ;;  %v6332_v17 = vcombine.high %v3173_v39, %v3177_v11  ;;  %v6331_v23 = vcombine.low %v3173_v39, %v3177_v11 }
 0x3f1   :  { %v6334_v18 = vcombine.high %v3174_v12, %v3178_v14  ;;  %v6333_v24 = vcombine.low %v3174_v12, %v3178_v14  ;;  %v6372_v7 = vcombine.high %v3213_v40, %v3217_v4  ;;  %v6380_v39 = vcombine.high %v3221_v8, %v3225_v35  ;;  %v3229_v12 = vld [vmem:[#allocation14 + $0x200] sm:$0xff] }
 0x3f2   :  { %v3233_v14 = vld [vmem:[#allocation14 + $0x220] sm:$0xff] }
 0x3f3   :  { %4166 = vmatpush1.bf16.msra.mxu0 %v6279_v19  ;;  %4207 = vmatpush1.bf16.msra.mxu1 %v6281_v20  ;;  %v3181_v19 = vld [vmem:[#allocation14 + $0x80] sm:$0xff] }
 0x3f4   :  { %4167 = vmatprep.subr.bf16.mxu0 %v6288_v21  ;;  %4208 = vmatprep.subr.bf16.mxu1 %v6290_v22  ;;  %v3185_v20 = vld [vmem:[#allocation14 + $0xa0] sm:$0xff]  ;;  %v3182_v21 = vld [vmem:[#allocation14 + $0x88] sm:$0xff] }
 0x3f5   :  { %v3186_v22 = vld [vmem:[#allocation14 + $0xa8] sm:$0xff]  ;;  %v6340_v60 = vcombine.high %v3181_v19, %v3185_v20 }
 0x3f6   :  { %v6342_v51 = vcombine.high %v3182_v21, %v3186_v22 }
 0x3f7   :  { %4168 = vmatpush1.bf16.msra.mxu0 %v6287_v28  ;;  %4209 = vmatpush1.bf16.msra.mxu1 %v6289_v30  ;;  %v3193_v28 = vld [vmem:[#allocation14 + $0xe0] sm:$0xff]  ;;  %v3190_v30 = vld [vmem:[#allocation14 + $0xc8] sm:$0xff] }
 0x3f8   :  { %4169 = vmatprep.subr.bf16.mxu0 %v6296_v32  ;;  %4210 = vmatprep.subr.bf16.mxu1 %v6298_v37  ;;  %v3194_v32 = vld [vmem:[#allocation14 + $0xe8] sm:$0xff]  ;;  %v6341_v37 = vcombine.low %v3182_v21, %v3186_v22  ;;  %v6348_v46 = vcombine.high %v3189_v27, %v3193_v28  ;;  %v3237_v21 = vld [vmem:[#allocation14 + $0x240] sm:$0xff] }
 0x3f9   :  { %v6350_v48 = vcombine.high %v3190_v30, %v3194_v32  ;;  %v3241_v22 = vld [vmem:[#allocation14 + $0x260] sm:$0xff] }
 0x3fb   :  { %4170 = vmatpush1.bf16.msra.mxu0 %v6295_v56  ;;  %4211 = vmatpush1.bf16.msra.mxu1 %v6297_v26  ;;  %v3198_v56 = vld [vmem:[#allocation14 + $0x108] sm:$0xff] }
 0x3fc   :  { %4171 = vmatprep.subr.bf16.mxu0 %v6304_v57  ;;  %4212 = vmatprep.subr.bf16.mxu1 %v6306_v61  ;;  %v3202_v26 = vld [vmem:[#allocation14 + $0x128] sm:$0xff]  ;;  %v6347_v57 = vcombine.low %v3189_v27, %v3193_v28  ;;  %v6349_v61 = vcombine.low %v3190_v30, %v3194_v32  ;;  %v6396_v27 = vcombine.high %v3237_v21, %v3241_v22  ;;  %v3245_v30 = vld [vmem:[#allocation14 + $0x280] sm:$0xff] }
 0x3fd   :  { %v6358_v31 = vcombine.high %v3198_v56, %v3202_v26  ;;  %v3249_v32 = vld [vmem:[#allocation14 + $0x2a0] sm:$0xff] }
 0x3ff   :  { %4172 = vmatpush1.bf16.msra.mxu0 %v6303_v62  ;;  %4213 = vmatpush1.bf16.msra.mxu1 %v6305_v63  ;;  %v3206_v62 = vld [vmem:[#allocation14 + $0x148] sm:$0xff] }
 0x400   :  { %4173 = vmatprep.subr.bf16.mxu0 %v6312_v13  ;;  %4214 = vmatprep.subr.bf16.mxu1 %v6314_v1  ;;  %v3210_v63 = vld [vmem:[#allocation14 + $0x168] sm:$0xff]  ;;  %v6355_v13 = vcombine.low %v3197_v54, %v3201_v55  ;;  %v6357_v1 = vcombine.low %v3198_v56, %v3202_v26  ;;  %v6404_v54 = vcombine.high %v3245_v30, %v3249_v32  ;;  %v3253_v56 = vld [vmem:[#allocation14 + $0x2c0] sm:$0xff] }
 0x401   :  { %v6366_v3 = vcombine.high %v3206_v62, %v3210_v63  ;;  %v3257_v26 = vld [vmem:[#allocation14 + $0x2e0] sm:$0xff] }
 0x403   :  { %4174 = vmatpush1.bf16.msra.mxu0 %v6311_v33  ;;  %4215 = vmatpush1.bf16.msra.mxu1 %v6313_v5  ;;  %v3214_v33 = vld [vmem:[#allocation14 + $0x188] sm:$0xff] }
 0x404   :  { %4175 = vmatprep.subr.bf16.mxu0 %v6320_v6  ;;  %4216 = vmatprep.subr.bf16.mxu1 %v6322_v58  ;;  %v3218_v5 = vld [vmem:[#allocation14 + $0x1a8] sm:$0xff]  ;;  %v6363_v6 = vcombine.low %v3205_v25, %v3209_v29  ;;  %v6365_v58 = vcombine.low %v3206_v62, %v3210_v63  ;;  %v6412_v25 = vcombine.high %v3253_v56, %v3257_v26  ;;  %v3261_v62 = vld [vmem:[#allocation14 + $0x300] sm:$0xff] }
 0x405   :  { %v6374_v36 = vcombine.high %v3214_v33, %v3218_v5  ;;  %v3265_v63 = vld [vmem:[#allocation14 + $0x320] sm:$0xff] }
 0x407   :  { %4176 = vmatpush1.bf16.msra.mxu0 %v6319_v42  ;;  %4217 = vmatpush1.bf16.msra.mxu1 %v6321_v9  ;;  %v3222_v42 = vld [vmem:[#allocation14 + $0x1c8] sm:$0xff] }
 0x408   :  { %4867 = vmatprep.subr.bf16.mxu0 %v6324_v41  ;;  %4908 = vmatprep.subr.bf16.mxu1 %v6326_v10  ;;  %v3226_v9 = vld [vmem:[#allocation14 + $0x1e8] sm:$0xff]  ;;  %v6371_v41 = vcombine.low %v3213_v40, %v3217_v4  ;;  %v6373_v10 = vcombine.low %v3214_v33, %v3218_v5  ;;  %v6420_v40 = vcombine.high %v3261_v62, %v3265_v63  ;;  %v3269_v33 = vld [vmem:[#allocation14 + $0x340] sm:$0xff] }
 0x409   :  { %v6382_v11 = vcombine.high %v3222_v42, %v3226_v9  ;;  %v3273_v5 = vld [vmem:[#allocation14 + $0x360] sm:$0xff] }
 0x40a   :  { %4178 = vmatmul.mubr.bf16.vlgmr.msra.gmra.mrb[28].mxu0 %v7546_v0  ;;  %4219 = vmatmul.mubr.bf16.vlgmr.msra.gmra.mrb[28].mxu1 %v7546_v0  ;;  %v6339_v0 = vcombine.low %v3181_v19, %v3185_v20  ;;  %v6388_v19 = vcombine.high %v3229_v12, %v3233_v14 }
 0x40b   :  { %4868 = vmatpush1.bf16.msra.mxu0 %v6323_v44  ;;  %4899 = vmatprep.mubr.bf16.mxu0 %v7552_v16  ;;  %v3230_v44 = vld [vmem:[#allocation14 + $0x208] sm:$0xff] }
 0x40c   :  { %4909 = vmatpush1.bf16.msra.mxu1 %v6325_v15  ;;  %4940 = vmatprep.mubr.bf16.mxu1 %v7552_v16  ;;  %v3234_v15 = vld [vmem:[#allocation14 + $0x228] sm:$0xff] }
 0x40d   :  { %4869 = vmatprep.subr.bf16.mxu0 %v6332_v17  ;;  %4910 = vmatprep.subr.bf16.mxu1 %v6334_v18  ;;  %v6379_v17 = vcombine.low %v3221_v8, %v3225_v35  ;;  %v6381_v18 = vcombine.low %v3222_v42, %v3226_v9  ;;  %v6390_v20 = vcombine.high %v3230_v44, %v3234_v15  ;;  %v3277_v42 = vld [vmem:[#allocation14 + $0x380] sm:$0xff] }
 0x40e   :  { %v6428_v8 = vcombine.high %v3269_v33, %v3273_v5  ;;  %v3281_v9 = vld [vmem:[#allocation14 + $0x3a0] sm:$0xff] }
 0x40f   :  { %4870 = vmatpush1.bf16.msra.mxu0 %v6331_v23  ;;  %v3238_v23 = vld [vmem:[#allocation14 + $0x248] sm:$0xff] }
 0x410   :  { %4911 = vmatpush1.bf16.msra.mxu1 %v6333_v24  ;;  %4871 = vmatprep.subr.bf16.mxu0 %v6340_v60  ;;  %v3242_v24 = vld [vmem:[#allocation14 + $0x268] sm:$0xff]  ;;  %v6387_v60 = vcombine.low %v3229_v12, %v3233_v14  ;;  %v6436_v12 = vcombine.high %v3277_v42, %v3281_v9 }
 0x411   :  { %4912 = vmatprep.subr.bf16.mxu1 %v6342_v51  ;;  %v6389_v51 = vcombine.low %v3230_v44, %v3234_v15  ;;  %v6398_v28 = vcombine.high %v3238_v23, %v3242_v24  ;;  %v3285_v44 = vld [vmem:[#allocation14 + $0x3c0] sm:$0xff] }
 0x412   :  { %v3289_v15 = vld [vmem:[#allocation14 + $0x3e0] sm:$0xff] }
 0x413   :  { %4872 = vmatpush1.bf16.msra.mxu0 %v6339_v0  ;;  %v3246_v0 = vld [vmem:[#allocation14 + $0x288] sm:$0xff] }
 0x414   :  { %4913 = vmatpush1.bf16.msra.mxu1 %v6341_v37  ;;  %4873 = vmatprep.subr.bf16.mxu0 %v6348_v46  ;;  %v3250_v37 = vld [vmem:[#allocation14 + $0x2a8] sm:$0xff]  ;;  %v6395_v46 = vcombine.low %v3237_v21, %v3241_v22  ;;  %v6444_v21 = vcombine.high %v3285_v44, %v3289_v15 }
 0x415   :  { %4914 = vmatprep.subr.bf16.mxu1 %v6350_v48  ;;  %v6397_v48 = vcombine.low %v3238_v23, %v3242_v24  ;;  %v6406_v55 = vcombine.high %v3246_v0, %v3250_v37  ;;  %v3167_v23 = vld [vmem:[#allocation14 + $0x10] sm:$0xff] }
 0x416   :  { %v3171_v24 = vld [vmem:[#allocation14 + $0x30] sm:$0xff] }
 0x417   :  { %4874 = vmatpush1.bf16.msra.mxu0 %v6347_v57  ;;  %v3254_v57 = vld [vmem:[#allocation14 + $0x2c8] sm:$0xff] }
 0x418   :  { %4915 = vmatpush1.bf16.msra.mxu1 %v6349_v61  ;;  %4875 = vmatprep.subr.bf16.mxu0 %v6356_v34  ;;  %v3258_v61 = vld [vmem:[#allocation14 + $0x2e8] sm:$0xff]  ;;  %v6403_v34 = vcombine.low %v3245_v30, %v3249_v32  ;;  %v6328_v30 = vcombine.high %v3167_v23, %v3171_v24 }
 0x419   :  { %4916 = vmatprep.subr.bf16.mxu1 %v6358_v31  ;;  %v6405_v31 = vcombine.low %v3246_v0, %v3250_v37  ;;  %v6414_v29 = vcombine.high %v3254_v57, %v3258_v61  ;;  %v3175_v0 = vld [vmem:[#allocation14 + $0x50] sm:$0xff] }
 0x41a   :  { %v3179_v37 = vld [vmem:[#allocation14 + $0x70] sm:$0xff] }
 0x41b   :  { %4876 = vmatpush1.bf16.msra.mxu0 %v6355_v13  ;;  %v3262_v13 = vld [vmem:[#allocation14 + $0x308] sm:$0xff] }
 0x41c   :  { %4917 = vmatpush1.bf16.msra.mxu1 %v6357_v1  ;;  %4877 = vmatprep.subr.bf16.mxu0 %v6364_v2  ;;  %v3266_v1 = vld [vmem:[#allocation14 + $0x328] sm:$0xff]  ;;  %v6411_v2 = vcombine.low %v3253_v56, %v3257_v26  ;;  %v6336_v26 = vcombine.high %v3175_v0, %v3179_v37 }
 0x41d   :  { %4918 = vmatprep.subr.bf16.mxu1 %v6366_v3  ;;  %v6413_v3 = vcombine.low %v3254_v57, %v3258_v61  ;;  %v6422_v4 = vcombine.high %v3262_v13, %v3266_v1  ;;  %v3183_v57 = vld [vmem:[#allocation14 + $0x90] sm:$0xff] }
 0x41e   :  { %v3187_v61 = vld [vmem:[#allocation14 + $0xb0] sm:$0xff] }
 0x41f   :  { %4878 = vmatpush1.bf16.msra.mxu0 %v6363_v6  ;;  %v3270_v6 = vld [vmem:[#allocation14 + $0x348] sm:$0xff] }
 0x420   :  { %4919 = vmatpush1.bf16.msra.mxu1 %v6365_v58  ;;  %4879 = vmatprep.subr.bf16.mxu0 %v6372_v7  ;;  %v3274_v58 = vld [vmem:[#allocation14 + $0x368] sm:$0xff]  ;;  %v6419_v7 = vcombine.low %v3261_v62, %v3265_v63  ;;  %v6344_v62 = vcombine.high %v3183_v57, %v3187_v61 }
 0x421   :  { %4920 = vmatprep.subr.bf16.mxu1 %v6374_v36  ;;  %v6421_v36 = vcombine.low %v3262_v13, %v3266_v1  ;;  %v6430_v35 = vcombine.high %v3270_v6, %v3274_v58  ;;  %v3191_v13 = vld [vmem:[#allocation14 + $0xd0] sm:$0xff] }
 0x422   :  { %v3195_v1 = vld [vmem:[#allocation14 + $0xf0] sm:$0xff] }
 0x423   :  { %4880 = vmatpush1.bf16.msra.mxu0 %v6371_v41  ;;  %v3278_v41 = vld [vmem:[#allocation14 + $0x388] sm:$0xff] }
 0x424   :  { %4921 = vmatpush1.bf16.msra.mxu1 %v6373_v10  ;;  %4881 = vmatprep.subr.bf16.mxu0 %v6380_v39  ;;  %v3282_v10 = vld [vmem:[#allocation14 + $0x3a8] sm:$0xff]  ;;  %v6427_v39 = vcombine.low %v3269_v33, %v3273_v5  ;;  %v6352_v33 = vcombine.high %v3191_v13, %v3195_v1 }
 0x425   :  { %4922 = vmatprep.subr.bf16.mxu1 %v6382_v11  ;;  %v6429_v11 = vcombine.low %v3270_v6, %v3274_v58  ;;  %v6438_v14 = vcombine.high %v3278_v41, %v3282_v10  ;;  %v3199_v6 = vld [vmem:[#allocation14 + $0x110] sm:$0xff] }
 0x426   :  { %v3203_v58 = vld [vmem:[#allocation14 + $0x130] sm:$0xff] }
 0x427   :  { %4882 = vmatpush1.bf16.msra.mxu0 %v6379_v17  ;;  %v3286_v17 = vld [vmem:[#allocation14 + $0x3c8] sm:$0xff] }
 0x428   :  { %4923 = vmatpush1.bf16.msra.mxu1 %v6381_v18  ;;  %4883 = vmatprep.subr.bf16.mxu0 %v6388_v19  ;;  %v3290_v18 = vld [vmem:[#allocation14 + $0x3e8] sm:$0xff]  ;;  %v6435_v19 = vcombine.low %v3277_v42, %v3281_v9  ;;  %v3207_v9 = vld [vmem:[#allocation14 + $0x150] sm:$0xff] }
 0x429   :  { %4924 = vmatprep.subr.bf16.mxu1 %v6390_v20  ;;  %v6437_v20 = vcombine.low %v3278_v41, %v3282_v10  ;;  %v6446_v22 = vcombine.high %v3286_v17, %v3290_v18  ;;  %v3211_v41 = vld [vmem:[#allocation14 + $0x170] sm:$0xff]  ;;  %v3208_v10 = vld [vmem:[#allocation14 + $0x158] sm:$0xff] }
 0x42b   :  { %4884 = vmatpush1.bf16.msra.mxu0 %v6387_v60  ;;  %v3168_v60 = vld [vmem:[#allocation14 + $0x18] sm:$0xff] }
 0x42c   :  { %4925 = vmatpush1.bf16.msra.mxu1 %v6389_v51  ;;  %4885 = vmatprep.subr.bf16.mxu0 %v6396_v27  ;;  %v3172_v51 = vld [vmem:[#allocation14 + $0x38] sm:$0xff]  ;;  %v6443_v27 = vcombine.low %v3285_v44, %v3289_v15  ;;  %v3215_v15 = vld [vmem:[#allocation14 + $0x190] sm:$0xff] }
 0x42d   :  { %4926 = vmatprep.subr.bf16.mxu1 %v6398_v28  ;;  %v6445_v28 = vcombine.low %v3286_v17, %v3290_v18  ;;  %v6330_v32 = vcombine.high %v3168_v60, %v3172_v51  ;;  %v6329_v56 = vcombine.low %v3168_v60, %v3172_v51  ;;  %v3219_v17 = vld [vmem:[#allocation14 + $0x1b0] sm:$0xff]  ;;  %v3216_v18 = vld [vmem:[#allocation14 + $0x198] sm:$0xff] }
 0x42e   :  { %v3227_v60 = vld [vmem:[#allocation14 + $0x1f0] sm:$0xff]  ;;  %v3224_v51 = vld [vmem:[#allocation14 + $0x1d8] sm:$0xff] }
 0x42f   :  { %4886 = vmatpush1.bf16.msra.mxu0 %v6395_v46  ;;  %v6327_v46 = vcombine.low %v3167_v23, %v3171_v24  ;;  %v3223_v24 = vld [vmem:[#allocation14 + $0x1d0] sm:$0xff] }
 0x430   :  { %4927 = vmatpush1.bf16.msra.mxu1 %v6397_v48  ;;  %4887 = vmatprep.subr.bf16.mxu0 %v6404_v54  ;;  %v3176_v48 = vld [vmem:[#allocation14 + $0x58] sm:$0xff] }
 0x431   :  { %4928 = vmatprep.subr.bf16.mxu1 %v6406_v55  ;;  %v3180_v54 = vld [vmem:[#allocation14 + $0x78] sm:$0xff]  ;;  %v7560_v55 = vpack.c.bf16 %v7540_v59, %v7540_v59 }
 0x432   :  { %v6337_v59 = vcombine.low %v3176_v48, %v3180_v54 }
 0x433   :  { %4888 = vmatpush1.bf16.msra.mxu0 %v6403_v34  ;;  %v6338_v34 = vcombine.high %v3176_v48, %v3180_v54  ;;  %v3232_v48 = vld [vmem:[#allocation14 + $0x218] sm:$0xff] }
 0x434   :  { %4929 = vmatpush1.bf16.msra.mxu1 %v6405_v31  ;;  %4889 = vmatprep.subr.bf16.mxu0 %v6412_v25  ;;  %v3184_v31 = vld [vmem:[#allocation14 + $0x98] sm:$0xff] }
 0x435   :  { %4930 = vmatprep.subr.bf16.mxu1 %v6414_v29  ;;  %v3188_v25 = vld [vmem:[#allocation14 + $0xb8] sm:$0xff]  ;;  %v6335_v29 = vcombine.low %v3175_v0, %v3179_v37  ;;  %v3231_v37 = vld [vmem:[#allocation14 + $0x210] sm:$0xff] }
 0x436   :  { %v6346_v63 = vcombine.high %v3184_v31, %v3188_v25  ;;  %v3236_v54 = vld [vmem:[#allocation14 + $0x238] sm:$0xff] }
 0x437   :  { %4890 = vmatpush1.bf16.msra.mxu0 %v6411_v2  ;;  %v3192_v2 = vld [vmem:[#allocation14 + $0xd8] sm:$0xff] }
 0x438   :  { %4931 = vmatpush1.bf16.msra.mxu1 %v6413_v3  ;;  %4891 = vmatprep.subr.bf16.mxu0 %v6420_v40  ;;  %v3196_v3 = vld [vmem:[#allocation14 + $0xf8] sm:$0xff]  ;;  %v6343_v40 = vcombine.low %v3183_v57, %v3187_v61  ;;  %v6394_v61 = vcombine.high %v3232_v48, %v3236_v54 }
 0x439   :  { %4932 = vmatprep.subr.bf16.mxu1 %v6422_v4  ;;  %v6345_v4 = vcombine.low %v3184_v31, %v3188_v25  ;;  %v6354_v5 = vcombine.high %v3192_v2, %v3196_v3  ;;  %v3243_v31 = vld [vmem:[#allocation14 + $0x270] sm:$0xff]  ;;  %v3240_v25 = vld [vmem:[#allocation14 + $0x258] sm:$0xff] }
 0x43b   :  { %4892 = vmatpush1.bf16.msra.mxu0 %v6419_v7  ;;  %v3200_v7 = vld [vmem:[#allocation14 + $0x118] sm:$0xff] }
 0x43c   :  { %4933 = vmatpush1.bf16.msra.mxu1 %v6421_v36  ;;  %4893 = vmatprep.subr.bf16.mxu0 %v6428_v8  ;;  %v3204_v36 = vld [vmem:[#allocation14 + $0x138] sm:$0xff]  ;;  %v6353_v8 = vcombine.low %v3192_v2, %v3196_v3  ;;  %v3251_v2 = vld [vmem:[#allocation14 + $0x2b0] sm:$0xff] }
 0x43d   :  { %4934 = vmatprep.subr.bf16.mxu1 %v6430_v35  ;;  %v6360_v35 = vcombine.high %v3199_v6, %v3203_v58  ;;  %v6362_v42 = vcombine.high %v3200_v7, %v3204_v36  ;;  %v3248_v3 = vld [vmem:[#allocation14 + $0x298] sm:$0xff] }
 0x43f   :  { %4894 = vmatpush1.bf16.msra.mxu0 %v6427_v39  ;;  %v3212_v39 = vld [vmem:[#allocation14 + $0x178] sm:$0xff] }
 0x440   :  { %4935 = vmatpush1.bf16.msra.mxu1 %v6429_v11  ;;  %4895 = vmatprep.subr.bf16.mxu0 %v6436_v12  ;;  %v6359_v11 = vcombine.low %v3199_v6, %v3203_v58  ;;  %v6361_v12 = vcombine.low %v3200_v7, %v3204_v36  ;;  %v6370_v44 = vcombine.high %v3208_v10, %v3212_v39  ;;  %v3255_v58 = vld [vmem:[#allocation14 + $0x2d0] sm:$0xff]  ;;  %v3256_v36 = vld [vmem:[#allocation14 + $0x2d8] sm:$0xff] }
 0x441   :  { %4936 = vmatprep.subr.bf16.mxu1 %v6438_v14  ;;  %v6368_v14 = vcombine.high %v3207_v9, %v3211_v41  ;;  %v3259_v7 = vld [vmem:[#allocation14 + $0x2f0] sm:$0xff] }
 0x443   :  { %4896 = vmatpush1.bf16.msra.mxu0 %v6435_v19  ;;  %v3220_v19 = vld [vmem:[#allocation14 + $0x1b8] sm:$0xff] }
 0x444   :  { %4937 = vmatpush1.bf16.msra.mxu1 %v6437_v20  ;;  %4897 = vmatprep.subr.bf16.mxu0 %v6444_v21  ;;  %v6367_v20 = vcombine.low %v3207_v9, %v3211_v41  ;;  %v6369_v21 = vcombine.low %v3208_v10, %v3212_v39  ;;  %v6378_v23 = vcombine.high %v3216_v18, %v3220_v19  ;;  %v3263_v41 = vld [vmem:[#allocation14 + $0x310] sm:$0xff]  ;;  %v3264_v39 = vld [vmem:[#allocation14 + $0x318] sm:$0xff] }
 0x445   :  { %4938 = vmatprep.subr.bf16.mxu1 %v6446_v22  ;;  %v6376_v22 = vcombine.high %v3215_v15, %v3219_v17  ;;  %v3267_v10 = vld [vmem:[#allocation14 + $0x330] sm:$0xff] }
 0x447   :  { %4898 = vmatpush1.bf16.msra.mxu0 %v6443_v27  ;;  %v3228_v27 = vld [vmem:[#allocation14 + $0x1f8] sm:$0xff] }
 0x448   :  { %4939 = vmatpush1.bf16.msra.mxu1 %v6445_v28  ;;  %4949 = vmatprep.subr.bf16.mxu0 %v6328_v30  ;;  %v6375_v28 = vcombine.low %v3215_v15, %v3219_v17  ;;  %v6377_v30 = vcombine.low %v3216_v18, %v3220_v19  ;;  %v6386_v0 = vcombine.high %v3224_v51, %v3228_v27  ;;  %v3271_v17 = vld [vmem:[#allocation14 + $0x350] sm:$0xff]  ;;  %v3272_v19 = vld [vmem:[#allocation14 + $0x358] sm:$0xff] }
 0x449   :  { %4990 = vmatprep.subr.bf16.mxu1 %v6330_v32  ;;  %v6384_v32 = vcombine.high %v3223_v24, %v3227_v60  ;;  %v3275_v18 = vld [vmem:[#allocation14 + $0x370] sm:$0xff] }
 0x44a   :  { %4900 = vmatmul.mubr.bf16.vlgmr.msra.gmra.mrb[32].mxu0 %v7560_v55 }
 0x44b   :  { %4941 = vmatmul.mubr.bf16.vlgmr.msra.gmra.mrb[32].mxu1 %v7560_v55  ;;  %4950 = vmatpush1.bf16.msra.mxu0 %v6327_v46  ;;  %v3235_v46 = vld [vmem:[#allocation14 + $0x230] sm:$0xff] }
 0x44c   :  { %4981 = vmatprep.mubr.bf16.mxu0 %v7552_v16  ;;  %4991 = vmatpush1.bf16.msra.mxu1 %v6329_v56  ;;  %v6383_v56 = vcombine.low %v3223_v24, %v3227_v60  ;;  %v6392_v57 = vcombine.high %v3231_v37, %v3235_v46  ;;  %v3279_v60 = vld [vmem:[#allocation14 + $0x390] sm:$0xff] }
 0x44d   :  { %5022 = vmatprep.mubr.bf16.mxu1 %v7552_v16  ;;  %4951 = vmatprep.subr.bf16.mxu0 %v6336_v26  ;;  %v6351_v16 = vcombine.low %v3191_v13, %v3195_v1  ;;  %v6385_v26 = vcombine.low %v3224_v51, %v3228_v27  ;;  %v3247_v1 = vld [vmem:[#allocation14 + $0x290] sm:$0xff]  ;;  %v3280_v27 = vld [vmem:[#allocation14 + $0x398] sm:$0xff] }
 0x44e   :  { %4992 = vmatprep.subr.bf16.mxu1 %v6338_v34  ;;  %v3239_v34 = vld [vmem:[#allocation14 + $0x250] sm:$0xff] }
 0x44f   :  { %4952 = vmatpush1.bf16.msra.mxu0 %v6335_v29  ;;  %v3244_v29 = vld [vmem:[#allocation14 + $0x278] sm:$0xff]  ;;  %v3283_v51 = vld [vmem:[#allocation14 + $0x3b0] sm:$0xff] }
 0x450   :  { %4993 = vmatpush1.bf16.msra.mxu1 %v6337_v59  ;;  %4953 = vmatprep.subr.bf16.mxu0 %v6344_v62  ;;  %v6391_v59 = vcombine.low %v3231_v37, %v3235_v46  ;;  %v6393_v62 = vcombine.low %v3232_v48, %v3236_v54  ;;  %v6402_v13 = vcombine.high %v3240_v25, %v3244_v29  ;;  %v3287_v46 = vld [vmem:[#allocation14 + $0x3d0] sm:$0xff]  ;;  %v3288_v54 = vld [vmem:[#allocation14 + $0x3d8] sm:$0xff] }
 0x451   :  { %4994 = vmatprep.subr.bf16.mxu1 %v6346_v63  ;;  %v6400_v63 = vcombine.high %v3239_v34, %v3243_v31  ;;  %v3291_v48 = vld [vmem:[#allocation14 + $0x3f0] sm:$0xff] }
 0x453   :  { %4954 = vmatpush1.bf16.msra.mxu0 %v6343_v40  ;;  %v3252_v40 = vld [vmem:[#allocation14 + $0x2b8] sm:$0xff] }
 0x454   :  { %4995 = vmatpush1.bf16.msra.mxu1 %v6345_v4  ;;  %4955 = vmatprep.subr.bf16.mxu0 %v6352_v33  ;;  %v6399_v4 = vcombine.low %v3239_v34, %v3243_v31  ;;  %v6401_v33 = vcombine.low %v3240_v25, %v3244_v29  ;;  %v6410_v6 = vcombine.high %v3248_v3, %v3252_v40  ;;  %v6816_v29 = vld [vmem:[#allocation17 + $0x40] sm:$0xff]  }
 0x455   :  { %4996 = vmatprep.subr.bf16.mxu1 %v6354_v5  ;;  %v6408_v5 = vcombine.high %v3247_v1, %v3251_v2  ;;  %v6447_v31 = vcombine.low %v3287_v46, %v3291_v48 }
 0x457   :  { %4956 = vmatpush1.bf16.msra.mxu0 %v6351_v16  ;;  %v3260_v16 = vld [vmem:[#allocation14 + $0x2f8] sm:$0xff] }
 0x458   :  { %4997 = vmatpush1.bf16.msra.mxu1 %v6353_v8  ;;  %4957 = vmatprep.subr.bf16.mxu0 %v6360_v35  ;;  %v6407_v8 = vcombine.low %v3247_v1, %v3251_v2  ;;  %v6409_v35 = vcombine.low %v3248_v3, %v3252_v40  ;;  %v6418_v9 = vcombine.high %v3256_v36, %v3260_v16  ;;  %v6821_v1 = vld [vmem:[#allocation17 + $0xc8] sm:$0xff]   ;;  %v6824_v40 = vld [vmem:[#allocation17 + $0x50] sm:$0xff]  }
 0x459   :  { %4998 = vmatprep.subr.bf16.mxu1 %v6362_v42  ;;  %v6416_v42 = vcombine.high %v3255_v58, %v3259_v7  ;;  %v6822_v2 = vld [vmem:[#allocation17 + $0x8] sm:$0xff]  }
 0x45a   :  { %v6823_v3 = vld [vmem:[#allocation17 + $0x88] sm:$0xff]  }
 0x45b   :  { %4958 = vmatpush1.bf16.msra.mxu0 %v6359_v11  ;;  %v3268_v11 = vld [vmem:[#allocation14 + $0x338] sm:$0xff] }
 0x45c   :  { %4999 = vmatpush1.bf16.msra.mxu1 %v6361_v12  ;;  %4959 = vmatprep.subr.bf16.mxu0 %v6368_v14  ;;  %v6415_v12 = vcombine.low %v3255_v58, %v3259_v7  ;;  %v6417_v14 = vcombine.low %v3256_v36, %v3260_v16  ;;  %v6426_v15 = vcombine.high %v3264_v39, %v3268_v11  ;;  %v6829_v58 = vld [vmem:[#allocation17 + $0xd8] sm:$0xff]   ;;  %v6832_v36 = vld [vmem:[#allocation17 + $0x60] sm:$0xff]  }
 0x45d   :  { %5000 = vmatprep.subr.bf16.mxu1 %v6370_v44  ;;  %v6424_v44 = vcombine.high %v3263_v41, %v3267_v10  ;;  %v6830_v7 = vld [vmem:[#allocation17 + $0x18] sm:$0xff]   ;;  %v6833_v16 = vld [vmem:[#allocation17 + $0xe0] sm:$0xff]  }
 0x45f   :  { %4960 = vmatpush1.bf16.msra.mxu0 %v6367_v20  ;;  %v3276_v20 = vld [vmem:[#allocation14 + $0x378] sm:$0xff] }
 0x460   :  { %5001 = vmatpush1.bf16.msra.mxu1 %v6369_v21  ;;  %4961 = vmatprep.subr.bf16.mxu0 %v6376_v22  ;;  %v6423_v21 = vcombine.low %v3263_v41, %v3267_v10  ;;  %v6425_v22 = vcombine.low %v3264_v39, %v3268_v11  ;;  %v6434_v24 = vcombine.high %v3272_v19, %v3276_v20  ;;  %v6838_v39 = vld [vmem:[#allocation17 + $0x28] sm:$0xff]  }
 0x461   :  { %5002 = vmatprep.subr.bf16.mxu1 %v6378_v23  ;;  %v6432_v23 = vcombine.high %v3271_v17, %v3275_v18  ;;  %v6839_v11 = vld [vmem:[#allocation17 + $0xa8] sm:$0xff]  }
 0x463   :  { %4962 = vmatpush1.bf16.msra.mxu0 %v6375_v28  ;;  %v3284_v28 = vld [vmem:[#allocation14 + $0x3b8] sm:$0xff] }
 0x464   :  { %5003 = vmatpush1.bf16.msra.mxu1 %v6377_v30  ;;  %4963 = vmatprep.subr.bf16.mxu0 %v6384_v32  ;;  %v6431_v30 = vcombine.low %v3271_v17, %v3275_v18  ;;  %v6433_v32 = vcombine.low %v3272_v19, %v3276_v20  ;;  %v6442_v37 = vcombine.high %v3280_v27, %v3284_v28  ;;  %v6840_v19 = vld [vmem:[#allocation17 + $0x70] sm:$0xff]  }
 0x465   :  { %5004 = vmatprep.subr.bf16.mxu1 %v6386_v0  ;;  %v6440_v0 = vcombine.high %v3279_v60, %v3283_v51  ;;  %v6841_v20 = vld [vmem:[#allocation17 + $0xf0] sm:$0xff]  }
 0x467   :  { %4964 = vmatpush1.bf16.msra.mxu0 %v6383_v56  ;;  %v3292_v56 = vld [vmem:[#allocation14 + $0x3f8] sm:$0xff] }
 0x468   :  { %5005 = vmatpush1.bf16.msra.mxu1 %v6385_v26  ;;  %4965 = vmatprep.subr.bf16.mxu0 %v6392_v57  ;;  %v6439_v26 = vcombine.low %v3279_v60, %v3283_v51  ;;  %v6441_v57 = vcombine.low %v3280_v27, %v3284_v28  ;;  %v6450_v34 = vcombine.high %v3288_v54, %v3292_v56  ;;  %v6846_v60 = vld [vmem:[#allocation17 + $0x38] sm:$0xff]   ;;  %v6848_v27 = vld [vmem:[#allocation17 + $0x140] sm:$0xff]  }
 0x469   :  { %5006 = vmatprep.subr.bf16.mxu1 %v6394_v61  ;;  %v6448_v61 = vcombine.high %v3287_v46, %v3291_v48  ;;  %v6449_v25 = vcombine.low %v3288_v54, %v3292_v56  ;;  %v6847_v51 = vld [vmem:[#allocation17 + $0xb8] sm:$0xff]   ;;  %v6849_v28 = vld [vmem:[#allocation17 + $0x1c0] sm:$0xff]  }
 0x46b   :  { %4966 = vmatpush1.bf16.msra.mxu0 %v6391_v59  ;;  %v6817_v59 = vld [vmem:[#allocation17 + $0xc0] sm:$0xff]  }
 0x46c   :  { %5007 = vmatpush1.bf16.msra.mxu1 %v6393_v62  ;;  %4967 = vmatprep.subr.bf16.mxu0 %v6400_v63  ;;  %v6818_v62 = vld [vmem:[#allocation17] sm:$0xff]  }
 0x46d   :  { %5008 = vmatprep.subr.bf16.mxu1 %v6402_v13  ;;  %v6819_v63 = vld [vmem:[#allocation17 + $0x80] sm:$0xff]   ;;  %v6820_v13 = vld [vmem:[#allocation17 + $0x48] sm:$0xff]  }
 0x46f   :  { %4968 = vmatpush1.bf16.msra.mxu0 %v6399_v4  ;;  %v6825_v4 = vld [vmem:[#allocation17 + $0xd0] sm:$0xff]  }
 0x470   :  { %5009 = vmatpush1.bf16.msra.mxu1 %v6401_v33  ;;  %4969 = vmatprep.subr.bf16.mxu0 %v6408_v5  ;;  %v6826_v33 = vld [vmem:[#allocation17 + $0x10] sm:$0xff]  }
 0x471   :  { %5010 = vmatprep.subr.bf16.mxu1 %v6410_v6  ;;  %v6827_v5 = vld [vmem:[#allocation17 + $0x90] sm:$0xff]   ;;  %v6828_v6 = vld [vmem:[#allocation17 + $0x58] sm:$0xff]  }
 0x473   :  { %4970 = vmatpush1.bf16.msra.mxu0 %v6407_v8  ;;  %v6834_v8 = vld [vmem:[#allocation17 + $0x20] sm:$0xff]  }
 0x474   :  { %5011 = vmatpush1.bf16.msra.mxu1 %v6409_v35  ;;  %4971 = vmatprep.subr.bf16.mxu0 %v6416_v42  ;;  %v6835_v35 = vld [vmem:[#allocation17 + $0xa0] sm:$0xff]   ;;  %v6836_v42 = vld [vmem:[#allocation17 + $0x68] sm:$0xff]  }
 0x475   :  { %5012 = vmatprep.subr.bf16.mxu1 %v6418_v9  ;;  %v6837_v9 = vld [vmem:[#allocation17 + $0xe8] sm:$0xff]  }
 0x477   :  { %4972 = vmatpush1.bf16.msra.mxu0 %v6415_v12 }
 0x478   :  { %5013 = vmatpush1.bf16.msra.mxu1 %v6417_v14  ;;  %4973 = vmatprep.subr.bf16.mxu0 %v6424_v44 }
 0x479   :  { %5014 = vmatprep.subr.bf16.mxu1 %v6426_v15 }
 0x47b   :  { %4974 = vmatpush1.bf16.msra.mxu0 %v6423_v21  ;;  %v6842_v21 = vld [vmem:[#allocation17 + $0x30] sm:$0xff]  }
 0x47c   :  { %5015 = vmatpush1.bf16.msra.mxu1 %v6425_v22  ;;  %4975 = vmatprep.subr.bf16.mxu0 %v6432_v23  ;;  %v6843_v22 = vld [vmem:[#allocation17 + $0xb0] sm:$0xff]   ;;  %v6844_v23 = vld [vmem:[#allocation17 + $0x78] sm:$0xff]  }
 0x47d   :  { %5016 = vmatprep.subr.bf16.mxu1 %v6434_v24  ;;  %v6845_v24 = vld [vmem:[#allocation17 + $0xf8] sm:$0xff]  }
 0x47f   :  { %4976 = vmatpush1.bf16.msra.mxu0 %v6431_v30 }
 0x480   :  { %5017 = vmatpush1.bf16.msra.mxu1 %v6433_v32  ;;  %4977 = vmatprep.subr.bf16.mxu0 %v6440_v0 }
 0x481   :  { %5018 = vmatprep.subr.bf16.mxu1 %v6442_v37 }
 0x483   :  { %4978 = vmatpush1.bf16.msra.mxu0 %v6439_v26  ;;  %v7579_v26 = vld [vmem:[%s7640_s12] sm:$0xff]  ;;  %s7160_s12 = smov [#allocation19]  }
 0x484   :  { %5019 = vmatpush1.bf16.msra.mxu1 %v6441_v57  ;;  %4979 = vmatprep.subr.bf16.mxu0 %v6448_v61  ;;  %v5036_v57 = vrot.slane %v7579_v26, %v7447_v38  ;;  %s5793_s8 = sshll.u32 %s7160_s12, 4  ;;  %s5794_s8 = int_to_ptr.vmem [resolvable:$true] %s5793_s8 }
 0x485   :  { %5020 = vmatprep.subr.bf16.mxu1 %v6450_v34  ;;  %v5044_v34 = vrot.slane %v7579_v26, %v7455_v43  ;;  %s7086_s17 = scalar_lea.vmem %s5794_s8, 512  ;;  %p7091_p3 = scmp.lt.s32.totalorder %s5794_s8, %s5794_s8 }
 0x486   :  { %p7087_p2 = scmp.ne.s32.totalorder %s5794_s8, %s7086_s17  ;;  %p7092_p4 = scmp.lt.s32.totalorder %s7086_s17, %s7086_s17 }
 0x487   :  { %4980 = vmatpush1.bf16.msra.mxu0 %v6447_v31  ;;  %v5040_v31 = vrot.slane %v7579_v26, %v7458_v45 }
 0x488   :  { %5021 = vmatpush1.bf16.msra.mxu1 %v6449_v25  ;;  %6516 = vmatprep.subr.bf16.mxu0 %v6816_v29  ;;  %p7093_p5 = por %p7092_p4, %p7091_p3 }
 0x489   :  { %6538 = vmatprep.subr.bf16.mxu1 %v6817_v59 }
 0x48a   :  { %4982 = vmatmul.mubr.bf16.vlgmr.msra.gmra.mrb[36].mxu0 %v7560_v55  ;;  %p7094_p6 = pnand %p7093_p5, %p7087_p2 }
 0x48b   :  { %5023 = vmatmul.mubr.bf16.vlgmr.msra.gmra.mrb[36].mxu1 %v7560_v55  ;;  %6517 = vmatpush3.bf16.msra.mxu0 %v6818_v62  ;;  %v6831_v55 = vld [vmem:[#allocation17 + $0x98] sm:$0xff]   ;;  %v5048_v62 = vrot.slane %v7579_v26, %v7461_v47 }
 0x48c   :  { %6539 = vmatpush3.bf16.msra.mxu1 %v6819_v63  ;;  %6518 = vmatprep.subr.bf16.mxu0 %v6820_v13 }
 0x48d   :  { %6540 = vmatprep.subr.bf16.mxu1 %v6821_v1 }
 0x48f   :  { %6519 = vmatpush3.bf16.msra.mxu0 %v6822_v2 }
 0x490   :  { %6541 = vmatpush3.bf16.msra.mxu1 %v6823_v3  ;;  %6520 = vmatprep.subr.bf16.mxu0 %v6824_v40 }
 0x491   :  { %6542 = vmatprep.subr.bf16.mxu1 %v6825_v4 }
 0x493   :  { %6521 = vmatpush3.bf16.msra.mxu0 %v6826_v33 }
 0x494   :  { %6543 = vmatpush3.bf16.msra.mxu1 %v6827_v5  ;;  %6522 = vmatprep.subr.bf16.mxu0 %v6828_v6 }
 0x495   :  { %6544 = vmatprep.subr.bf16.mxu1 %v6829_v58 }
 0x497   :  { %6523 = vmatpush3.bf16.msra.mxu0 %v6830_v7 }
 0x498   :  { %6545 = vmatpush3.bf16.msra.mxu1 %v6831_v55  ;;  %6524 = vmatprep.subr.bf16.mxu0 %v6832_v36 }
 0x499   :  { %6546 = vmatprep.subr.bf16.mxu1 %v6833_v16  ;;  %v6850_v16 = vld [vmem:[#allocation17 + $0x100] sm:$0xff]  }
 0x49b   :  { %6525 = vmatpush3.bf16.msra.mxu0 %v6834_v8 }
 0x49c   :  { %6547 = vmatpush3.bf16.msra.mxu1 %v6835_v35  ;;  %6526 = vmatprep.subr.bf16.mxu0 %v6836_v42  ;;  %v6851_v35 = vld [vmem:[#allocation17 + $0x180] sm:$0xff]   ;;  %v6852_v42 = vld [vmem:[#allocation17 + $0x148] sm:$0xff]  }
 0x49d   :  { %v4097_v41 = vpop.f32.mrb[24].mxu0  ;;  %v4138_v10 = vpop.f32.mrb[24].mxu1  ;;  %6548 = vmatprep.subr.bf16.mxu1 %v6837_v9 }
 0x49e   :  { %v4099_v12 = vpop.f32.mrb[25].mxu0  ;;  %v4140_v14 = vpop.f32.mrb[25].mxu1 }
 0x49f   :  { %v4101_v44 = vpop.f32.mrb[26].mxu0  ;;  %v4142_v15 = vpop.f32.mrb[26].mxu1  ;;  %6527 = vmatpush3.bf16.msra.mxu0 %v6838_v39  ;;  %v6855_v39 = vld [vmem:[#allocation17 + $0x188] sm:$0xff]  }
 0x4a0   :  { %v4102_v17 = vpop.f32.mrb[27].mxu0  ;;  %v4143_v18 = vpop.f32.mrb[27].mxu1  ;;  %6549 = vmatpush3.bf16.msra.mxu1 %v6839_v11  ;;  %6528 = vmatprep.subr.bf16.mxu0 %v6840_v19  ;;  %v6856_v11 = vld [vmem:[#allocation17 + $0x150] sm:$0xff]   ;;  %v6860_v15 = vld [vmem:[#allocation17 + $0x158] sm:$0xff]  }
 0x4a1   :  { %6550 = vmatprep.subr.bf16.mxu1 %v6841_v20  ;;  %v6859_v44 = vld [vmem:[#allocation17 + $0x190] sm:$0xff]   ;;  %v6861_v17 = vld [vmem:[#allocation17 + $0x1d8] sm:$0xff]   ;;  %v6864_v20 = vld [vmem:[#allocation17 + $0x160] sm:$0xff]  }
 0x4a2   :  { %v6862_v18 = vld [vmem:[#allocation17 + $0x118] sm:$0xff]  }
 0x4a3   :  { %6529 = vmatpush3.bf16.msra.mxu0 %v6842_v21  ;;  %v6863_v19 = vld [vmem:[#allocation17 + $0x198] sm:$0xff]   ;;  %v6865_v21 = vld [vmem:[#allocation17 + $0x1e0] sm:$0xff]  }
 0x4a4   :  { %6551 = vmatpush3.bf16.msra.mxu1 %v6843_v22  ;;  %6530 = vmatprep.subr.bf16.mxu0 %v6844_v23  ;;  %v6866_v22 = vld [vmem:[#allocation17 + $0x120] sm:$0xff]  }
 0x4a5   :  { %6552 = vmatprep.subr.bf16.mxu1 %v6845_v24  ;;  %v6867_v23 = vld [vmem:[#allocation17 + $0x1a0] sm:$0xff]   ;;  %v6868_v24 = vld [vmem:[#allocation17 + $0x168] sm:$0xff]  }
 0x4a7   :  { %6531 = vmatpush3.bf16.msra.mxu0 %v6846_v60  ;;  %v6869_v60 = vld [vmem:[#allocation17 + $0x1e8] sm:$0xff]  }
 0x4a8   :  { %6553 = vmatpush3.bf16.msra.mxu1 %v6847_v51  ;;  %6560 = vmatprep.subr.bf16.mxu0 %v6848_v27  ;;  %v6870_v51 = vld [vmem:[#allocation17 + $0x128] sm:$0xff]  }
 0x4a9   :  { %6582 = vmatprep.subr.bf16.mxu1 %v6849_v28  ;;  %v6871_v27 = vld [vmem:[#allocation17 + $0x1a8] sm:$0xff]   ;;  %v6872_v28 = vld [vmem:[#allocation17 + $0x170] sm:$0xff]  }
 0x4dd   :  { %v7568_v30 = vpop.f32.mrb[28].mxu0  ;;  %v7570_v32 = vpop.f32.mrb[28].mxu1 }
 0x4de   :  { %v7572_v0 = vpop.f32.mrb[29].mxu0  ;;  %v7574_v37 = vpop.f32.mrb[29].mxu1 }
 0x4df   :  { %v4183_v46 = vpop.f32.mrb[30].mxu0  ;;  %v4224_v48 = vpop.f32.mrb[30].mxu1 }
 0x4e0   :  { %v4184_v54 = vpop.f32.mrb[31].mxu0  ;;  %v4225_v56 = vpop.f32.mrb[31].mxu1  ;;  %v6873_v46 = vld [vmem:[#allocation17 + $0x1f0] sm:$0xff]  }
 0x4e1   :  { %v6874_v48 = vld [vmem:[#allocation17 + $0x130] sm:$0xff]   ;;  %v6876_v56 = vld [vmem:[#allocation17 + $0x178] sm:$0xff]  }
 0x4e2   :  { %v6875_v54 = vld [vmem:[#allocation17 + $0x1b0] sm:$0xff]  }
 0x51d   :  { %v4901_v61 = vpop.f32.mrb[32].mxu0 }
 0x51e   :  { %v4902_v25 = vadd.f32 %v4901_v61, %v4097_v41  ;;  %v4942_v29 = vpop.f32.mrb[32].mxu1  ;;  %v4903_v59 = vpop.f32.mrb[33].mxu0  ;;  %v6853_v41 = vld [vmem:[#allocation17 + $0x1c8] sm:$0xff]   ;;  %v6878_v61 = vld [vmem:[#allocation17 + $0x138] sm:$0xff]  }
 0x51f   :  { %v4943_v63 = vadd.f32 %v4942_v29, %v4138_v10  ;;  %v4904_v13 = vadd.f32 %v4903_v59, %v4099_v12  ;;  %v4944_v1 = vpop.f32.mrb[33].mxu1  ;;  %v4905_v2 = vpop.f32.mrb[34].mxu0  ;;  %v6854_v10 = vld [vmem:[#allocation17 + $0x108] sm:$0xff]   ;;  %v6857_v12 = vld [vmem:[#allocation17 + $0x1d0] sm:$0xff]   ;;  %v5060_v29 = vrot.slane %v7579_v26, %v7493_v50  ;;  %v5056_v59 = vrot.slane %v7579_v26, %v7496_v52 }
 0x520   :  { %v5073_v3 = vadd.f32 %v5036_v57, %v4902_v25  ;;  %v4945_v40 = vadd.f32 %v4944_v1, %v4140_v14  ;;  %v4946_v38 = vpop.f32.mrb[34].mxu1  ;;  %v4906_v4 = vpop.f32.mrb[35].mxu0  ;;  %v6858_v14 = vld [vmem:[#allocation17 + $0x110] sm:$0xff]   ;;  %v6877_v57 = vld [vmem:[#allocation17 + $0x1f8] sm:$0xff]   ;;  %v5064_v1 = vrot.slane %v7579_v26, %v7499_v53 }
 0x521   :  { %v5075_v33 = vadd.f32 %v5044_v34, %v4943_v63  ;;  %v5074_v5 = vadd.f32 %v5040_v31, %v4904_v13  ;;  %v4947_v43 = vpop.f32.mrb[35].mxu1  ;;  %v6879_v34 = vld [vmem:[#allocation17 + $0x1b8] sm:$0xff]   ;;  %v5052_v31 = vrot.slane %v7579_v26, %v7490_v49 }
 0x522   :  { %v5081_v6 = vmax.f32 %v5073_v3, 0.0  ;;  %v5076_v58 = vadd.f32 %v5048_v62, %v4945_v40 }
 0x523   :  { %v5083_v45 = vmax.f32 %v5075_v33, 0.0  ;;  %v5082_v7 = vmax.f32 %v5074_v5, 0.0 }
 0x524   :  { %v5084_v55 = vmax.f32 %v5076_v58, 0.0  ;;  %v5089_v8 = vpack.c.bf16 %v5081_v6, %v5081_v6 }
 0x525   :  { %v5090_v36 = vpack.c.bf16 %v5082_v7, %v5082_v7  ;;  %v5091_v9 = vpack.c.bf16 %v5083_v45, %v5083_v45 }
 0x526   :  { %v5092_v47 = vpack.c.bf16 %v5084_v55, %v5084_v55 }
 0x527   :  { %5648 = vmatprep.mubr.bf16.mxu0 %v5090_v36 }
 0x528   :  { %5688 = vmatprep.mubr.bf16.mxu1 %v5092_v47  ;;  %5649 = vmatmul.mubr.bf16.vlgmr.msra.gmra.mrb[40].mxu0 %v5089_v8 }
 0x529   :  { %5689 = vmatmul.mubr.bf16.vlgmr.msra.gmra.mrb[40].mxu1 %v5091_v9  ;;  %6561 = vmatpush3.bf16.msra.mxu0 %v6850_v16 }
 0x52a   :  { %6583 = vmatpush3.bf16.msra.mxu1 %v6851_v35  ;;  %6562 = vmatprep.subr.bf16.mxu0 %v6852_v42 }
 0x52b   :  { %6584 = vmatprep.subr.bf16.mxu1 %v6853_v41 }
 0x52d   :  { %6563 = vmatpush3.bf16.msra.mxu0 %v6854_v10 }
 0x52e   :  { %6585 = vmatpush3.bf16.msra.mxu1 %v6855_v39  ;;  %6564 = vmatprep.subr.bf16.mxu0 %v6856_v11 }
 0x52f   :  { %6586 = vmatprep.subr.bf16.mxu1 %v6857_v12 }
 0x531   :  { %6565 = vmatpush3.bf16.msra.mxu0 %v6858_v14 }
 0x532   :  { %6587 = vmatpush3.bf16.msra.mxu1 %v6859_v44  ;;  %6566 = vmatprep.subr.bf16.mxu0 %v6860_v15 }
 0x533   :  { %6588 = vmatprep.subr.bf16.mxu1 %v6861_v17 }
 0x535   :  { %6567 = vmatpush3.bf16.msra.mxu0 %v6862_v18 }
 0x536   :  { %6589 = vmatpush3.bf16.msra.mxu1 %v6863_v19  ;;  %6568 = vmatprep.subr.bf16.mxu0 %v6864_v20 }
 0x537   :  { %6590 = vmatprep.subr.bf16.mxu1 %v6865_v21 }
 0x539   :  { %6569 = vmatpush3.bf16.msra.mxu0 %v6866_v22 }
 0x53a   :  { %6591 = vmatpush3.bf16.msra.mxu1 %v6867_v23  ;;  %6570 = vmatprep.subr.bf16.mxu0 %v6868_v24 }
 0x53b   :  { %6592 = vmatprep.subr.bf16.mxu1 %v6869_v60 }
 0x53d   :  { %6571 = vmatpush3.bf16.msra.mxu0 %v6870_v51 }
 0x53e   :  { %6593 = vmatpush3.bf16.msra.mxu1 %v6871_v27  ;;  %6572 = vmatprep.subr.bf16.mxu0 %v6872_v28 }
 0x53f   :  { %6594 = vmatprep.subr.bf16.mxu1 %v6873_v46 }
 0x541   :  { %6573 = vmatpush3.bf16.msra.mxu0 %v6874_v48 }
 0x542   :  { %6595 = vmatpush3.bf16.msra.mxu1 %v6875_v54  ;;  %6574 = vmatprep.subr.bf16.mxu0 %v6876_v56 }
 0x543   :  { %6596 = vmatprep.subr.bf16.mxu1 %v6877_v57 }
 0x545   :  { %6575 = vmatpush3.bf16.msra.mxu0 %v6878_v61 }
 0x546   :  { %6597 = vmatpush3.bf16.msra.mxu1 %v6879_v34 }
 0x55d   :  { %v4983_v25 = vpop.f32.mrb[36].mxu0 }
 0x55e   :  { %v4984_v62 = vadd.f32 %v4983_v25, %v7568_v30  ;;  %v5024_v63 = vpop.f32.mrb[36].mxu1  ;;  %v4985_v13 = vpop.f32.mrb[37].mxu0 }
 0x55f   :  { %v5025_v2 = vadd.f32 %v5024_v63, %v7570_v32  ;;  %v4986_v3 = vadd.f32 %v4985_v13, %v7572_v0  ;;  %v5026_v40 = vpop.f32.mrb[37].mxu1  ;;  %v4987_v49 = vpop.f32.mrb[38].mxu0 }
 0x560   :  { %v5077_v38 = vadd.f32 %v5052_v31, %v4984_v62  ;;  %v5027_v4 = vadd.f32 %v5026_v40, %v7574_v37  ;;  %v5028_v50 = vpop.f32.mrb[38].mxu1  ;;  %v4988_v33 = vpop.f32.mrb[39].mxu0 }
 0x561   :  { %v5079_v5 = vadd.f32 %v5060_v29, %v5025_v2  ;;  %v5078_v52 = vadd.f32 %v5056_v59, %v4986_v3  ;;  %v5029_v43 = vpop.f32.mrb[39].mxu1 }
 0x562   :  { %v5085_v30 = vmax.f32 %v5077_v38, 0.0  ;;  %v5080_v6 = vadd.f32 %v5064_v1, %v5027_v4 }
 0x563   :  { %v5087_v58 = vmax.f32 %v5079_v5, 0.0  ;;  %v5086_v45 = vmax.f32 %v5078_v52, 0.0 }
 0x564   :  { %v5088_v7 = vmax.f32 %v5080_v6, 0.0  ;;  %v5093_v26 = vpack.c.bf16 %v5085_v30, %v5085_v30 }
 0x565   :  { %v5094_v53 = vpack.c.bf16 %v5086_v45, %v5086_v45  ;;  %v5095_v55 = vpack.c.bf16 %v5087_v58, %v5087_v58 }
 0x566   :  { %v5096_v32 = vpack.c.bf16 %v5088_v7, %v5088_v7 }
 0x567   :  { %5728 = vmatprep.mubr.bf16.mxu0 %v5094_v53 }
 0x568   :  { %5768 = vmatprep.mubr.bf16.mxu1 %v5096_v32  ;;  %5729 = vmatmul.mubr.bf16.vlgmr.msra.gmra.mrb[44].mxu0 %v5093_v26 }
 0x569   :  { %5769 = vmatmul.mubr.bf16.vlgmr.msra.gmra.mrb[44].mxu1 %v5095_v55 }
 0x56a   :  { %7097 = shalt.err (!%p7094_p6)
}
 0x56b   :  { %s7098_s20 = scalar_lea.hbm %s7644_s16, 512 }
 0x56c   :  { %p7099_p7 = scmp.ne.s32.totalorder %s7644_s16, %s7098_s20  ;;  %p7102_p8 = scmp.lt.u32.totalorder %s7098_s20, %s7644_s16 }
 0x56e   :  { %p7104_p9 = pnand %p7102_p8, %p7099_p7 }
 0x570   :  { %7107 = shalt.err (!%p7104_p9)
}
 0x571   :  { %5796 = dma.vmem_to_hbm [thread:$0]  %s5794_s8, 512, %s7644_s16, [#allocation20]   ;;  %v6451_v36 = vld [vmem:[%s7642_s14] ss:$0 sm:$0xff] }
 0x572   :  { %s7161_s14 = smov [#allocation18]  }
 0x573   :  { %s5783_s16 = sshll.u32 %s7161_s14, 4  ;;  %s5784_s16 = int_to_ptr.vmem [resolvable:$true] %s5783_s16 }
 0x574   :  { %s7108_s23 = scalar_lea.vmem %s5784_s16, 128  ;;  %p7113_p11 = scmp.lt.s32.totalorder %s5784_s16, %s5784_s16 }
 0x575   :  { %p7109_p10 = scmp.ne.s32.totalorder %s5784_s16, %s7108_s23  ;;  %p7114_p12 = scmp.lt.s32.totalorder %s7108_s23, %s7108_s23 }
 0x577   :  { %p7115_p13 = por %p7114_p12, %p7113_p11 }
 0x579   :  { %p7116_p0 = pnand %p7115_p13, %p7109_p10 }
 0x5fb   :  { %v6532_v0 = vpop.f32.mrb[40].mxu0 }
 0x5fc   :  { %v6554_v37 = vpop.f32.mrb[40].mxu1  ;;  %v6533_v16 = vpop.f32.mrb[41].mxu0 }
 0x5fd   :  { %v6534_v8 = vadd.f32 %v6533_v16, %v6532_v0  ;;  %v6555_v47 = vpop.f32.mrb[41].mxu1  ;;  %v6535_v35 = vpop.f32.mrb[42].mxu0 }
 0x5fe   :  { %v6556_v42 = vadd.f32 %v6555_v47, %v6554_v37  ;;  %v6557_v9 = vpop.f32.mrb[42].mxu1  ;;  %v6536_v41 = vpop.f32.mrb[43].mxu0 }
 0x5ff   :  { %v5651_v10 = vadd.f32 %v6534_v8, %v6451_v36  ;;  %v6558_v39 = vpop.f32.mrb[43].mxu1 }
 0x601   :  { %v5691_v11 = vadd.f32 %v6556_v42, %v5651_v10 }
 0x63b   :  { %v6576_v12 = vpop.f32.mrb[44].mxu0 }
 0x63c   :  { %v6598_v14 = vpop.f32.mrb[44].mxu1  ;;  %v6577_v44 = vpop.f32.mrb[45].mxu0 }
 0x63d   :  { %v6578_v15 = vadd.f32 %v6577_v44, %v6576_v12  ;;  %v6599_v17 = vpop.f32.mrb[45].mxu1  ;;  %v6579_v18 = vpop.f32.mrb[46].mxu0 }
 0x63e   :  { %v6600_v19 = vadd.f32 %v6599_v17, %v6598_v14  ;;  %v6601_v20 = vpop.f32.mrb[46].mxu1  ;;  %v6580_v21 = vpop.f32.mrb[47].mxu0 }
 0x63f   :  { %v5731_v22 = vadd.f32 %v6578_v15, %v5691_v11  ;;  %v6602_v23 = vpop.f32.mrb[47].mxu1 }
 0x641   :  { %v5771_v24 = vadd.f32 %v6600_v19, %v5731_v22 }
 0x643   :  { %5776 = vst [vmem:[#allocation18] sm:$0xff] %v5771_v24 }
 0x644   :  { %7119 = shalt.err (!%p7116_p0)
}
 0x645   :  { %s7120_s1 = scalar_lea.hbm %s7643_s15, 128 }
 0x646   :  { %p7121_p1 = scmp.ne.s32.totalorder %s7643_s15, %s7120_s1  ;;  %p7124_p2 = scmp.lt.u32.totalorder %s7120_s1, %s7643_s15 }
 0x648   :  { %p7126_p3 = pnand %p7124_p2, %p7121_p1 }
 0x64a   :  { %7129 = shalt.err (!%p7126_p3)
}
 0x64b   :  { %5786 = dma.vmem_to_hbm [thread:$0]  %s5784_s16, 128, %s7643_s15, [#allocation5]  }
 0x64c   :  { %7140 = dma.done.wait [#allocation5], 128  }
 0x64d   :  { %7141 = vsyncadd [#allocation5], 4294967168 }
 0x64e   :  { %7142 = dma.done.wait [#allocation20], 512  }
 0x64f   :  { %7143 = vsyncadd [#allocation20], 4294966784 }
 0x650   :  { %5803 = vsyncpa [#allocation4], 1 }
 0x651   :  { %5804 = vsyncpa [#allocation7], 1 }
 0x652   :  { %5805 = vsyncpa [#allocation10], 1 }
 0x653   :  { %5806 = vsyncpa [#allocation13], 1 }
 0x654   :  { %5807 = vsyncpa [#allocation16], 1 }
 0x655   :  { %5808 = vsyncpa [#allocation5], 1 }
 0x656   :  { %5809 = vsyncpa [#allocation20], 1 }

</bundles_post_ra>
